<compile_context>
chip_gen: v7x
topology: tpu7x:2x2x1
jax: 0.10.0
libtpu: 0.0.40
codegen_flags: <defaults>
</compile_context>

<pallas_src>
import functools

import jax
import jax.numpy as jnp
from jax.experimental import pallas as pl
from jax.experimental.pallas import tpu as pltpu


def moe_kernel(x1_ref, x2_ref, w1_ref, w2_ref, b1_ref, b2_ref,
               wg1_ref, wg2_ref, bg_ref,
               moe_ref, gate_ref,
               acc1_ref, acc2_ref, *, k1_tiles, k2_tiles):
    """Grid = (row tiles, K tiles). K is the reduction axis (innermost)."""
    k = pl.program_id(1)

    # ---- init: seed the f32 accumulators with the (resident) biases -------
    @pl.when(k == 0)
    def _():
        acc1_ref[...] = jnp.broadcast_to(b1_ref[...], acc1_ref.shape)
        acc2_ref[...] = jnp.broadcast_to(b2_ref[...], acc2_ref.shape)

    # ---- K-streamed expert matmuls: bf16 MXU, f32 accumulate --------------
    # The two experts have different K extents (x1dim vs x2dim); skip the
    # exhausted one (its index_map clamps so the DMA stays in-bounds).
    @pl.when(k < k1_tiles)
    def _():
        acc1_ref[...] += jnp.dot(x1_ref[...], w1_ref[...],
                                 preferred_element_type=jnp.float32)

    @pl.when(k < k2_tiles)
    def _():
        acc2_ref[...] += jnp.dot(x2_ref[...], w2_ref[...],
                                 preferred_element_type=jnp.float32)

    # ---- finalize: ReLU, gate on VPU/EUP, mixture, lane-dense stores ------
    @pl.when(k == pl.num_programs(1) - 1)
    def _():
        h1 = jnp.maximum(acc1_ref[...], 0.0)              # (tm, D) f32
        h2 = jnp.maximum(acc2_ref[...], 0.0)              # (tm, D) f32
        wg1 = wg1_ref[...].astype(jnp.float32)            # (2, D), resident
        wg2 = wg2_ref[...].astype(jnp.float32)            # (2, D), resident
        bg = bg_ref[...]                                  # (1, 2) f32, resident

        # Gate logits: elementwise multiply (VPU) + lane reduction (XLU).
        # Equivalent to h1 @ Wg1 + h2 @ Wg2 but keeps the MXU free of a
        # 2-column matmul and avoids a drain between expert matmuls and mix.
        l0 = (jnp.sum(h1 * wg1[0:1, :] + h2 * wg2[0:1, :],
                      axis=-1, keepdims=True) + bg[:, 0:1])      # (tm, 1)
        l1 = (jnp.sum(h1 * wg1[1:2, :] + h2 * wg2[1:2, :],
                      axis=-1, keepdims=True) + bg[:, 1:2])      # (tm, 1)

        # 2-way softmax == sigmoid of the logit difference (stable, EUP).
        g0 = jax.nn.sigmoid(l0 - l1)
        g1 = 1.0 - g0

        moe_ref[...] = (g0 * h1 + g1 * h2).astype(moe_ref.dtype)

        # Lane-dense (tm, 128) gate/cls output: lane0=g0, lane1=g1, lane2=cls.
        lane = jax.lax.broadcasted_iota(jnp.int32, gate_ref.shape, 1)
        cls_f = jnp.where(l1 > l0, 1.0, 0.0)              # tie -> expert 0
        gate_ref[...] = jnp.where(
            lane == 0, g0,
            jnp.where(lane == 1, g1,
                      jnp.where(lane == 2, cls_f, 0.0))).astype(gate_ref.dtype)


def lung_cancer_genetic_expert(x1, x2, params, *, tm=128, tk=128):
    """Two-expert gated MoE. Returns (moe_output, cls, gate)."""
    n, x1dim = x1.shape
    _, x2dim = x2.shape
    d = params["w1"].shape[1]

    assert n % tm == 0, "row count must be a multiple of the row tile"
    assert d % 128 == 0, "d_model must be lane-aligned"
    assert x1dim % tk == 0 and x2dim % tk == 0, "K dims must tile evenly"

    k1_tiles = x1dim // tk
    k2_tiles = x2dim // tk
    k_tiles = max(k1_tiles, k2_tiles)
    m_tiles = n // tm

    # bf16 streaming operands (MXU bf16 peak, half the HBM traffic); f32 biases.
    x1b = x1.astype(jnp.bfloat16)
    x2b = x2.astype(jnp.bfloat16)
    w1 = params["w1"].astype(jnp.bfloat16)
    w2 = params["w2"].astype(jnp.bfloat16)
    wg1t = params["wg1"].T.astype(jnp.bfloat16)           # (2, D)
    wg2t = params["wg2"].T.astype(jnp.bfloat16)           # (2, D)
    b1 = params["b1"].astype(jnp.float32)                 # (1, D)
    b2 = params["b2"].astype(jnp.float32)                 # (1, D)
    bg = params["bg"].astype(jnp.float32).reshape(1, 2)   # (1, 2)

    # Clamp the K block index for the expert whose contraction is exhausted
    # (the corresponding accumulation is skipped by pl.when in the kernel).
    c1 = lambda kk: jnp.minimum(kk, k1_tiles - 1)
    c2 = lambda kk: jnp.minimum(kk, k2_tiles - 1)

    flops = 2 * n * d * (x1dim + x2dim) + 8 * n * d
    bytes_accessed = (
        x1b.size * 2 + x2b.size * 2 + w1.size * 2 + w2.size * 2
        + wg1t.size * 2 + wg2t.size * 2
        + (b1.size + b2.size + bg.size) * 4
        + n * d * 4 + n * 128 * 4)

    kernel = functools.partial(moe_kernel, k1_tiles=k1_tiles, k2_tiles=k2_tiles)

    moe_out, gate_pad = pl.pallas_call(
        kernel,
        out_shape=(
            jax.ShapeDtypeStruct((n, d), jnp.float32),
            jax.ShapeDtypeStruct((n, 128), jnp.float32),
        ),
        grid_spec=pltpu.PrefetchScalarGridSpec(
            num_scalar_prefetch=0,
            grid=(m_tiles, k_tiles),
            in_specs=[
                pl.BlockSpec((tm, tk), lambda i, kk: (i, c1(kk))),   # x1 tile
                pl.BlockSpec((tm, tk), lambda i, kk: (i, c2(kk))),   # x2 tile
                pl.BlockSpec((tk, d), lambda i, kk: (c1(kk), 0)),    # W1 tile
                pl.BlockSpec((tk, d), lambda i, kk: (c2(kk), 0)),    # W2 tile
                pl.BlockSpec((1, d), lambda i, kk: (0, 0)),          # b1 (resident)
                pl.BlockSpec((1, d), lambda i, kk: (0, 0)),          # b2 (resident)
                pl.BlockSpec((2, d), lambda i, kk: (0, 0)),          # Wg1^T (resident)
                pl.BlockSpec((2, d), lambda i, kk: (0, 0)),          # Wg2^T (resident)
                pl.BlockSpec((1, 2), lambda i, kk: (0, 0)),          # bg (resident)
            ],
            out_specs=(
                pl.BlockSpec((tm, d), lambda i, kk: (i, 0)),         # moe_output
                pl.BlockSpec((tm, 128), lambda i, kk: (i, 0)),       # gate/cls block
            ),
            scratch_shapes=[
                pltpu.VMEM((tm, d), jnp.float32),                    # acc expert 1
                pltpu.VMEM((tm, d), jnp.float32),                    # acc expert 2
            ],
        ),
        compiler_params=pltpu.CompilerParams(
            # Row axis parallel (shards over v7x's 2 TCs), K is the reduction.
            dimension_semantics=("parallel", "arbitrary"),
            # <= 48 MiB: safe on v7x's 64 MiB VMEM; raise for bigger tiles on
            # v5e/v6e (128 MiB physical) if K/D tiles are grown.
            vmem_limit_bytes=48 * 1024 * 1024,
        ),
        cost_estimate=pl.CostEstimate(
            flops=flops, transcendentals=n, bytes_accessed=bytes_accessed),
    )(x1b, x2b, w1, w2, b1, b2, wg1t, wg2t, bg)

    gate = gate_pad[:, :2]
    cls = gate_pad[:, 2].astype(jnp.int32)   # "多专家综合分类结果", computed in-kernel
    return moe_out, cls, gate


def init_params(key, x1dim, x2dim, d_model):
    ks = jax.random.split(key, 4)
    return {
        "w1": jax.random.normal(ks[0], (x1dim, d_model), jnp.float32) / jnp.sqrt(x1dim),
        "b1": jnp.zeros((1, d_model), jnp.float32),
        "w2": jax.random.normal(ks[1], (x2dim, d_model), jnp.float32) / jnp.sqrt(x2dim),
        "b2": jnp.zeros((1, d_model), jnp.float32),
        "wg1": jax.random.normal(ks[2], (d_model, 2), jnp.float32) / jnp.sqrt(d_model),
        "wg2": jax.random.normal(ks[3], (d_model, 2), jnp.float32) / jnp.sqrt(d_model),
        "bg": jnp.zeros((1, 2), jnp.float32),
    }


def reference(x1, x2, p):
    """Pure-JAX reference on the same bf16-rounded operands (f32 math)."""
    r = lambda a: a.astype(jnp.bfloat16).astype(jnp.float32)
    x1f, x2f = r(x1), r(x2)
    w1, w2 = r(p["w1"]), r(p["w2"])
    wg1, wg2 = r(p["wg1"]), r(p["wg2"])
    bg = p["bg"].reshape(1, 2)
    h1 = jnp.maximum(x1f @ w1 + p["b1"], 0.0)
    h2 = jnp.maximum(x2f @ w2 + p["b2"], 0.0)
    logits = h1 @ wg1 + h2 @ wg2 + bg
    gate = jax.nn.softmax(logits, axis=-1)
    moe = gate[:, 0:1] * h1 + gate[:, 1:2] * h2
    return moe, gate, jnp.argmax(logits, axis=-1), logits


if __name__ == "__main__":
    # Small stand-ins for (x1dim=4096 LLaMA hidden, x2dim=5120 Ziya hidden);
    # unequal K extents exercise the clamped-K path, N=256 gives 2 row tiles.
    N, X1DIM, X2DIM, DMODEL = 256, 512, 640, 256

    key = jax.random.PRNGKey(0)
    k_p, k_x1, k_x2 = jax.random.split(key, 3)
    params = init_params(k_p, X1DIM, X2DIM, DMODEL)

    hidden_state0 = jax.random.normal(k_x1, (N, X1DIM), jnp.float32)  # Oncologist expert
    hidden_state1 = jax.random.normal(k_x2, (N, X2DIM), jnp.float32)  # Medical-imaging expert

    moe_out, cls, gate = lung_cancer_genetic_expert(hidden_state0, hidden_state1, params)
    moe_out, cls, gate = jax.block_until_ready((moe_out, cls, gate))

    ref_moe, ref_gate, ref_cls, ref_logits = reference(hidden_state0, hidden_state1, params)

    assert moe_out.shape == (N, DMODEL) and cls.shape == (N,) and gate.shape == (N, 2)
    assert jnp.allclose(moe_out, ref_moe, atol=2e-3, rtol=2e-3), \
        float(jnp.max(jnp.abs(moe_out - ref_moe)))
    assert jnp.allclose(gate, ref_gate, atol=1e-3), \
        float(jnp.max(jnp.abs(gate - ref_gate)))
    # Compare the hard classification only where the gate margin is not a tie.
    margin = jnp.abs(ref_logits[:, 0] - ref_logits[:, 1])
    safe = margin > 1e-2
    assert jnp.array_equal(jnp.where(safe, cls, 0), jnp.where(safe, ref_cls, 0))

    print("KERNEL_OK")
</pallas_src>

<mosaic_0001>
module attributes {stable_mosaic.version = 11 : i64} {
  func.func @moe_kernel(%arg0: i32, %arg1: i32, %arg2: memref<128x128xbf16, #tpu.memory_space<vmem>>, %arg3: memref<128x128xbf16, #tpu.memory_space<vmem>>, %arg4: memref<128x256xbf16, #tpu.memory_space<vmem>>, %arg5: memref<128x256xbf16, #tpu.memory_space<vmem>>, %arg6: memref<1x256xf32, #tpu.memory_space<vmem>>, %arg7: memref<1x256xf32, #tpu.memory_space<vmem>>, %arg8: memref<2x256xbf16, #tpu.memory_space<vmem>>, %arg9: memref<2x256xbf16, #tpu.memory_space<vmem>>, %arg10: memref<1x2xf32, #tpu.memory_space<vmem>>, %arg11: memref<128x256xf32, #tpu.memory_space<vmem>>, %arg12: memref<128x128xf32, #tpu.memory_space<vmem>>, %arg13: memref<128x256xf32, #tpu.memory_space<vmem>>, %arg14: memref<128x256xf32, #tpu.memory_space<vmem>>) attributes {dimension_semantics = [#tpu.dimension_semantics<parallel>, #tpu.dimension_semantics<arbitrary>], iteration_bounds = array<i64: 2, 5>, scalar_prefetch = 0 : i64, scratch_operands = 2 : i64, tpu.core_type = #tpu.core_type<tc>, window_params = [{transform_indices = @transform_0, window_bounds = array<i64: 128, 128>}, {transform_indices = @transform_1, window_bounds = array<i64: 128, 128>}, {transform_indices = @transform_2, window_bounds = array<i64: 128, 256>}, {transform_indices = @transform_3, window_bounds = array<i64: 128, 256>}, {pipeline_mode = #tpu.pipeline_mode<synchronous>, transform_indices = @transform_4, window_bounds = array<i64: 1, 256>}, {pipeline_mode = #tpu.pipeline_mode<synchronous>, transform_indices = @transform_5, window_bounds = array<i64: 1, 256>}, {pipeline_mode = #tpu.pipeline_mode<synchronous>, transform_indices = @transform_6, window_bounds = array<i64: 2, 256>}, {pipeline_mode = #tpu.pipeline_mode<synchronous>, transform_indices = @transform_7, window_bounds = array<i64: 2, 256>}, {pipeline_mode = #tpu.pipeline_mode<synchronous>, transform_indices = @transform_8, window_bounds = array<i64: 1, 2>}, {transform_indices = @transform_9, window_bounds = array<i64: 128, 256>}, {transform_indices = @transform_10, window_bounds = array<i64: 128, 128>}]} {
    %c0_i32 = arith.constant 0 : i32
    %0 = arith.cmpi eq, %arg1, %c0_i32 : i32
    %1 = arith.extui %0 : i1 to i32
    %c0_i32_0 = arith.constant 0 : i32
    %2 = arith.cmpi ne, %1, %c0_i32_0 : i32
    scf.if %2 {
      %c0 = arith.constant 0 : index
      %c0_5 = arith.constant 0 : index
      %12 = vector.load %arg6[%c0, %c0_5] : memref<1x256xf32, #tpu.memory_space<vmem>>, vector<1x256xf32>
      %13 = vector.shape_cast %12 : vector<1x256xf32> to vector<1x256xf32>
      %14 = vector.broadcast %13 : vector<1x256xf32> to vector<128x256xf32>
      %c0_6 = arith.constant 0 : index
      %c0_7 = arith.constant 0 : index
      %15 = vector.load %arg13[%c0_6, %c0_7] : memref<128x256xf32, #tpu.memory_space<vmem>>, vector<128x256xf32>
      tpu.vector_store %arg13[%c0_6, %c0_7], %14 {strides = array<i32>} : memref<128x256xf32, #tpu.memory_space<vmem>>, vector<128x256xf32>,
      %c0_8 = arith.constant 0 : index
      %c0_9 = arith.constant 0 : index
      %16 = vector.load %arg7[%c0_8, %c0_9] : memref<1x256xf32, #tpu.memory_space<vmem>>, vector<1x256xf32>
      %17 = vector.shape_cast %16 : vector<1x256xf32> to vector<1x256xf32>
      %18 = vector.broadcast %17 : vector<1x256xf32> to vector<128x256xf32>
      %c0_10 = arith.constant 0 : index
      %c0_11 = arith.constant 0 : index
      %19 = vector.load %arg14[%c0_10, %c0_11] : memref<128x256xf32, #tpu.memory_space<vmem>>, vector<128x256xf32>
      tpu.vector_store %arg14[%c0_10, %c0_11], %18 {strides = array<i32>} : memref<128x256xf32, #tpu.memory_space<vmem>>, vector<128x256xf32>,
    } else {
    }
    %c4_i32 = arith.constant 4 : i32
    %3 = arith.cmpi slt, %arg1, %c4_i32 : i32
    %4 = arith.extui %3 : i1 to i32
    %c0_i32_1 = arith.constant 0 : i32
    %5 = arith.cmpi ne, %4, %c0_i32_1 : i32
    scf.if %5 {
      %c0 = arith.constant 0 : index
      %c0_5 = arith.constant 0 : index
      %12 = vector.load %arg13[%c0, %c0_5] : memref<128x256xf32, #tpu.memory_space<vmem>>, vector<128x256xf32>
      %c0_6 = arith.constant 0 : index
      %c0_7 = arith.constant 0 : index
      %13 = vector.load %arg2[%c0_6, %c0_7] : memref<128x128xbf16, #tpu.memory_space<vmem>>, vector<128x128xbf16>
      %c0_8 = arith.constant 0 : index
      %c0_9 = arith.constant 0 : index
      %14 = vector.load %arg4[%c0_8, %c0_9] : memref<128x256xbf16, #tpu.memory_space<vmem>>, vector<128x256xbf16>
      %cst = arith.constant dense<0.000000e+00> : vector<128x256xf32>
      %15 = tpu.matmul %13, %14, %cst {dimension_numbers = #tpu.dot_dimension_numbers<[1], [0], [0], [1], [0, 0, 1, 1], [], []>} : vector<128x128xbf16>, vector<128x256xbf16>, vector<128x256xf32> -> vector<128x256xf32>
      %16 = arith.addf %12, %15 : vector<128x256xf32>
      %c0_10 = arith.constant 0 : index
      %c0_11 = arith.constant 0 : index
      %17 = vector.load %arg13[%c0_10, %c0_11] : memref<128x256xf32, #tpu.memory_space<vmem>>, vector<128x256xf32>
      tpu.vector_store %arg13[%c0_10, %c0_11], %16 {strides = array<i32>} : memref<128x256xf32, #tpu.memory_space<vmem>>, vector<128x256xf32>,
    } else {
    }
    %c5_i32 = arith.constant 5 : i32
    %6 = arith.cmpi slt, %arg1, %c5_i32 : i32
    %7 = arith.extui %6 : i1 to i32
    %c0_i32_2 = arith.constant 0 : i32
    %8 = arith.cmpi ne, %7, %c0_i32_2 : i32
    scf.if %8 {
      %c0 = arith.constant 0 : index
      %c0_5 = arith.constant 0 : index
      %12 = vector.load %arg14[%c0, %c0_5] : memref<128x256xf32, #tpu.memory_space<vmem>>, vector<128x256xf32>
      %c0_6 = arith.constant 0 : index
      %c0_7 = arith.constant 0 : index
      %13 = vector.load %arg3[%c0_6, %c0_7] : memref<128x128xbf16, #tpu.memory_space<vmem>>, vector<128x128xbf16>
      %c0_8 = arith.constant 0 : index
      %c0_9 = arith.constant 0 : index
      %14 = vector.load %arg5[%c0_8, %c0_9] : memref<128x256xbf16, #tpu.memory_space<vmem>>, vector<128x256xbf16>
      %cst = arith.constant dense<0.000000e+00> : vector<128x256xf32>
      %15 = tpu.matmul %13, %14, %cst {dimension_numbers = #tpu.dot_dimension_numbers<[1], [0], [0], [1], [0, 0, 1, 1], [], []>} : vector<128x128xbf16>, vector<128x256xbf16>, vector<128x256xf32> -> vector<128x256xf32>
      %16 = arith.addf %12, %15 : vector<128x256xf32>
      %c0_10 = arith.constant 0 : index
      %c0_11 = arith.constant 0 : index
      %17 = vector.load %arg14[%c0_10, %c0_11] : memref<128x256xf32, #tpu.memory_space<vmem>>, vector<128x256xf32>
      tpu.vector_store %arg14[%c0_10, %c0_11], %16 {strides = array<i32>} : memref<128x256xf32, #tpu.memory_space<vmem>>, vector<128x256xf32>,
    } else {
    }
    %c4_i32_3 = arith.constant 4 : i32
    %9 = arith.cmpi eq, %arg1, %c4_i32_3 : i32
    %10 = arith.extui %9 : i1 to i32
    %c0_i32_4 = arith.constant 0 : i32
    %11 = arith.cmpi ne, %10, %c0_i32_4 : i32
    scf.if %11 {
      %c0 = arith.constant 0 : index
      %c0_5 = arith.constant 0 : index
      %12 = vector.load %arg13[%c0, %c0_5] : memref<128x256xf32, #tpu.memory_space<vmem>>, vector<128x256xf32>
      %cst = arith.constant 0.000000e+00 : f32
      %13 = vector.broadcast %cst : f32 to vector<128x256xf32>
      %14 = arith.maximumf %12, %13 : vector<128x256xf32>
      %c0_6 = arith.constant 0 : index
      %c0_7 = arith.constant 0 : index
      %15 = vector.load %arg14[%c0_6, %c0_7] : memref<128x256xf32, #tpu.memory_space<vmem>>, vector<128x256xf32>
      %cst_8 = arith.constant 0.000000e+00 : f32
      %16 = vector.broadcast %cst_8 : f32 to vector<128x256xf32>
      %17 = arith.maximumf %15, %16 : vector<128x256xf32>
      %c0_9 = arith.constant 0 : index
      %c0_10 = arith.constant 0 : index
      %18 = vector.load %arg8[%c0_9, %c0_10] : memref<2x256xbf16, #tpu.memory_space<vmem>>, vector<2x256xbf16>
      %19 = arith.extf %18 : vector<2x256xbf16> to vector<2x256xf32>
      %c0_11 = arith.constant 0 : index
      %c0_12 = arith.constant 0 : index
      %20 = vector.load %arg9[%c0_11, %c0_12] : memref<2x256xbf16, #tpu.memory_space<vmem>>, vector<2x256xbf16>
      %21 = arith.extf %20 : vector<2x256xbf16> to vector<2x256xf32>
      %c0_13 = arith.constant 0 : index
      %c0_14 = arith.constant 0 : index
      %22 = vector.load %arg10[%c0_13, %c0_14] : memref<1x2xf32, #tpu.memory_space<vmem>>, vector<1x2xf32>
      %23 = vector.extract_strided_slice %19 {offsets = [0, 0], sizes = [1, 256], strides = [1, 1]} : vector<2x256xf32> to vector<1x256xf32>
      %24 = vector.broadcast %23 : vector<1x256xf32> to vector<128x256xf32>
      %25 = arith.mulf %14, %24 : vector<128x256xf32>
      %26 = vector.extract_strided_slice %21 {offsets = [0, 0], sizes = [1, 256], strides = [1, 1]} : vector<2x256xf32> to vector<1x256xf32>
      %27 = vector.broadcast %26 : vector<1x256xf32> to vector<128x256xf32>
      %28 = arith.mulf %17, %27 : vector<128x256xf32>
      %29 = arith.addf %25, %28 : vector<128x256xf32>
      %cst_15 = arith.constant dense<0.000000e+00> : vector<128xf32>
      %30 = vector.multi_reduction <add>, %29, %cst_15 [1] : vector<128x256xf32> to vector<128xf32>
      %31 = vector.shape_cast %30 : vector<128xf32> to vector<128x1xf32>
      %32 = vector.extract_strided_slice %22 {offsets = [0, 0], sizes = [1, 1], strides = [1, 1]} : vector<1x2xf32> to vector<1x1xf32>
      %33 = vector.broadcast %32 : vector<1x1xf32> to vector<128x1xf32>
      %34 = arith.addf %31, %33 : vector<128x1xf32>
      %35 = vector.extract_strided_slice %19 {offsets = [1, 0], sizes = [1, 256], strides = [1, 1]} : vector<2x256xf32> to vector<1x256xf32>
      %36 = vector.broadcast %35 : vector<1x256xf32> to vector<128x256xf32>
      %37 = arith.mulf %14, %36 : vector<128x256xf32>
      %38 = vector.extract_strided_slice %21 {offsets = [1, 0], sizes = [1, 256], strides = [1, 1]} : vector<2x256xf32> to vector<1x256xf32>
      %39 = vector.broadcast %38 : vector<1x256xf32> to vector<128x256xf32>
      %40 = arith.mulf %17, %39 : vector<128x256xf32>
      %41 = arith.addf %37, %40 : vector<128x256xf32>
      %cst_16 = arith.constant dense<0.000000e+00> : vector<128xf32>
      %42 = vector.multi_reduction <add>, %41, %cst_16 [1] : vector<128x256xf32> to vector<128xf32>
      %43 = vector.shape_cast %42 : vector<128xf32> to vector<128x1xf32>
      %44 = vector.extract_strided_slice %22 {offsets = [0, 1], sizes = [1, 1], strides = [1, 1]} : vector<1x2xf32> to vector<1x1xf32>
      %45 = vector.broadcast %44 : vector<1x1xf32> to vector<128x1xf32>
      %46 = arith.addf %43, %45 : vector<128x1xf32>
      %47 = arith.subf %34, %46 : vector<128x1xf32>
      %48 = arith.negf %47 : vector<128x1xf32>
      %49 = math.exp %48 : vector<128x1xf32>
      %cst_17 = arith.constant 1.000000e+00 : f32
      %50 = vector.broadcast %cst_17 : f32 to vector<128x1xf32>
      %51 = arith.addf %50, %49 : vector<128x1xf32>
      %52 = arith.divf %50, %51 : vector<128x1xf32>
      %cst_18 = arith.constant 1.000000e+00 : f32
      %53 = vector.broadcast %cst_18 : f32 to vector<128x1xf32>
      %54 = arith.subf %53, %52 : vector<128x1xf32>
      %55 = vector.broadcast %52 : vector<128x1xf32> to vector<128x256xf32>
      %56 = arith.mulf %55, %14 : vector<128x256xf32>
      %57 = vector.broadcast %54 : vector<128x1xf32> to vector<128x256xf32>
      %58 = arith.mulf %57, %17 : vector<128x256xf32>
      %59 = arith.addf %56, %58 : vector<128x256xf32>
      %c0_19 = arith.constant 0 : index
      %c0_20 = arith.constant 0 : index
      %60 = vector.load %arg11[%c0_19, %c0_20] : memref<128x256xf32, #tpu.memory_space<vmem>>, vector<128x256xf32>
      tpu.vector_store %arg11[%c0_19, %c0_20], %59 {strides = array<i32>} : memref<128x256xf32, #tpu.memory_space<vmem>>, vector<128x256xf32>,
      %61 = tpu.iota {dimensions = array<i32: 1>} : vector<128x128xi32>
      %62 = arith.cmpf ogt, %46, %34 : vector<128x1xf32>
      %cst_21 = arith.constant 1.000000e+00 : f32
      %cst_22 = arith.constant 0.000000e+00 : f32
      %63 = vector.broadcast %cst_21 : f32 to vector<128x1xf32>
      %64 = vector.broadcast %cst_22 : f32 to vector<128x1xf32>
      %65 = arith.select %62, %63, %64 : vector<128x1xi1>, vector<128x1xf32>
      %c0_i32_23 = arith.constant 0 : i32
      %66 = vector.broadcast %c0_i32_23 : i32 to vector<128x128xi32>
      %67 = arith.cmpi eq, %61, %66 : vector<128x128xi32>
      %c1_i32 = arith.constant 1 : i32
      %68 = vector.broadcast %c1_i32 : i32 to vector<128x128xi32>
      %69 = arith.cmpi eq, %61, %68 : vector<128x128xi32>
      %c2_i32 = arith.constant 2 : i32
      %70 = vector.broadcast %c2_i32 : i32 to vector<128x128xi32>
      %71 = arith.cmpi eq, %61, %70 : vector<128x128xi32>
      %cst_24 = arith.constant 0.000000e+00 : f32
      %72 = vector.shape_cast %65 : vector<128x1xf32> to vector<128x1xf32>
      %73 = vector.broadcast %72 : vector<128x1xf32> to vector<128x128xf32>
      %74 = vector.broadcast %cst_24 : f32 to vector<128x128xf32>
      %75 = arith.select %71, %73, %74 : vector<128x128xi1>, vector<128x128xf32>
      %76 = vector.shape_cast %54 : vector<128x1xf32> to vector<128x1xf32>
      %77 = vector.broadcast %76 : vector<128x1xf32> to vector<128x128xf32>
      %78 = arith.select %69, %77, %75 : vector<128x128xi1>, vector<128x128xf32>
      %79 = vector.shape_cast %52 : vector<128x1xf32> to vector<128x1xf32>
      %80 = vector.broadcast %79 : vector<128x1xf32> to vector<128x128xf32>
      %81 = arith.select %67, %80, %78 : vector<128x128xi1>, vector<128x128xf32>
      %c0_25 = arith.constant 0 : index
      %c0_26 = arith.constant 0 : index
      %82 = vector.load %arg12[%c0_25, %c0_26] : memref<128x128xf32, #tpu.memory_space<vmem>>, vector<128x128xf32>
      tpu.vector_store %arg12[%c0_25, %c0_26], %81 {strides = array<i32>} : memref<128x128xf32, #tpu.memory_space<vmem>>, vector<128x128xf32>,
    } else {
    }
    return
  }
  func.func @transform_0(%arg0: i32, %arg1: i32) -> (i32, i32) {
    %c3_i32 = arith.constant 3 : i32
    %0 = arith.minsi %arg1, %c3_i32 : i32
    %c0_i32 = arith.constant 0 : i32
    return %arg0, %0 : i32, i32
  }
  func.func @transform_1(%arg0: i32, %arg1: i32) -> (i32, i32) {
    %c4_i32 = arith.constant 4 : i32
    %0 = arith.minsi %arg1, %c4_i32 : i32
    %c0_i32 = arith.constant 0 : i32
    return %arg0, %0 : i32, i32
  }
  func.func @transform_2(%arg0: i32, %arg1: i32) -> (i32, i32) {
    %c3_i32 = arith.constant 3 : i32
    %0 = arith.minsi %arg1, %c3_i32 : i32
    %c0_i32 = arith.constant 0 : i32
    %c0_i32_0 = arith.constant 0 : i32
    return %0, %c0_i32 : i32, i32
  }
  func.func @transform_3(%arg0: i32, %arg1: i32) -> (i32, i32) {
    %c4_i32 = arith.constant 4 : i32
    %0 = arith.minsi %arg1, %c4_i32 : i32
    %c0_i32 = arith.constant 0 : i32
    %c0_i32_0 = arith.constant 0 : i32
    return %0, %c0_i32 : i32, i32
  }
  func.func @transform_4(%arg0: i32, %arg1: i32) -> (i32, i32) {
    %c0_i32 = arith.constant 0 : i32
    %c0_i32_0 = arith.constant 0 : i32
    %c0_i32_1 = arith.constant 0 : i32
    return %c0_i32, %c0_i32_0 : i32, i32
  }
  func.func @transform_5(%arg0: i32, %arg1: i32) -> (i32, i32) {
    %c0_i32 = arith.constant 0 : i32
    %c0_i32_0 = arith.constant 0 : i32
    %c0_i32_1 = arith.constant 0 : i32
    return %c0_i32, %c0_i32_0 : i32, i32
  }
  func.func @transform_6(%arg0: i32, %arg1: i32) -> (i32, i32) {
    %c0_i32 = arith.constant 0 : i32
    %c0_i32_0 = arith.constant 0 : i32
    %c0_i32_1 = arith.constant 0 : i32
    return %c0_i32, %c0_i32_0 : i32, i32
  }
  func.func @transform_7(%arg0: i32, %arg1: i32) -> (i32, i32) {
    %c0_i32 = arith.constant 0 : i32
    %c0_i32_0 = arith.constant 0 : i32
    %c0_i32_1 = arith.constant 0 : i32
    return %c0_i32, %c0_i32_0 : i32, i32
  }
  func.func @transform_8(%arg0: i32, %arg1: i32) -> (i32, i32) {
    %c0_i32 = arith.constant 0 : i32
    %c0_i32_0 = arith.constant 0 : i32
    %c0_i32_1 = arith.constant 0 : i32
    return %c0_i32, %c0_i32_0 : i32, i32
  }
  func.func @transform_9(%arg0: i32, %arg1: i32) -> (i32, i32) {
    %c0_i32 = arith.constant 0 : i32
    %c0_i32_0 = arith.constant 0 : i32
    return %arg0, %c0_i32 : i32, i32
  }
  func.func @transform_10(%arg0: i32, %arg1: i32) -> (i32, i32) {
    %c0_i32 = arith.constant 0 : i32
    %c0_i32_0 = arith.constant 0 : i32
    return %arg0, %c0_i32 : i32, i32
  }
}

</mosaic_0001>

<bundles_post_ra>
// kernel: tpu_custom_call.1
= control target key start
LH: loop header
LB: loop body
LE: loop exit
PB: predicated region body
PF: predicated region fallthrough
CT: control target
= control target key end

     0   :  { %s5543_s0 = inlined_call_operand.hbm [shape: bf16[256,512], index: 0, kind: input, shape index: {}]   ;;  %s5544_s1 = inlined_call_operand.hbm [shape: bf16[256,640], index: 1, kind: input, shape index: {}]   ;;  %s5545_s2 = inlined_call_operand.hbm [shape: bf16[512,256], index: 2, kind: input, shape index: {}]   ;;  %s5546_s3 = inlined_call_operand.hbm [shape: bf16[640,256], index: 3, kind: input, shape index: {}]   ;;  %s5547_s4 = inlined_call_operand.vmem [shape: f32[1,256], index: 4, kind: input, shape index: {}]   ;;  %s5548_s5 = inlined_call_operand.vmem [shape: f32[1,256], index: 5, kind: input, shape index: {}]   ;;  %s5549_s6 = inlined_call_operand.vmem [shape: bf16[2,256], index: 6, kind: input, shape index: {}]   ;;  %s5550_s7 = inlined_call_operand.vmem [shape: bf16[2,256], index: 7, kind: input, shape index: {}]   ;;  %s5551_s8 = inlined_call_operand.vmem [shape: f32[1,2], index: 8, kind: input, shape index: {}]   ;;  %s5552_s9 = inlined_call_operand.hbm [shape: f32[256,256], index: 9, kind: output, shape index: {0}]   ;;  %s5553_s10 = inlined_call_operand.hbm [shape: f32[256,128], index: 10, kind: output, shape index: {1}]  }
   0x1   :  { %5667 = sst [smem:[#allocation96_spill]] %s5543_s0 }
   0x2   :  { %5668 = sst [smem:[#allocation97_spill]] %s5544_s1 }
   0x3   :  { %5669 = sst [smem:[#allocation98_spill]] %s5545_s2 }
   0x4   :  { %5670 = sst [smem:[#allocation99_spill]] %s5546_s3 }
   0x5   :  { %5671 = sst [smem:[#allocation100_spill]] %s5547_s4 }
   0x6   :  { %5672 = sst [smem:[#allocation101_spill]] %s5548_s5 }
   0x7   :  { %5673 = sst [smem:[#allocation102_spill]] %s5549_s6 }
   0x8   :  { %5674 = sst [smem:[#allocation103_spill]] %s5550_s7 }
   0x9   :  { %5675 = sst [smem:[#allocation104_spill]] %s5551_s8 }
   0xa   :  { %5676 = sst [smem:[#allocation105_spill]] %s5552_s9 }
   0xb   :  { %5677 = sst [smem:[#allocation106_spill]] %s5553_s10 }
   0xc   :  { %16 = vsyncpa [#allocation5], 0 }
   0xd   :  { %18 = vsyncpa [#allocation5 + $0x1], 0 }
   0xe   :  { %19 = vsyncpa [#allocation8], 0 }
   0xf   :  { %21 = vsyncpa [#allocation8 + $0x1], 0 }
  0x10   :  { %22 = vsyncpa [#allocation11], 0 }
  0x11   :  { %24 = vsyncpa [#allocation11 + $0x1], 0 }
  0x12   :  { %25 = vsyncpa [#allocation6], 0 }
  0x13   :  { %27 = vsyncpa [#allocation6 + $0x1], 0 }
  0x14   :  { %28 = vsyncpa [#allocation14], 0 }
  0x15   :  { %30 = vsyncpa [#allocation14 + $0x1], 0  ;;  %s3858_s13 = smov 0   ;;  %s3860_s14 = smov 0  }
  0x16   :  { %s3862_s15 = smov 0   ;;  %s3864_s16 = smov 0  }
  0x17   :  { %s3866_s17 = smov 0   ;;  %s3868_s18 = smov 0  }
  0x18   :  { %s3870_s19 = smov 0   ;;  %s3872_s20 = smov 0  }
  0x19   :  { %s3874_s21 = smov 0   ;;  %s3876_s22 = smov 0  }
  0x1a   :  { %s3878_s23 = smov 0   ;;  %s3880_s24 = smov 0  }
  0x1b   :  { %s3882_s25 = smov 0   ;;  %s3884_s26 = smov 0  }
  0x1c   :  { %s3886_s27 = smov 0   ;;  %s3888_s28 = smov 0  }
  0x1d   :  { %s3890_s29 = smov 0   ;;  %s3892_s30 = smov 0  }
  0x1e   :  { %s3894_s11 = smov 0   ;;  %s3896_s12 = smov 0  }
  0x1f LB: > { %5678 = sst [smem:[#allocation21_spill]] %s3702_s13  ;;  %s3959_s10 = sadd.s32 4294967295, %s3778_s12   ;;  %s3778_s12 = sphi %s3896_s12, %s36_s12   ;;  %s3774_s11 = sphi %s3894_s11, %s5919_s11   ;;  %s3770_s30 = sphi %s3892_s30, %s5918_s30   ;;  %s3766_s29 = sphi %s3890_s29, %s5917_s29   ;;  %s3762_s28 = sphi %s3888_s28, %s5905_s28   ;;  %s3758_s27 = sphi %s3886_s27, %s5916_s27   ;;  %s3754_s26 = sphi %s3884_s26, %s5915_s26   ;;  %s3750_s25 = sphi %s3882_s25, %s5914_s25   ;;  %s3746_s24 = sphi %s3880_s24, %s5904_s24   ;;  %s3742_s23 = sphi %s3878_s23, %s5913_s23   ;;  %s3738_s22 = sphi %s3876_s22, %s5902_s22   ;;  %s3734_s21 = sphi %s3874_s21, %s5912_s21   ;;  %s3730_s20 = sphi %s3872_s20, %s5911_s20   ;;  %s3726_s19 = sphi %s3870_s19, %s5910_s19   ;;  %s3722_s18 = sphi %s3868_s18, %s5909_s18   ;;  %s3718_s17 = sphi %s3866_s17, %s5901_s17   ;;  %s3714_s16 = sphi %s3864_s16, %s5900_s16   ;;  %s3710_s15 = sphi %s3862_s15, %s5899_s15   ;;  %s3706_s14 = sphi %s3860_s14, %s5898_s14   ;;  %s3702_s13 = sphi %s3858_s13, %s5897_s13  }
  0x20   : > { %5679 = sst [smem:[#allocation22_spill]] %s3706_s14  ;;  %s48_s8 = sadd.s32 1, %s3774_s11 }
  0x21   : > { %5680 = sst [smem:[#allocation23_spill]] %s3710_s15  ;;  %p5572_p1 = scmp.eq.s32.totalorder %s3778_s12, 0 }
  0x22   : > { %5681 = sst [smem:[#allocation24_spill]] %s3714_s16  ;;  %p5571_p2 = scmp.eq.s32.totalorder %s3959_s10, 0 }
  0x23   : > { %5682 = sst [smem:[#allocation25_spill]] %s3718_s17  ;;  %p84_p3 = scmp.lt.s32.totalorder %s3770_s30, 4 }
  0x24   : > { %5683 = sst [smem:[#allocation26_spill]] %s3722_s18  ;;  %s93_s9 = sadd.s32 1, %s3746_s24 }
  0x25   : > { %5684 = sst [smem:[#allocation27_spill]] %s3742_s23  ;;  %p100_p6 = scmp.ne.s32.totalorder %s3746_s24, %s3742_s23 }
  0x26   : > { %5685 = sst [smem:[#allocation28_spill]] %s3746_s24  ;;  %p106_p8 = scmp.ne.s32.totalorder %s3742_s23, %s3738_s22 }
  0x27   : > { %5686 = sst [smem:[#allocation29_spill]] %s3762_s28  ;;  %p3986_p7 = por %p100_p6, %p5572_p1 }
  0x28   : > { %5687 = sst [smem:[#allocation30_spill]] %s3766_s29  ;;  %s45_s29 = sadd.s32 1, %s3770_s30 }
  0x29   : > { %5688 = sst [smem:[#allocation31_spill]] %s3770_s30  ;;  %p46_p0 = scmp.ge.s32.totalorder %s45_s29, 5 }
  0x2a   : > { %s3971_s7 = scalar_select %p84_p3, %s3770_s30, 4 }
  0x2b   : > { %s5921_s29 = smov (%p46_p0, %s45_s29), 0  ;;  %s5923_s8 = smov (!%p46_p0, %s48_s8), %s3774_s11 }
  0x2c   : > { %5689 = sst [smem:[#allocation32_spill]] %s5921_s29  ;;  %p50_p4 = scmp.ge.s32.totalorder %s5923_s8, 2 }
  0x2d   : > { %p86_p5 = scmp.lt.s32.totalorder %s5921_s29, 4  ;;  %p4000_p11 = por %p106_p8, %p5571_p2 }
  0x2e   : > { %s5925_s8 = smov (%p50_p4, %s5923_s8), 0  ;;  %s284_s16 = sadd.s32 1, %s3710_s15 }
  0x2f   : > { %5690 = sst [smem:[#allocation33_spill]] %s5925_s8  ;;  %s3982_s5 = ssub.s32 %s3774_s11, %s5925_s8 }
  0x30   : > { %s87_s6 = scalar_select %p86_p5, %s5921_s29, 4 }
  0x31   : > { %p282_p9 = scmp.eq.s32.totalorder %s3982_s5, 0  ;;  %p294_p12 = scmp.ne.s32.totalorder %s3710_s15, %s3706_s14 }
  0x32   : > { %s3991_s28 = ssub.s32 %s3971_s7, %s87_s6  ;;  %p295_p13 = scmp.eq.s32.totalorder %s3959_s10, 9 }
  0x33   : > { %s90_s3 = sor.u32 %s3991_s28, %s3982_s5  ;;  %p300_p0 = scmp.ne.s32.totalorder %s3706_s14, %s3702_s13 }
  0x34   : > { %p91_p10 = scmp.eq.s32.totalorder %s90_s3, 0  ;;  %s5696_s22 = sadd.s32 4294967294, %s3778_s12  }
  0x35   : > { %s5692_s8 = scalar_select %p4000_p11, 1, 0 }
  0x36   : > { %s4008_s6 = scalar_select %p91_p10, %s3746_s24, %s93_s9  }
  0x37   : > { %5693 = sst [smem:[#allocation34_spill]] %s5692_s8  ;;  %p301_p3 = scmp.eq.s32.totalorder %s5696_s22, 9 }
  0x38   : > { %5694 = sst [smem:[#allocation35_spill]] %s4008_s6  ;;  %p4018_p4 = por %p295_p13, %p294_p12 }
  0x39   : > { %s4011_s17 = scalar_select %p282_p9, %s3710_s15, %s284_s16  }
  0x3a   : > { %s5697_s3 = scalar_select %p4018_p4, 1, 0 }
  0x3b   : > { %5695 = sst [smem:[#allocation36_spill]] %s4011_s17  ;;  %p5570_p5 = scmp.lt.s32.totalorder %s3778_s12, 10 }
  0x3c   : > { %5698 = sst [smem:[#allocation37_spill]] %s5697_s3  ;;  %p4023_p6 = por %p301_p3, %p300_p0 }
  0x3d   : > { %s387_s8 = sand.u32 1, %s3778_s12   ;;  %s389_s18 = sand.u32 1, %s3746_s24  }
  0x3e   : > { %s5699_s23 = scalar_select %p4023_p6, 1, 0 }
  0x3f   : > { %s2897_s9 = sshll.u32 %s389_s18, 6  ;;  %s3034_s6 = smul.u32 80, %s3774_s11 }
  0x40   : > { %5700 = sst [smem:[#allocation38_spill]] %s5699_s23  ;;  %p4034_p8 = pnand %p5570_p5, %p3986_p7 }
  0x41   : > { %s399_s22 = sadd.s32 %s3034_s6, %s3971_s7  ;;  %s391_s17 = scalar_lea.vmem [#allocation7], %s2897_s9 }
  0x42   : > { %s402_s15 = sshll.u32 %s391_s17, 4  ;;  %s2900_s13 = sshll.u32 %s399_s22, 6  ;;  %s4039_s15 = int_to_ptr.vmem [resolvable:$true] %s402_s15 }
  0x43   : > { %s5702_s1 = sld [smem:[#allocation97_spill]]  ;;  %s4047_s4 = scalar_lea.sflag [#allocation8], %s387_s8 }
  0x44   : > { %p3422_p10 = pneg %p4034_p8 }
  0x49   : > { %s4044_s24 = scalar_lea.hbm %s5702_s1, %s2900_s13  ;;  %s3425_s13 = scalar_lea.hbm %s5702_s1, 10240 }
  0x4a   : > { %s3420_s18 = scalar_lea.hbm %s4044_s24, 1024  ;;  %p3426_p0 = scmp.lt.u32.totalorder %s4044_s24, %s5702_s1 }
  0x4b   : > { %p3421_p9 = scmp.ne.s32.totalorder %s4044_s24, %s3420_s18  ;;  %p3427_p3 = scmp.lt.u32.totalorder %s3425_s13, %s3420_s18 }
  0x4c   : > { %p3429_p2 = scmp.lt.u32.totalorder %s3420_s18, %s4044_s24 }
  0x4d   : > { %p3423_p12 = pnand %p3422_p10, %p3421_p9  ;;  %p3428_p5 = por %p3427_p3, %p3426_p0 }
  0x4f   : > { %p3424_p13 = pneg %p3423_p12  ;;  %p3430_p1 = por %p3429_p2, %p3428_p5 }
  0x51   : > { %p3431_p7 = pnand %p3430_p1, %p3424_p13 }
  0x53   : > { %3434 = shalt.err (!%p3431_p7)
}
  0x54   : > { %s3435_s8 = scalar_lea.vmem %s4039_s15, 1024  ;;  %s3780_s9 = smov [#allocation7]  }
  0x55   : > { %p3436_p9 = scmp.ne.s32.totalorder %s4039_s15, %s3435_s8  ;;  %s3440_s22 = sshll.u32 %s3780_s9, 4  ;;  %s3441_s22 = int_to_ptr.vmem [resolvable:$false] %s3440_s22 }
  0x56   : > { %s3442_s17 = scalar_lea.vmem %s3441_s22, 2048  ;;  %p3443_p4 = scmp.lt.s32.totalorder %s4039_s15, %s3441_s22 }
  0x57   : > { %p3438_p12 = pnand %p3436_p9, %p3422_p10  ;;  %p3444_p0 = scmp.lt.s32.totalorder %s3442_s17, %s3435_s8 }
  0x59   : > { %p3439_p6 = pneg %p3438_p12  ;;  %p3445_p3 = por %p3444_p0, %p3443_p4 }
  0x5b   : > { %p3446_p2 = pnand %p3445_p3, %p3439_p6 }
  0x5d   : > { %3449 = shalt.err (!%p3446_p2)
}
  0x5e   : > { %s3781_s18 = smov 320   ;;  %s5574_s6 = smov 64  }
  0x5f   : > { %s5575_s13 = smov 4   ;;  %p458_p1 = scmp.lt.s32.totalorder %s3778_s12, 11 }
  0x60   : > { %3053 = dma.hbm_to_vmem [thread:$0]  (!%p4034_p8), %s4044_s24, 1024, %s4039_s15, %s4047_s4, %s3781_s18, %s5574_s6, %s5575_s13  }
  0x61   : > { %p5703_p4 = scmp.ge.s32.totalorder %s3778_s12, 1  ;;  %p52_p6 = scmp.lt.s32.totalorder %s3770_s30, 3 }
  0x62   : > { %p54_p7 = scmp.lt.s32.totalorder %s5921_s29, 3  ;;  %s61_s3 = sadd.s32 1, %s3758_s27 }
  0x63   : > { %p4080_p5 = pnand %p5703_p4, %p458_p1  ;;  %p68_p10 = scmp.ne.s32.totalorder %s3758_s27, %s3754_s26 }
  0x64   : > { %s4090_s8 = scalar_select %p52_p6, %s3770_s30, 3 }
  0x65   : > { %s55_s16 = scalar_select %p54_p7, %s5921_s29, 3 }
  0x66   : > { %p5705_p13 = scmp.eq.s32.totalorder %s3778_s12, 0  ;;  %p74_p8 = scmp.ne.s32.totalorder %s3754_s26, %s3750_s25 }
  0x67   : > { %s4102_s24 = ssub.s32 %s4090_s8, %s55_s16  ;;  %s362_s9 = sand.u32 1, %s3758_s27  }
  0x68   : > { %p4095_p9 = por %p5705_p13, %p68_p10  ;;  %s58_s22 = sor.u32 %s4102_s24, %s3982_s5 }
  0x69   : > { %p5707_p12 = scmp.eq.s32.totalorder %s3959_s10, 0  ;;  %p59_p3 = scmp.eq.s32.totalorder %s58_s22, 0 }
  0x6a   : > { %s2893_s18 = sshll.u32 %s362_s9, 6  ;;  %s2994_s13 = sshll.u32 %s3774_s11, 6 }
  0x6b   : > { %p4109_p0 = por %p5707_p12, %p74_p8  ;;  %s374_s25 = sadd.s32 %s2994_s13, %s4090_s8 }
  0x6c   : > { %s4115_s6 = scalar_select %p59_p3, %s3758_s27, %s61_s3  }
  0x6d   : > { %s5708_s17 = scalar_select %p4109_p0, 1, 0 }
  0x6e   : > { %s366_s1 = scalar_lea.vmem [#allocation4], %s2893_s18  ;;  %s2896_s16 = sshll.u32 %s374_s25, 6 }
  0x6f   : > { %s377_s29 = sshll.u32 %s366_s1, 4  ;;  %s5709_s0 = sld [smem:[#allocation96_spill]]  ;;  %s4119_s29 = int_to_ptr.vmem [resolvable:$true] %s377_s29 }
  0x70   : > { %p5710_p1 = scmp.lt.s32.totalorder %s3778_s12, 10  ;;  %s4134_s1 = scalar_lea.sflag [#allocation5], %s362_s9 }
  0x72   : > { %p4130_p4 = pnand %p5710_p1, %p4095_p9 }
  0x74   : > { %p3452_p7 = pneg %p4130_p4 }
  0x75   : > { %s4124_s5 = scalar_lea.hbm %s5709_s0, %s2896_s16  ;;  %s3455_s15 = scalar_lea.hbm %s5709_s0, 8192 }
  0x76   : > { %s3450_s13 = scalar_lea.hbm %s4124_s5, 1024  ;;  %p3456_p9 = scmp.lt.u32.totalorder %s4124_s5, %s5709_s0 }
  0x77   : > { %p3451_p6 = scmp.ne.s32.totalorder %s4124_s5, %s3450_s13  ;;  %p3457_p8 = scmp.lt.u32.totalorder %s3455_s15, %s3450_s13 }
  0x78   : > { %p3459_p3 = scmp.lt.u32.totalorder %s3450_s13, %s4124_s5 }
  0x79   : > { %p3453_p10 = pnand %p3452_p7, %p3451_p6  ;;  %p3458_p12 = por %p3457_p8, %p3456_p9 }
  0x7b   : > { %p3454_p13 = pneg %p3453_p10  ;;  %p3460_p1 = por %p3459_p3, %p3458_p12 }
  0x7d   : > { %p3461_p2 = pnand %p3460_p1, %p3454_p13 }
  0x7f   : > { %3464 = shalt.err (!%p3461_p2)
}
  0x80   : > { %s3465_s9 = scalar_lea.vmem %s4119_s29, 1024  ;;  %s3784_s25 = smov [#allocation4]  }
  0x81   : > { %p3466_p6 = scmp.ne.s32.totalorder %s4119_s29, %s3465_s9  ;;  %s3470_s16 = sshll.u32 %s3784_s25, 4  ;;  %s3471_s16 = int_to_ptr.vmem [resolvable:$false] %s3470_s16 }
  0x82   : > { %s3472_s14 = scalar_lea.vmem %s3471_s16, 2048  ;;  %p3473_p0 = scmp.lt.s32.totalorder %s4119_s29, %s3471_s16 }
  0x83   : > { %p3468_p10 = pnand %p3466_p6, %p3452_p7  ;;  %p3474_p9 = scmp.lt.s32.totalorder %s3472_s14, %s3465_s9 }
  0x85   : > { %p3469_p11 = pneg %p3468_p10  ;;  %p3475_p8 = por %p3474_p9, %p3473_p0 }
  0x87   : > { %p3476_p12 = pnand %p3475_p8, %p3469_p11 }
  0x89   : > { %3479 = shalt.err (!%p3476_p12)
}
  0x8a   : > { %s3785_s13 = smov 256   ;;  %s5712_s30 = smov 4  }
  0x8b   : > { %s5713_s15 = smov 64   ;;  %s123_s22 = sadd.s32 1, %s3734_s21 }
  0x8c   : > { %3050 = dma.hbm_to_vmem [thread:$0]  (!%p4130_p4), %s4124_s5, 1024, %s4119_s29, %s4134_s1, %s3785_s13, %s5713_s15, %s5712_s30  }
  0x8d   : > { %p130_p11 = scmp.ne.s32.totalorder %s3734_s21, %s3730_s20  ;;  %p5714_p0 = scmp.eq.s32.totalorder %s4102_s24, 0 }
  0x8e   : > { %p5715_p2 = scmp.eq.s32.totalorder %s3778_s12, 0  ;;  %p136_p13 = scmp.ne.s32.totalorder %s3730_s20, %s3726_s19 }
  0x8f   : > { %s4170_s3 = scalar_select %p5714_p0, %s3734_s21, %s123_s22  }
  0x90   : > { %p132_p7 = por %p130_p11, %p5715_p2  ;;  %s414_s18 = sand.u32 1, %s3734_s21  }
  0x91   : > { %s2996_s9 = sshll.u32 %s4090_s8, 11  ;;  %p5716_p3 = scmp.eq.s32.totalorder %s3959_s10, 0 }
  0x92   : > { %s2901_s16 = sshll.u32 %s414_s18, 7  ;;  %s5718_s2 = sld [smem:[#allocation98_spill]] }
  0x93   : > { %p4180_p1 = por %p136_p13, %p5716_p3  ;;  %s416_s24 = scalar_lea.vmem [#allocation9], %s2901_s16 }
  0x94   : > { %s426_s5 = sshll.u32 %s416_s24, 4  ;;  %p5719_p4 = scmp.lt.s32.totalorder %s3778_s12, 10  ;;  %s4195_s5 = int_to_ptr.vmem [resolvable:$true] %s426_s5 }
  0x95   : > { %s5717_s25 = scalar_select %p4180_p1, 1, 0 }
  0x96   : > { %p4191_p6 = pnand %p5719_p4, %p132_p7 }
  0x98   : > { %s4187_s29 = scalar_lea.hbm %s5718_s2, %s2996_s9  ;;  %p3482_p9 = pneg %p4191_p6 }
  0x99   : > { %s3480_s8 = scalar_lea.hbm %s4187_s29, 2048  ;;  %s3485_s13 = scalar_lea.hbm %s5718_s2, 8192 }
  0x9a   : > { %p3481_p10 = scmp.ne.s32.totalorder %s4187_s29, %s3480_s8  ;;  %p3486_p11 = scmp.lt.u32.totalorder %s4187_s29, %s5718_s2 }
  0x9b   : > { %p3487_p0 = scmp.lt.u32.totalorder %s3485_s13, %s3480_s8  ;;  %p3489_p7 = scmp.lt.u32.totalorder %s3480_s8, %s4187_s29 }
  0x9c   : > { %p3483_p8 = pnand %p3482_p9, %p3481_p10 }
  0x9d   : > { %p3488_p2 = por %p3487_p0, %p3486_p11 }
  0x9e   : > { %p3484_p12 = pneg %p3483_p8 }
  0x9f   : > { %p3490_p13 = por %p3489_p7, %p3488_p2 }
  0xa1   : > { %p3491_p3 = pnand %p3490_p13, %p3484_p12 }
  0xa3   : > { %3494 = shalt.err (!%p3491_p3)
}
  0xa4   : > { %s3495_s22 = scalar_lea.vmem %s4195_s5, 2048  ;;  %s3786_s18 = smov [#allocation9]  }
  0xa5   : > { %p3496_p4 = scmp.ne.s32.totalorder %s4195_s5, %s3495_s22  ;;  %s3500_s9 = sshll.u32 %s3786_s18, 4  ;;  %s3501_s9 = int_to_ptr.vmem [resolvable:$false] %s3500_s9 }
  0xa6   : > { %s3502_s16 = scalar_lea.vmem %s3501_s9, 4096  ;;  %p3503_p1 = scmp.lt.s32.totalorder %s4195_s5, %s3501_s9 }
  0xa7   : > { %p3498_p10 = pnand %p3496_p4, %p3482_p9  ;;  %p3504_p11 = scmp.lt.s32.totalorder %s3502_s16, %s3495_s22 }
  0xa9   : > { %p3499_p8 = pneg %p3498_p10  ;;  %p3505_p0 = por %p3504_p11, %p3503_p1 }
  0xab   : > { %p3506_p2 = pnand %p3505_p0, %p3499_p8 }
  0xad   : > { %3509 = shalt.err (!%p3506_p2)
}
  0xae   : > { %s3787_s14 = smov 128   ;;  %s5721_s24 = sld [smem:[#allocation26_spill]] }
  0xaf   : > { %s5722_s8 = sld [smem:[#allocation25_spill]]  ;;  %s5723_s0 = sld [smem:[#allocation24_spill]] }
  0xb0   : > { %s3788_s1 = smov 8   ;;  %p151_p1 = scmp.eq.s32.totalorder %s3991_s28, 0 }
  0xb1   : > { %3056 = dma.hbm_to_vmem [thread:$0]  (!%p4191_p6), %s4187_s29, 2048, %s4195_s5, %s4047_s4, %s3787_s14, %s3787_s14, %s3788_s1  }
  0xb2   : > { %p5724_p7 = scmp.eq.s32.totalorder %s3778_s12, 0  ;;  %p5725_p3 = scmp.eq.s32.totalorder %s3959_s10, 0 }
  0xb3   : > { %s2998_s18 = sshll.u32 %s3971_s7, 11  ;;  %s5727_s2 = sld [smem:[#allocation99_spill]] }
  0xb4   : > { %s153_s13 = sadd.s32 1, %s5721_s24  ;;  %s436_s22 = sand.u32 1, %s5721_s24  }
  0xb5   : > { %p160_p9 = scmp.ne.s32.totalorder %s5721_s24, %s5722_s8  ;;  %p166_p12 = scmp.ne.s32.totalorder %s5722_s8, %s5723_s0 }
  0xb6   : > { %s4233_s30 = scalar_select %p151_p1, %s5721_s24, %s153_s13  }
  0xb7   : > { %p162_p13 = por %p160_p9, %p5724_p7  ;;  %p4239_p4 = por %p166_p12, %p5725_p3 }
  0xb8   : > { %s2905_s19 = sshll.u32 %s436_s22, 7  ;;  %p5728_p6 = scmp.lt.s32.totalorder %s3778_s12, 10 }
  0xb9   : > { %s5726_s15 = scalar_select %p4239_p4, 1, 0 }
  0xba   : > { %s4248_s4 = scalar_lea.hbm %s5727_s2, %s2998_s18  ;;  %s440_s28 = scalar_lea.vmem [#allocation10], %s2905_s19 }
  0xbb   : > { %s450_s29 = sshll.u32 %s440_s28, 4  ;;  %p4252_p10 = pnand %p5728_p6, %p162_p13  ;;  %s4256_s29 = int_to_ptr.vmem [resolvable:$true] %s450_s29 }
  0xbc   : > { %s4258_s7 = scalar_lea.sflag [#allocation11], %s436_s22  ;;  %s3510_s24 = scalar_lea.hbm %s4248_s4, 2048 }
  0xbd   : > { %p3511_p8 = scmp.ne.s32.totalorder %s4248_s4, %s3510_s24  ;;  %p3512_p11 = pneg %p4252_p10 }
  0xbe   : > { %s3515_s13 = scalar_lea.hbm %s5727_s2, 10240  ;;  %p3516_p1 = scmp.lt.u32.totalorder %s4248_s4, %s5727_s2 }
  0xbf   : > { %p3513_p0 = pnand %p3512_p11, %p3511_p8  ;;  %p3517_p9 = scmp.lt.u32.totalorder %s3515_s13, %s3510_s24 }
  0xc0   : > { %p3519_p7 = scmp.lt.u32.totalorder %s3510_s24, %s4248_s4 }
  0xc1   : > { %p3514_p2 = pneg %p3513_p0  ;;  %p3518_p12 = por %p3517_p9, %p3516_p1 }
  0xc3   : > { %p3520_p13 = por %p3519_p7, %p3518_p12 }
  0xc5   : > { %p3521_p3 = pnand %p3520_p13, %p3514_p2 }
  0xc7   : > { %3524 = shalt.err (!%p3521_p3)
}
  0xc8   : > { %s3525_s22 = scalar_lea.vmem %s4256_s29, 2048  ;;  %s3789_s9 = smov [#allocation10]  }
  0xc9   : > { %p3526_p6 = scmp.ne.s32.totalorder %s4256_s29, %s3525_s22  ;;  %s3530_s16 = sshll.u32 %s3789_s9, 4  ;;  %s3531_s16 = int_to_ptr.vmem [resolvable:$false] %s3530_s16 }
  0xca   : > { %s3532_s28 = scalar_lea.vmem %s3531_s16, 4096  ;;  %p3533_p4 = scmp.lt.s32.totalorder %s4256_s29, %s3531_s16 }
  0xcb   : > { %p3528_p8 = pnand %p3526_p6, %p3512_p11  ;;  %p3534_p1 = scmp.lt.s32.totalorder %s3532_s28, %s3525_s22 }
  0xcd   : > { %p3529_p0 = pneg %p3528_p8  ;;  %p3535_p9 = por %p3534_p1, %p3533_p4 }
  0xcf   : > { %p3536_p12 = pnand %p3535_p9, %p3529_p0 }
  0xd1   : > { %3539 = shalt.err (!%p3536_p12)
}
  0xd2   : > { %3059 = dma.hbm_to_vmem [thread:$0]  (!%p4252_p10), %s4248_s4, 2048, %s4256_s29, %s4258_s7, %s3787_s14, %s3787_s14, %s3788_s1  }
  0xd3   : > { %462 = sbr.rel (%p4080_p5) target bundleno = 1514 (0x5ea), region = 56  ;;  %s464_s24 = sand.u32 (!%p4080_p5), 1, %s3754_s26  }
  0xd4   : > { %s2910_s8 = sshll.u32 (!%p4080_p5), %s464_s24, 6  ;;  %s465_s0 = scalar_lea.sflag (!%p4080_p5), [#allocation5], %s464_s24 }
  0xd5   : > { %s4292_s13 = scalar_lea.vmem (!%p4080_p5), [#allocation4], %s2910_s8  ;;  %p5730_p4 = scmp.ne.s32.totalorder (!%p4080_p5), %s5708_s17, 0 }
  0xda   : > { %3677 = dma.done.wait (%p5730_p4), %s465_s0, 1024  }
  0xdb   : > { %3679 = vsyncadd (%p5730_p4), %s465_s0, 4294966272  ;;  %s5731_s5 = sld [smem:[#allocation27_spill]]  ;;  %s5732_s18 = sld [smem:[#allocation34_spill]] }
  0xdc   : > { %s473_s19 = sand.u32 1, %s3959_s10  }
  0xdd   : > { %s474_s23 = scalar_lea.sflag [#allocation8], %s473_s19 }
  0xe1   : > { %s475_s14 = sand.u32 1, %s5731_s5   ;;  %p5733_p5 = scmp.ne.s32.totalorder %s5732_s18, 0 }
  0xe2   : > { %s2911_s1 = sshll.u32 %s475_s14, 6 }
  0xe3   : > { %s4300_s4 = scalar_lea.vmem [#allocation7], %s2911_s1 }
  0xe4   : > { %3681 = dma.done.wait (%p5733_p5), %s474_s23, 1024  }
  0xe5   : > { %3683 = vsyncadd (%p5733_p5), %s474_s23, 4294966272  ;;  %s484_s29 = sand.u32 1, %s3730_s20   ;;  %p5734_p10 = scmp.ne.s32.totalorder %s5717_s25, 0 }
  0xe6   : > { %s2912_s7 = sshll.u32 %s484_s29, 7 }
  0xe7   : > { %s4307_s17 = scalar_lea.vmem [#allocation9], %s2912_s7 }
  0xe8   : > { %3685 = dma.done.wait (%p5734_p10), %s474_s23, 2048  }
  0xe9   : > { %3687 = vsyncadd (%p5734_p10), %s474_s23, 4294965248  ;;  %s5735_s10 = sld [smem:[#allocation25_spill]]  ;;  %p5736_p11 = scmp.ne.s32.totalorder %s5726_s15, 0 }
  0xef   : > { %s491_s22 = sand.u32 1, %s5735_s10  }
  0xf0   : > { %s2913_s9 = sshll.u32 %s491_s22, 7  ;;  %s492_s16 = scalar_lea.sflag [#allocation11], %s491_s22 }
  0xf1   : > { %s4314_s28 = scalar_lea.vmem [#allocation10], %s2913_s9 }
  0xf2   : > { %3689 = dma.done.wait (%p5736_p11), %s492_s16, 2048  }
  0xf3   : > { %3691 = vsyncadd (%p5736_p11), %s492_s16, 4294965248  ;;  %s5737_s24 = sld [smem:[#allocation22_spill]]  ;;  %s5738_s19 = sld [smem:[#allocation29_spill]] }
  0xf9   : > { %s4321_s8 = sand.u32 1, %s5737_s24   ;;  %p2916_p2 = scmp.ne.s32.totalorder %s5738_s19, 0 }
  0xfa   : > { %s2914_s0 = sshll.u32 %s4321_s8, 8  ;;  %s2915_s25 = sshll.u32 %s4321_s8, 7  ;;  %v573_v0 = vlaneseq (!%p2916_p2) }
  0xfb   : > { %s4325_s5 = scalar_lea.vmem [#allocation12], %s2914_s0  ;;  %s4327_s18 = scalar_lea.vmem [#allocation13], %s2915_s25 }
  0xfc   : > { %570 = sbr.rel (%p2916_p2) target bundleno = 293 (0x125), region = 76  ;;  %v574_v1 = vshrl.u32 (!%p2916_p2), %v573_v0, 7  ;;  %s5739_s15 = sld [smem:[#allocation100_spill]] (!%p2916_p2) }
  0xfd   : > { %s5740_s7 = sld [smem:[#allocation101_spill]] (!%p2916_p2) }
  0xfe   : > { %v575_v4 = vsub.s32 (!%p2916_p2), 0, %v574_v1  ;;  %v579_v5 = vsub.s32 (!%p2916_p2), 1, %v574_v1 }
 0x102   : > { %v571_v2 = vld [vmem:[%s5739_s15] sm:$0x3] (!%p2916_p2) }
 0x103   : > { %v615_v3 = vld [vmem:[%s5740_s7] sm:$0x3]  ;;  %v576_v6 = vrot.slane %v571_v2, %v575_v4  ;;  %v580_v7 = vrot.slane %v571_v2, %v579_v5 }
 0x104   : > { %v620_v8 = vrot.slane %v615_v3, %v575_v4  ;;  %v4336_v9 = vrot.slane %v615_v3, %v579_v5 }
 0x105   : > { %583 = vst [vmem:[#allocation2] sm:$0xff] %v576_v6  ;;  %585 = vst [vmem:[#allocation2 + $0x10] sm:$0xff] %v576_v6 }
 0x106   : > { %587 = vst [vmem:[#allocation2 + $0x20] sm:$0xff] %v576_v6  ;;  %589 = vst [vmem:[#allocation2 + $0x30] sm:$0xff] %v576_v6 }
 0x107   : > { %591 = vst [vmem:[#allocation2 + $0x40] sm:$0xff] %v576_v6  ;;  %593 = vst [vmem:[#allocation2 + $0x50] sm:$0xff] %v576_v6 }
 0x108   : > { %595 = vst [vmem:[#allocation2 + $0x60] sm:$0xff] %v576_v6  ;;  %597 = vst [vmem:[#allocation2 + $0x70] sm:$0xff] %v576_v6 }
 0x109   : > { %599 = vst [vmem:[#allocation2 + $0x80] sm:$0xff] %v576_v6  ;;  %601 = vst [vmem:[#allocation2 + $0x90] sm:$0xff] %v576_v6 }
 0x10a   : > { %603 = vst [vmem:[#allocation2 + $0xa0] sm:$0xff] %v576_v6  ;;  %605 = vst [vmem:[#allocation2 + $0xb0] sm:$0xff] %v576_v6 }
 0x10b   : > { %607 = vst [vmem:[#allocation2 + $0xc0] sm:$0xff] %v576_v6  ;;  %609 = vst [vmem:[#allocation2 + $0xd0] sm:$0xff] %v576_v6 }
 0x10c   : > { %611 = vst [vmem:[#allocation2 + $0xe0] sm:$0xff] %v576_v6  ;;  %613 = vst [vmem:[#allocation2 + $0xf0] sm:$0xff] %v576_v6 }
 0x10d   : > { %584 = vst [vmem:[#allocation2 + $0x8] sm:$0xff] %v580_v7  ;;  %586 = vst [vmem:[#allocation2 + $0x18] sm:$0xff] %v580_v7 }
 0x10e   : > { %588 = vst [vmem:[#allocation2 + $0x28] sm:$0xff] %v580_v7  ;;  %590 = vst [vmem:[#allocation2 + $0x38] sm:$0xff] %v580_v7 }
 0x10f   : > { %592 = vst [vmem:[#allocation2 + $0x48] sm:$0xff] %v580_v7  ;;  %594 = vst [vmem:[#allocation2 + $0x58] sm:$0xff] %v580_v7 }
 0x110   : > { %596 = vst [vmem:[#allocation2 + $0x68] sm:$0xff] %v580_v7  ;;  %598 = vst [vmem:[#allocation2 + $0x78] sm:$0xff] %v580_v7 }
 0x111   : > { %600 = vst [vmem:[#allocation2 + $0x88] sm:$0xff] %v580_v7  ;;  %602 = vst [vmem:[#allocation2 + $0x98] sm:$0xff] %v580_v7 }
 0x112   : > { %604 = vst [vmem:[#allocation2 + $0xa8] sm:$0xff] %v580_v7  ;;  %606 = vst [vmem:[#allocation2 + $0xb8] sm:$0xff] %v580_v7 }
 0x113   : > { %608 = vst [vmem:[#allocation2 + $0xc8] sm:$0xff] %v580_v7  ;;  %610 = vst [vmem:[#allocation2 + $0xd8] sm:$0xff] %v580_v7 }
 0x114   : > { %612 = vst [vmem:[#allocation2 + $0xe8] sm:$0xff] %v580_v7  ;;  %614 = vst [vmem:[#allocation2 + $0xf8] sm:$0xff] %v580_v7 }
 0x115   : > { %627 = vst [vmem:[#allocation3] sm:$0xff] %v620_v8  ;;  %629 = vst [vmem:[#allocation3 + $0x10] sm:$0xff] %v620_v8 }
 0x116   : > { %631 = vst [vmem:[#allocation3 + $0x20] sm:$0xff] %v620_v8  ;;  %633 = vst [vmem:[#allocation3 + $0x30] sm:$0xff] %v620_v8 }
 0x117   : > { %635 = vst [vmem:[#allocation3 + $0x40] sm:$0xff] %v620_v8  ;;  %637 = vst [vmem:[#allocation3 + $0x50] sm:$0xff] %v620_v8 }
 0x118   : > { %639 = vst [vmem:[#allocation3 + $0x60] sm:$0xff] %v620_v8  ;;  %641 = vst [vmem:[#allocation3 + $0x70] sm:$0xff] %v620_v8 }
 0x119   : > { %643 = vst [vmem:[#allocation3 + $0x80] sm:$0xff] %v620_v8  ;;  %645 = vst [vmem:[#allocation3 + $0x90] sm:$0xff] %v620_v8 }
 0x11a   : > { %647 = vst [vmem:[#allocation3 + $0xa0] sm:$0xff] %v620_v8  ;;  %649 = vst [vmem:[#allocation3 + $0xb0] sm:$0xff] %v620_v8 }
 0x11b   : > { %651 = vst [vmem:[#allocation3 + $0xc0] sm:$0xff] %v620_v8  ;;  %653 = vst [vmem:[#allocation3 + $0xd0] sm:$0xff] %v620_v8 }
 0x11c   : > { %655 = vst [vmem:[#allocation3 + $0xe0] sm:$0xff] %v620_v8  ;;  %657 = vst [vmem:[#allocation3 + $0xf0] sm:$0xff] %v620_v8 }
 0x11d   : > { %628 = vst [vmem:[#allocation3 + $0x8] sm:$0xff] %v4336_v9  ;;  %630 = vst [vmem:[#allocation3 + $0x18] sm:$0xff] %v4336_v9 }
 0x11e   : > { %632 = vst [vmem:[#allocation3 + $0x28] sm:$0xff] %v4336_v9  ;;  %634 = vst [vmem:[#allocation3 + $0x38] sm:$0xff] %v4336_v9 }
 0x11f   : > { %636 = vst [vmem:[#allocation3 + $0x48] sm:$0xff] %v4336_v9  ;;  %638 = vst [vmem:[#allocation3 + $0x58] sm:$0xff] %v4336_v9 }
 0x120   : > { %640 = vst [vmem:[#allocation3 + $0x68] sm:$0xff] %v4336_v9  ;;  %642 = vst [vmem:[#allocation3 + $0x78] sm:$0xff] %v4336_v9 }
 0x121   : > { %644 = vst [vmem:[#allocation3 + $0x88] sm:$0xff] %v4336_v9  ;;  %646 = vst [vmem:[#allocation3 + $0x98] sm:$0xff] %v4336_v9 }
 0x122   : > { %648 = vst [vmem:[#allocation3 + $0xa8] sm:$0xff] %v4336_v9  ;;  %650 = vst [vmem:[#allocation3 + $0xb8] sm:$0xff] %v4336_v9 }
 0x123   : > { %652 = vst [vmem:[#allocation3 + $0xc8] sm:$0xff] %v4336_v9  ;;  %654 = vst [vmem:[#allocation3 + $0xd8] sm:$0xff] %v4336_v9 }
 0x124   : > { %656 = vst [vmem:[#allocation3 + $0xe8] sm:$0xff] %v4336_v9  ;;  %658 = vst [vmem:[#allocation3 + $0xf8] sm:$0xff] %v4336_v9 }
 0x125 PF: > { %s5741_s10 = sld [smem:[#allocation29_spill]] }
 0x12b   : > { %p2917_p7 = scmp.ge.s32.totalorder %s5741_s10, 4 }
 0x12c   : > { %v3246_v10 = vld [vmem:[%s4307_s17 + $0x4] ss:$8 sps:$4 sm:$0xff] (!%p2917_p7)   ;;  %v3248_v11 = vld [vmem:[%s4307_s17] ss:$8 sps:$4 sm:$0xff] (!%p2917_p7)   ;;  %v3790_v12 = vmov (!%p2917_p7), 0   ;;  %v3274_v31 = vld [vmem:[%s4292_s13 + $0x10] sm:$0xff] (!%p2917_p7)  }
 0x12d   : > { %662 = sbr.rel (%p2917_p7) target bundleno = 576 (0x240), region = 80  ;;  %887 = vmatprep.mubr.bf16.mxu0 (!%p2917_p7), %v3790_v12  ;;  %927 = vmatprep.mubr.bf16.mxu1 (!%p2917_p7), %v3790_v12  ;;  %v3249_v13 = vld [vmem:[%s4307_s17 + $0x14] ss:$8 sps:$4 sm:$0xff] (!%p2917_p7)   ;;  %v3251_v14 = vld [vmem:[%s4307_s17 + $0x10] ss:$8 sps:$4 sm:$0xff] (!%p2917_p7)   ;;  %v3270_v27 = vld [vmem:[%s4292_s13] sm:$0xff] (!%p2917_p7)  }
 0x12e   : > { %855 = vmatprep.subr.bf16.mxu0 (!%p2917_p7), %v3246_v10  ;;  %3002 = vmatprep.subr.bf16.mxu1 (!%p2917_p7), %v3246_v10  ;;  %v3252_v15 = vld [vmem:[%s4307_s17 + $0x24] ss:$8 sps:$4 sm:$0xff] (!%p2917_p7)   ;;  %v3254_v16 = vld [vmem:[%s4307_s17 + $0x20] ss:$8 sps:$4 sm:$0xff] (!%p2917_p7)   ;;  %v3255_v17 = vld [vmem:[%s4307_s17 + $0x34] ss:$8 sps:$4 sm:$0xff] (!%p2917_p7)  }
 0x12f   : > { %856 = vmatpush1.bf16.msra.mxu0 (!%p2917_p7), %v3248_v11  ;;  %3010 = vmatpush1.bf16.msra.mxu1 (!%p2917_p7), %v3248_v11  ;;  %v3257_v18 = vld [vmem:[%s4307_s17 + $0x30] ss:$8 sps:$4 sm:$0xff] (!%p2917_p7)   ;;  %v3258_v19 = vld [vmem:[%s4307_s17 + $0x44] ss:$8 sps:$4 sm:$0xff] (!%p2917_p7)   ;;  %v3260_v20 = vld [vmem:[%s4307_s17 + $0x40] ss:$8 sps:$4 sm:$0xff] (!%p2917_p7)  }
 0x130   : > { %857 = vmatprep.subr.bf16.mxu0 (!%p2917_p7), %v3249_v13  ;;  %3003 = vmatprep.subr.bf16.mxu1 (!%p2917_p7), %v3249_v13  ;;  %v3261_v21 = vld [vmem:[%s4307_s17 + $0x54] ss:$8 sps:$4 sm:$0xff] (!%p2917_p7)   ;;  %v3263_v22 = vld [vmem:[%s4307_s17 + $0x50] ss:$8 sps:$4 sm:$0xff] (!%p2917_p7)   ;;  %v3264_v23 = vld [vmem:[%s4307_s17 + $0x64] ss:$8 sps:$4 sm:$0xff] (!%p2917_p7)  }
 0x131   : > { %v3266_v24 = vld [vmem:[%s4307_s17 + $0x60] ss:$8 sps:$4 sm:$0xff] (!%p2917_p7)   ;;  %v3267_v25 = vld [vmem:[%s4307_s17 + $0x74] ss:$8 sps:$4 sm:$0xff] (!%p2917_p7)   ;;  %v3269_v26 = vld [vmem:[%s4307_s17 + $0x70] ss:$8 sps:$4 sm:$0xff] (!%p2917_p7)  }
 0x132   : > { %v3271_v28 = vld [vmem:[%s4292_s13 + $0x20] sm:$0xff] (!%p2917_p7)   ;;  %v3272_v29 = vld [vmem:[%s4292_s13 + $0x8] sm:$0xff] (!%p2917_p7)   ;;  %v3275_v32 = vld [vmem:[%s4292_s13 + $0x30] sm:$0xff] (!%p2917_p7)  }
 0x133   : > { %858 = vmatpush1.bf16.msra.mxu0 (!%p2917_p7), %v3251_v14  ;;  %3011 = vmatpush1.bf16.msra.mxu1 (!%p2917_p7), %v3251_v14  ;;  %v3273_v30 = vld [vmem:[%s4292_s13 + $0x28] sm:$0xff] (!%p2917_p7)   ;;  %v3276_v33 = vld [vmem:[%s4292_s13 + $0x18] sm:$0xff] (!%p2917_p7)   ;;  %v663_v35 = vld [vmem:[#allocation2] sm:$0xff] (!%p2917_p7) }
 0x134   : > { %859 = vmatprep.subr.bf16.mxu0 %v3252_v15  ;;  %3004 = vmatprep.subr.bf16.mxu1 %v3252_v15  ;;  %v3277_v34 = vld [vmem:[%s4292_s13 + $0x38] sm:$0xff]   ;;  %v679_v36 = vld [vmem:[#allocation2 + $0x80] sm:$0xff]  ;;  %v664_v37 = vld [vmem:[#allocation2 + $0x8] sm:$0xff] }
 0x135   : > { %v680_v38 = vld [vmem:[#allocation2 + $0x88] sm:$0xff]  ;;  %v665_v41 = vld [vmem:[#allocation2 + $0x10] sm:$0xff]  ;;  %v666_v47 = vld [vmem:[#allocation2 + $0x18] sm:$0xff] }
 0x136   : > { %v681_v42 = vld [vmem:[#allocation2 + $0x90] sm:$0xff]  ;;  %v682_v48 = vld [vmem:[#allocation2 + $0x98] sm:$0xff]  ;;  %v667_v59 = vld [vmem:[#allocation2 + $0x20] sm:$0xff] }
 0x137   : > { %860 = vmatpush1.bf16.msra.mxu0 %v3254_v16  ;;  %3012 = vmatpush1.bf16.msra.mxu1 %v3254_v16  ;;  %v683_v60 = vld [vmem:[#allocation2 + $0xa0] sm:$0xff]  ;;  %v668_v61 = vld [vmem:[#allocation2 + $0x28] sm:$0xff]  ;;  %v669_v1 = vld [vmem:[#allocation2 + $0x30] sm:$0xff] }
 0x138   : > { %861 = vmatprep.subr.bf16.mxu0 %v3255_v17  ;;  %3005 = vmatprep.subr.bf16.mxu1 %v3255_v17  ;;  %v684_v62 = vld [vmem:[#allocation2 + $0xa8] sm:$0xff]  ;;  %v685_v2 = vld [vmem:[#allocation2 + $0xb0] sm:$0xff]  ;;  %v670_v7 = vld [vmem:[#allocation2 + $0x38] sm:$0xff] }
 0x139   : > { %v686_v8 = vld [vmem:[#allocation2 + $0xb8] sm:$0xff] }
 0x13b   : > { %862 = vmatpush1.bf16.msra.mxu0 %v3257_v18  ;;  %3013 = vmatpush1.bf16.msra.mxu1 %v3257_v18 }
 0x13c   : > { %863 = vmatprep.subr.bf16.mxu0 %v3258_v19  ;;  %3006 = vmatprep.subr.bf16.mxu1 %v3258_v19  ;;  %v671_v19 = vld [vmem:[#allocation2 + $0x40] sm:$0xff] }
 0x13f   : > { %864 = vmatpush1.bf16.msra.mxu0 %v3260_v20  ;;  %3014 = vmatpush1.bf16.msra.mxu1 %v3260_v20  ;;  %v687_v20 = vld [vmem:[#allocation2 + $0xc0] sm:$0xff] }
 0x140   : > { %865 = vmatprep.subr.bf16.mxu0 %v3261_v21  ;;  %3007 = vmatprep.subr.bf16.mxu1 %v3261_v21  ;;  %v672_v21 = vld [vmem:[#allocation2 + $0x48] sm:$0xff] }
 0x143   : > { %866 = vmatpush1.bf16.msra.mxu0 %v3263_v22  ;;  %3015 = vmatpush1.bf16.msra.mxu1 %v3263_v22  ;;  %v688_v22 = vld [vmem:[#allocation2 + $0xc8] sm:$0xff] }
 0x144   : > { %867 = vmatprep.subr.bf16.mxu0 %v3264_v23  ;;  %3008 = vmatprep.subr.bf16.mxu1 %v3264_v23 }
 0x147   : > { %868 = vmatpush1.bf16.msra.mxu0 %v3266_v24  ;;  %3016 = vmatpush1.bf16.msra.mxu1 %v3266_v24 }
 0x148   : > { %869 = vmatprep.subr.bf16.mxu0 %v3267_v25  ;;  %3009 = vmatprep.subr.bf16.mxu1 %v3267_v25  ;;  %v673_v25 = vld [vmem:[#allocation2 + $0x50] sm:$0xff] }
 0x14b   : > { %870 = vmatpush1.bf16.msra.mxu0 %v3269_v26  ;;  %3017 = vmatpush1.bf16.msra.mxu1 %v3269_v26  ;;  %v689_v26 = vld [vmem:[#allocation2 + $0xd0] sm:$0xff] }
 0x14e   : > { %888 = vmatmul.mubr.bf16.vlgmr.msra.gmra.mrb[0].mxu0 %v3270_v27  ;;  %928 = vmatmul.mubr.bf16.vlgmr.msra.gmra.mrb[0].mxu1 %v3271_v28 }
 0x14f   : > { %897 = vmatprep.mubr.bf16.mxu0 %v3790_v12  ;;  %937 = vmatprep.mubr.bf16.mxu1 %v3790_v12 }
 0x156   : > { %898 = vmatmul.mubr.bf16.gmra.mrb[4].mxu0 %v3272_v29  ;;  %938 = vmatmul.mubr.bf16.gmra.mrb[4].mxu1 %v3273_v30 }
 0x157   : > { %907 = vmatprep.mubr.bf16.mxu0 %v3790_v12  ;;  %947 = vmatprep.mubr.bf16.mxu1 %v3790_v12 }
 0x15e   : > { %908 = vmatmul.mubr.bf16.gmra.mrb[8].mxu0 %v3274_v31  ;;  %948 = vmatmul.mubr.bf16.gmra.mrb[8].mxu1 %v3275_v32  ;;  %v674_v31 = vld [vmem:[#allocation2 + $0x58] sm:$0xff] }
 0x15f   : > { %917 = vmatprep.mubr.bf16.mxu0 %v3790_v12  ;;  %957 = vmatprep.mubr.bf16.mxu1 %v3790_v12  ;;  %v690_v32 = vld [vmem:[#allocation2 + $0xd8] sm:$0xff] }
 0x166   : > { %918 = vmatmul.mubr.bf16.gmra.mrb[12].mxu0 %v3276_v33  ;;  %958 = vmatmul.mubr.bf16.gmra.mrb[12].mxu1 %v3277_v34 }
 0x221   : > { %v889_v39 = vpop.f32.mrb[0].mxu0  ;;  %v929_v40 = vpop.f32.mrb[0].mxu1 }
 0x222   : > { %v968_v43 = vadd.f32 %v889_v39, %v663_v35  ;;  %v984_v44 = vadd.f32 %v929_v40, %v679_v36  ;;  %v891_v45 = vpop.f32.mrb[1].mxu0  ;;  %v931_v46 = vpop.f32.mrb[1].mxu1 }
 0x223   : > { %v969_v49 = vadd.f32 %v891_v45, %v664_v37  ;;  %v985_v50 = vadd.f32 %v931_v46, %v680_v38  ;;  %v893_v51 = vpop.f32.mrb[2].mxu0  ;;  %v933_v52 = vpop.f32.mrb[2].mxu1  ;;  %v676_v45 = vld [vmem:[#allocation2 + $0x68] sm:$0xff] }
 0x224   : > { %1000 = vst [vmem:[#allocation2] sm:$0xff] %v968_v43  ;;  %1016 = vst [vmem:[#allocation2 + $0x80] sm:$0xff] %v984_v44  ;;  %v970_v53 = vadd.f32 %v893_v51, %v665_v41  ;;  %v986_v54 = vadd.f32 %v933_v52, %v681_v42  ;;  %v895_v55 = vpop.f32.mrb[3].mxu0  ;;  %v935_v56 = vpop.f32.mrb[3].mxu1  ;;  %v675_v43 = vld [vmem:[#allocation2 + $0x60] sm:$0xff]  ;;  %v692_v46 = vld [vmem:[#allocation2 + $0xe8] sm:$0xff] }
 0x225   : > { %1001 = vst [vmem:[#allocation2 + $0x8] sm:$0xff] %v969_v49  ;;  %1017 = vst [vmem:[#allocation2 + $0x88] sm:$0xff] %v985_v50  ;;  %v971_v57 = vadd.f32 %v895_v55, %v666_v47  ;;  %v987_v58 = vadd.f32 %v935_v56, %v682_v48  ;;  %v691_v44 = vld [vmem:[#allocation2 + $0xe0] sm:$0xff]  ;;  %v677_v49 = vld [vmem:[#allocation2 + $0x70] sm:$0xff] }
 0x226   : > { %1002 = vst [vmem:[#allocation2 + $0x10] sm:$0xff] %v970_v53  ;;  %1018 = vst [vmem:[#allocation2 + $0x90] sm:$0xff] %v986_v54  ;;  %v693_v50 = vld [vmem:[#allocation2 + $0xf0] sm:$0xff]  ;;  %v678_v55 = vld [vmem:[#allocation2 + $0x78] sm:$0xff] }
 0x227   : > { %1003 = vst [vmem:[#allocation2 + $0x18] sm:$0xff] %v971_v57  ;;  %1019 = vst [vmem:[#allocation2 + $0x98] sm:$0xff] %v987_v58  ;;  %v694_v56 = vld [vmem:[#allocation2 + $0xf8] sm:$0xff] }
 0x229   : > { %v899_v63 = vpop.f32.mrb[4].mxu0  ;;  %v939_v0 = vpop.f32.mrb[4].mxu1 }
 0x22a   : > { %v972_v3 = vadd.f32 %v899_v63, %v667_v59  ;;  %v988_v4 = vadd.f32 %v939_v0, %v683_v60  ;;  %v901_v5 = vpop.f32.mrb[5].mxu0  ;;  %v941_v6 = vpop.f32.mrb[5].mxu1 }
 0x22b   : > { %v973_v9 = vadd.f32 %v901_v5, %v668_v61  ;;  %v989_v10 = vadd.f32 %v941_v6, %v684_v62  ;;  %v903_v11 = vpop.f32.mrb[6].mxu0  ;;  %v943_v12 = vpop.f32.mrb[6].mxu1 }
 0x22c   : > { %1004 = vst [vmem:[#allocation2 + $0x20] sm:$0xff] %v972_v3  ;;  %1020 = vst [vmem:[#allocation2 + $0xa0] sm:$0xff] %v988_v4  ;;  %v974_v13 = vadd.f32 %v903_v11, %v669_v1  ;;  %v990_v14 = vadd.f32 %v943_v12, %v685_v2  ;;  %v905_v15 = vpop.f32.mrb[7].mxu0  ;;  %v945_v16 = vpop.f32.mrb[7].mxu1 }
 0x22d   : > { %1005 = vst [vmem:[#allocation2 + $0x28] sm:$0xff] %v973_v9  ;;  %1021 = vst [vmem:[#allocation2 + $0xa8] sm:$0xff] %v989_v10  ;;  %v975_v17 = vadd.f32 %v905_v15, %v670_v7  ;;  %v991_v18 = vadd.f32 %v945_v16, %v686_v8 }
 0x22e   : > { %1006 = vst [vmem:[#allocation2 + $0x30] sm:$0xff] %v974_v13  ;;  %1022 = vst [vmem:[#allocation2 + $0xb0] sm:$0xff] %v990_v14 }
 0x22f   : > { %1007 = vst [vmem:[#allocation2 + $0x38] sm:$0xff] %v975_v17  ;;  %1023 = vst [vmem:[#allocation2 + $0xb8] sm:$0xff] %v991_v18 }
 0x231   : > { %v909_v23 = vpop.f32.mrb[8].mxu0  ;;  %v949_v24 = vpop.f32.mrb[8].mxu1 }
 0x232   : > { %v976_v27 = vadd.f32 %v909_v23, %v671_v19  ;;  %v992_v28 = vadd.f32 %v949_v24, %v687_v20  ;;  %v911_v29 = vpop.f32.mrb[9].mxu0  ;;  %v951_v30 = vpop.f32.mrb[9].mxu1 }
 0x233   : > { %v977_v33 = vadd.f32 %v911_v29, %v672_v21  ;;  %v993_v34 = vadd.f32 %v951_v30, %v688_v22  ;;  %v913_v35 = vpop.f32.mrb[10].mxu0  ;;  %v953_v36 = vpop.f32.mrb[10].mxu1 }
 0x234   : > { %1008 = vst [vmem:[#allocation2 + $0x40] sm:$0xff] %v976_v27  ;;  %1024 = vst [vmem:[#allocation2 + $0xc0] sm:$0xff] %v992_v28  ;;  %v978_v37 = vadd.f32 %v913_v35, %v673_v25  ;;  %v994_v38 = vadd.f32 %v953_v36, %v689_v26  ;;  %v915_v39 = vpop.f32.mrb[11].mxu0  ;;  %v955_v40 = vpop.f32.mrb[11].mxu1 }
 0x235   : > { %1009 = vst [vmem:[#allocation2 + $0x48] sm:$0xff] %v977_v33  ;;  %1025 = vst [vmem:[#allocation2 + $0xc8] sm:$0xff] %v993_v34  ;;  %v979_v41 = vadd.f32 %v915_v39, %v674_v31  ;;  %v995_v42 = vadd.f32 %v955_v40, %v690_v32 }
 0x236   : > { %1010 = vst [vmem:[#allocation2 + $0x50] sm:$0xff] %v978_v37  ;;  %1026 = vst [vmem:[#allocation2 + $0xd0] sm:$0xff] %v994_v38 }
 0x237   : > { %1011 = vst [vmem:[#allocation2 + $0x58] sm:$0xff] %v979_v41  ;;  %1027 = vst [vmem:[#allocation2 + $0xd8] sm:$0xff] %v995_v42 }
 0x239   : > { %v919_v47 = vpop.f32.mrb[12].mxu0  ;;  %v959_v48 = vpop.f32.mrb[12].mxu1 }
 0x23a   : > { %v980_v51 = vadd.f32 %v919_v47, %v675_v43  ;;  %v996_v52 = vadd.f32 %v959_v48, %v691_v44  ;;  %v921_v53 = vpop.f32.mrb[13].mxu0  ;;  %v961_v54 = vpop.f32.mrb[13].mxu1 }
 0x23b   : > { %v981_v57 = vadd.f32 %v921_v53, %v676_v45  ;;  %v997_v58 = vadd.f32 %v961_v54, %v692_v46  ;;  %v923_v59 = vpop.f32.mrb[14].mxu0  ;;  %v963_v60 = vpop.f32.mrb[14].mxu1 }
 0x23c   : > { %1012 = vst [vmem:[#allocation2 + $0x60] sm:$0xff] %v980_v51  ;;  %1028 = vst [vmem:[#allocation2 + $0xe0] sm:$0xff] %v996_v52  ;;  %v982_v61 = vadd.f32 %v923_v59, %v677_v49  ;;  %v998_v62 = vadd.f32 %v963_v60, %v693_v50  ;;  %v925_v63 = vpop.f32.mrb[15].mxu0  ;;  %v965_v0 = vpop.f32.mrb[15].mxu1 }
 0x23d   : > { %1013 = vst [vmem:[#allocation2 + $0x68] sm:$0xff] %v981_v57  ;;  %1029 = vst [vmem:[#allocation2 + $0xe8] sm:$0xff] %v997_v58  ;;  %v983_v1 = vadd.f32 %v925_v63, %v678_v55  ;;  %v999_v2 = vadd.f32 %v965_v0, %v694_v56 }
 0x23e   : > { %1014 = vst [vmem:[#allocation2 + $0x70] sm:$0xff] %v982_v61  ;;  %1030 = vst [vmem:[#allocation2 + $0xf0] sm:$0xff] %v998_v62 }
 0x23f   : > { %1015 = vst [vmem:[#allocation2 + $0x78] sm:$0xff] %v983_v1  ;;  %1031 = vst [vmem:[#allocation2 + $0xf8] sm:$0xff] %v999_v2 }
 0x240 PF: > { %s5742_s13 = sld [smem:[#allocation29_spill]] }
 0x246   : > { %p2942_p13 = scmp.ge.s32.totalorder %s5742_s13, 5 }
 0x247   : > { %v3278_v3 = vld [vmem:[%s4314_s28 + $0x4] ss:$8 sps:$4 sm:$0xff] (!%p2942_p13)   ;;  %v3280_v4 = vld [vmem:[%s4314_s28] ss:$8 sps:$4 sm:$0xff] (!%p2942_p13)   ;;  %v3791_v5 = vmov (!%p2942_p13), 0   ;;  %v3306_v24 = vld [vmem:[%s4300_s4 + $0x10] sm:$0xff] (!%p2942_p13)  }
 0x248   : > { %1035 = sbr.rel (%p2942_p13) target bundleno = 859 (0x35b), region = 84  ;;  %1260 = vmatprep.mubr.bf16.mxu0 (!%p2942_p13), %v3791_v5  ;;  %1300 = vmatprep.mubr.bf16.mxu1 (!%p2942_p13), %v3791_v5  ;;  %v3281_v6 = vld [vmem:[%s4314_s28 + $0x14] ss:$8 sps:$4 sm:$0xff] (!%p2942_p13)   ;;  %v3283_v7 = vld [vmem:[%s4314_s28 + $0x10] ss:$8 sps:$4 sm:$0xff] (!%p2942_p13)   ;;  %v3302_v20 = vld [vmem:[%s4300_s4] sm:$0xff] (!%p2942_p13)  }
 0x249   : > { %1228 = vmatprep.subr.bf16.mxu0 (!%p2942_p13), %v3278_v3  ;;  %3018 = vmatprep.subr.bf16.mxu1 (!%p2942_p13), %v3278_v3  ;;  %v3284_v8 = vld [vmem:[%s4314_s28 + $0x24] ss:$8 sps:$4 sm:$0xff] (!%p2942_p13)   ;;  %v3286_v9 = vld [vmem:[%s4314_s28 + $0x20] ss:$8 sps:$4 sm:$0xff] (!%p2942_p13)   ;;  %v3287_v10 = vld [vmem:[%s4314_s28 + $0x34] ss:$8 sps:$4 sm:$0xff] (!%p2942_p13)  }
 0x24a   : > { %1229 = vmatpush1.bf16.msra.mxu0 (!%p2942_p13), %v3280_v4  ;;  %3026 = vmatpush1.bf16.msra.mxu1 (!%p2942_p13), %v3280_v4  ;;  %v3289_v11 = vld [vmem:[%s4314_s28 + $0x30] ss:$8 sps:$4 sm:$0xff] (!%p2942_p13)   ;;  %v3290_v12 = vld [vmem:[%s4314_s28 + $0x44] ss:$8 sps:$4 sm:$0xff] (!%p2942_p13)   ;;  %v3292_v13 = vld [vmem:[%s4314_s28 + $0x40] ss:$8 sps:$4 sm:$0xff] (!%p2942_p13)  }
 0x24b   : > { %1230 = vmatprep.subr.bf16.mxu0 (!%p2942_p13), %v3281_v6  ;;  %3019 = vmatprep.subr.bf16.mxu1 (!%p2942_p13), %v3281_v6  ;;  %v3293_v14 = vld [vmem:[%s4314_s28 + $0x54] ss:$8 sps:$4 sm:$0xff] (!%p2942_p13)   ;;  %v3295_v15 = vld [vmem:[%s4314_s28 + $0x50] ss:$8 sps:$4 sm:$0xff] (!%p2942_p13)   ;;  %v3296_v16 = vld [vmem:[%s4314_s28 + $0x64] ss:$8 sps:$4 sm:$0xff] (!%p2942_p13)  }
 0x24c   : > { %v3298_v17 = vld [vmem:[%s4314_s28 + $0x60] ss:$8 sps:$4 sm:$0xff] (!%p2942_p13)   ;;  %v3299_v18 = vld [vmem:[%s4314_s28 + $0x74] ss:$8 sps:$4 sm:$0xff] (!%p2942_p13)   ;;  %v3301_v19 = vld [vmem:[%s4314_s28 + $0x70] ss:$8 sps:$4 sm:$0xff] (!%p2942_p13)  }
 0x24d   : > { %v3303_v21 = vld [vmem:[%s4300_s4 + $0x20] sm:$0xff] (!%p2942_p13)   ;;  %v3304_v22 = vld [vmem:[%s4300_s4 + $0x8] sm:$0xff] (!%p2942_p13)   ;;  %v3307_v25 = vld [vmem:[%s4300_s4 + $0x30] sm:$0xff] (!%p2942_p13)  }
 0x24e   : > { %1231 = vmatpush1.bf16.msra.mxu0 (!%p2942_p13), %v3283_v7  ;;  %3027 = vmatpush1.bf16.msra.mxu1 (!%p2942_p13), %v3283_v7  ;;  %v3305_v23 = vld [vmem:[%s4300_s4 + $0x28] sm:$0xff] (!%p2942_p13)   ;;  %v3308_v26 = vld [vmem:[%s4300_s4 + $0x18] sm:$0xff] (!%p2942_p13)   ;;  %v1036_v28 = vld [vmem:[#allocation3] sm:$0xff] (!%p2942_p13) }
 0x24f   : > { %1232 = vmatprep.subr.bf16.mxu0 %v3284_v8  ;;  %3020 = vmatprep.subr.bf16.mxu1 %v3284_v8  ;;  %v3309_v27 = vld [vmem:[%s4300_s4 + $0x38] sm:$0xff]   ;;  %v1052_v29 = vld [vmem:[#allocation3 + $0x80] sm:$0xff]  ;;  %v1037_v30 = vld [vmem:[#allocation3 + $0x8] sm:$0xff] }
 0x250   : > { %v1053_v31 = vld [vmem:[#allocation3 + $0x88] sm:$0xff]  ;;  %v1038_v34 = vld [vmem:[#allocation3 + $0x10] sm:$0xff]  ;;  %v1039_v40 = vld [vmem:[#allocation3 + $0x18] sm:$0xff] }
 0x251   : > { %v1054_v35 = vld [vmem:[#allocation3 + $0x90] sm:$0xff]  ;;  %v1055_v41 = vld [vmem:[#allocation3 + $0x98] sm:$0xff]  ;;  %v1040_v52 = vld [vmem:[#allocation3 + $0x20] sm:$0xff] }
 0x252   : > { %1233 = vmatpush1.bf16.msra.mxu0 %v3286_v9  ;;  %3028 = vmatpush1.bf16.msra.mxu1 %v3286_v9  ;;  %v1056_v53 = vld [vmem:[#allocation3 + $0xa0] sm:$0xff]  ;;  %v1041_v54 = vld [vmem:[#allocation3 + $0x28] sm:$0xff]  ;;  %v1042_v58 = vld [vmem:[#allocation3 + $0x30] sm:$0xff] }
 0x253   : > { %1234 = vmatprep.subr.bf16.mxu0 %v3287_v10  ;;  %3021 = vmatprep.subr.bf16.mxu1 %v3287_v10  ;;  %v1057_v55 = vld [vmem:[#allocation3 + $0xa8] sm:$0xff]  ;;  %v1058_v59 = vld [vmem:[#allocation3 + $0xb0] sm:$0xff]  ;;  %v1043_v0 = vld [vmem:[#allocation3 + $0x38] sm:$0xff] }
 0x254   : > { %v1059_v1 = vld [vmem:[#allocation3 + $0xb8] sm:$0xff] }
 0x256   : > { %1235 = vmatpush1.bf16.msra.mxu0 %v3289_v11  ;;  %3029 = vmatpush1.bf16.msra.mxu1 %v3289_v11 }
 0x257   : > { %1236 = vmatprep.subr.bf16.mxu0 %v3290_v12  ;;  %3022 = vmatprep.subr.bf16.mxu1 %v3290_v12  ;;  %v1044_v12 = vld [vmem:[#allocation3 + $0x40] sm:$0xff] }
 0x25a   : > { %1237 = vmatpush1.bf16.msra.mxu0 %v3292_v13  ;;  %3030 = vmatpush1.bf16.msra.mxu1 %v3292_v13  ;;  %v1060_v13 = vld [vmem:[#allocation3 + $0xc0] sm:$0xff] }
 0x25b   : > { %1238 = vmatprep.subr.bf16.mxu0 %v3293_v14  ;;  %3023 = vmatprep.subr.bf16.mxu1 %v3293_v14  ;;  %v1045_v14 = vld [vmem:[#allocation3 + $0x48] sm:$0xff] }
 0x25e   : > { %1239 = vmatpush1.bf16.msra.mxu0 %v3295_v15  ;;  %3031 = vmatpush1.bf16.msra.mxu1 %v3295_v15  ;;  %v1061_v15 = vld [vmem:[#allocation3 + $0xc8] sm:$0xff] }
 0x25f   : > { %1240 = vmatprep.subr.bf16.mxu0 %v3296_v16  ;;  %3024 = vmatprep.subr.bf16.mxu1 %v3296_v16 }
 0x262   : > { %1241 = vmatpush1.bf16.msra.mxu0 %v3298_v17  ;;  %3032 = vmatpush1.bf16.msra.mxu1 %v3298_v17 }
 0x263   : > { %1242 = vmatprep.subr.bf16.mxu0 %v3299_v18  ;;  %3025 = vmatprep.subr.bf16.mxu1 %v3299_v18  ;;  %v1046_v18 = vld [vmem:[#allocation3 + $0x50] sm:$0xff] }
 0x266   : > { %1243 = vmatpush1.bf16.msra.mxu0 %v3301_v19  ;;  %3033 = vmatpush1.bf16.msra.mxu1 %v3301_v19  ;;  %v1062_v19 = vld [vmem:[#allocation3 + $0xd0] sm:$0xff] }
 0x269   : > { %1261 = vmatmul.mubr.bf16.vlgmr.msra.gmra.mrb[0].mxu0 %v3302_v20  ;;  %1301 = vmatmul.mubr.bf16.vlgmr.msra.gmra.mrb[0].mxu1 %v3303_v21 }
 0x26a   : > { %1270 = vmatprep.mubr.bf16.mxu0 %v3791_v5  ;;  %1310 = vmatprep.mubr.bf16.mxu1 %v3791_v5 }
 0x271   : > { %1271 = vmatmul.mubr.bf16.gmra.mrb[4].mxu0 %v3304_v22  ;;  %1311 = vmatmul.mubr.bf16.gmra.mrb[4].mxu1 %v3305_v23 }
 0x272   : > { %1280 = vmatprep.mubr.bf16.mxu0 %v3791_v5  ;;  %1320 = vmatprep.mubr.bf16.mxu1 %v3791_v5 }
 0x279   : > { %1281 = vmatmul.mubr.bf16.gmra.mrb[8].mxu0 %v3306_v24  ;;  %1321 = vmatmul.mubr.bf16.gmra.mrb[8].mxu1 %v3307_v25  ;;  %v1047_v24 = vld [vmem:[#allocation3 + $0x58] sm:$0xff] }
 0x27a   : > { %1290 = vmatprep.mubr.bf16.mxu0 %v3791_v5  ;;  %1330 = vmatprep.mubr.bf16.mxu1 %v3791_v5  ;;  %v1063_v25 = vld [vmem:[#allocation3 + $0xd8] sm:$0xff] }
 0x281   : > { %1291 = vmatmul.mubr.bf16.gmra.mrb[12].mxu0 %v3308_v26  ;;  %1331 = vmatmul.mubr.bf16.gmra.mrb[12].mxu1 %v3309_v27 }
 0x33c   : > { %v1262_v32 = vpop.f32.mrb[0].mxu0  ;;  %v1302_v33 = vpop.f32.mrb[0].mxu1 }
 0x33d   : > { %v1341_v36 = vadd.f32 %v1262_v32, %v1036_v28  ;;  %v1357_v37 = vadd.f32 %v1302_v33, %v1052_v29  ;;  %v1264_v38 = vpop.f32.mrb[1].mxu0  ;;  %v1304_v39 = vpop.f32.mrb[1].mxu1 }
 0x33e   : > { %v1342_v42 = vadd.f32 %v1264_v38, %v1037_v30  ;;  %v1358_v43 = vadd.f32 %v1304_v39, %v1053_v31  ;;  %v1266_v44 = vpop.f32.mrb[2].mxu0  ;;  %v1306_v45 = vpop.f32.mrb[2].mxu1  ;;  %v1049_v38 = vld [vmem:[#allocation3 + $0x68] sm:$0xff] }
 0x33f   : > { %1373 = vst [vmem:[#allocation3] sm:$0xff] %v1341_v36  ;;  %1389 = vst [vmem:[#allocation3 + $0x80] sm:$0xff] %v1357_v37  ;;  %v1343_v46 = vadd.f32 %v1266_v44, %v1038_v34  ;;  %v1359_v47 = vadd.f32 %v1306_v45, %v1054_v35  ;;  %v1268_v48 = vpop.f32.mrb[3].mxu0  ;;  %v1308_v49 = vpop.f32.mrb[3].mxu1  ;;  %v1048_v36 = vld [vmem:[#allocation3 + $0x60] sm:$0xff]  ;;  %v1065_v39 = vld [vmem:[#allocation3 + $0xe8] sm:$0xff] }
 0x340   : > { %1374 = vst [vmem:[#allocation3 + $0x8] sm:$0xff] %v1342_v42  ;;  %1390 = vst [vmem:[#allocation3 + $0x88] sm:$0xff] %v1358_v43  ;;  %v1344_v50 = vadd.f32 %v1268_v48, %v1039_v40  ;;  %v1360_v51 = vadd.f32 %v1308_v49, %v1055_v41  ;;  %v1064_v37 = vld [vmem:[#allocation3 + $0xe0] sm:$0xff]  ;;  %v1050_v42 = vld [vmem:[#allocation3 + $0x70] sm:$0xff] }
 0x341   : > { %1375 = vst [vmem:[#allocation3 + $0x10] sm:$0xff] %v1343_v46  ;;  %1391 = vst [vmem:[#allocation3 + $0x90] sm:$0xff] %v1359_v47  ;;  %v1066_v43 = vld [vmem:[#allocation3 + $0xf0] sm:$0xff]  ;;  %v1051_v48 = vld [vmem:[#allocation3 + $0x78] sm:$0xff] }
 0x342   : > { %1376 = vst [vmem:[#allocation3 + $0x18] sm:$0xff] %v1344_v50  ;;  %1392 = vst [vmem:[#allocation3 + $0x98] sm:$0xff] %v1360_v51  ;;  %v1067_v49 = vld [vmem:[#allocation3 + $0xf8] sm:$0xff] }
 0x344   : > { %v1272_v56 = vpop.f32.mrb[4].mxu0  ;;  %v1312_v57 = vpop.f32.mrb[4].mxu1 }
 0x345   : > { %v1345_v60 = vadd.f32 %v1272_v56, %v1040_v52  ;;  %v1361_v61 = vadd.f32 %v1312_v57, %v1056_v53  ;;  %v1274_v62 = vpop.f32.mrb[5].mxu0  ;;  %v1314_v63 = vpop.f32.mrb[5].mxu1 }
 0x346   : > { %v1346_v2 = vadd.f32 %v1274_v62, %v1041_v54  ;;  %v1362_v3 = vadd.f32 %v1314_v63, %v1057_v55  ;;  %v1276_v4 = vpop.f32.mrb[6].mxu0  ;;  %v1316_v5 = vpop.f32.mrb[6].mxu1 }
 0x347   : > { %1377 = vst [vmem:[#allocation3 + $0x20] sm:$0xff] %v1345_v60  ;;  %1393 = vst [vmem:[#allocation3 + $0xa0] sm:$0xff] %v1361_v61  ;;  %v1347_v6 = vadd.f32 %v1276_v4, %v1042_v58  ;;  %v1363_v7 = vadd.f32 %v1316_v5, %v1058_v59  ;;  %v1278_v8 = vpop.f32.mrb[7].mxu0  ;;  %v1318_v9 = vpop.f32.mrb[7].mxu1 }
 0x348   : > { %1378 = vst [vmem:[#allocation3 + $0x28] sm:$0xff] %v1346_v2  ;;  %1394 = vst [vmem:[#allocation3 + $0xa8] sm:$0xff] %v1362_v3  ;;  %v1348_v10 = vadd.f32 %v1278_v8, %v1043_v0  ;;  %v1364_v11 = vadd.f32 %v1318_v9, %v1059_v1 }
 0x349   : > { %1379 = vst [vmem:[#allocation3 + $0x30] sm:$0xff] %v1347_v6  ;;  %1395 = vst [vmem:[#allocation3 + $0xb0] sm:$0xff] %v1363_v7 }
 0x34a   : > { %1380 = vst [vmem:[#allocation3 + $0x38] sm:$0xff] %v1348_v10  ;;  %1396 = vst [vmem:[#allocation3 + $0xb8] sm:$0xff] %v1364_v11 }
 0x34c   : > { %v1282_v16 = vpop.f32.mrb[8].mxu0  ;;  %v1322_v17 = vpop.f32.mrb[8].mxu1 }
 0x34d   : > { %v1349_v20 = vadd.f32 %v1282_v16, %v1044_v12  ;;  %v1365_v21 = vadd.f32 %v1322_v17, %v1060_v13  ;;  %v1284_v22 = vpop.f32.mrb[9].mxu0  ;;  %v1324_v23 = vpop.f32.mrb[9].mxu1 }
 0x34e   : > { %v1350_v26 = vadd.f32 %v1284_v22, %v1045_v14  ;;  %v1366_v27 = vadd.f32 %v1324_v23, %v1061_v15  ;;  %v1286_v28 = vpop.f32.mrb[10].mxu0  ;;  %v1326_v29 = vpop.f32.mrb[10].mxu1 }
 0x34f   : > { %1381 = vst [vmem:[#allocation3 + $0x40] sm:$0xff] %v1349_v20  ;;  %1397 = vst [vmem:[#allocation3 + $0xc0] sm:$0xff] %v1365_v21  ;;  %v1351_v30 = vadd.f32 %v1286_v28, %v1046_v18  ;;  %v1367_v31 = vadd.f32 %v1326_v29, %v1062_v19  ;;  %v1288_v32 = vpop.f32.mrb[11].mxu0  ;;  %v1328_v33 = vpop.f32.mrb[11].mxu1 }
 0x350   : > { %1382 = vst [vmem:[#allocation3 + $0x48] sm:$0xff] %v1350_v26  ;;  %1398 = vst [vmem:[#allocation3 + $0xc8] sm:$0xff] %v1366_v27  ;;  %v1352_v34 = vadd.f32 %v1288_v32, %v1047_v24  ;;  %v1368_v35 = vadd.f32 %v1328_v33, %v1063_v25 }
 0x351   : > { %1383 = vst [vmem:[#allocation3 + $0x50] sm:$0xff] %v1351_v30  ;;  %1399 = vst [vmem:[#allocation3 + $0xd0] sm:$0xff] %v1367_v31 }
 0x352   : > { %1384 = vst [vmem:[#allocation3 + $0x58] sm:$0xff] %v1352_v34  ;;  %1400 = vst [vmem:[#allocation3 + $0xd8] sm:$0xff] %v1368_v35 }
 0x354   : > { %v1292_v40 = vpop.f32.mrb[12].mxu0  ;;  %v1332_v41 = vpop.f32.mrb[12].mxu1 }
 0x355   : > { %v1353_v44 = vadd.f32 %v1292_v40, %v1048_v36  ;;  %v1369_v45 = vadd.f32 %v1332_v41, %v1064_v37  ;;  %v1294_v46 = vpop.f32.mrb[13].mxu0  ;;  %v1334_v47 = vpop.f32.mrb[13].mxu1 }
 0x356   : > { %v1354_v50 = vadd.f32 %v1294_v46, %v1049_v38  ;;  %v1370_v51 = vadd.f32 %v1334_v47, %v1065_v39  ;;  %v1296_v52 = vpop.f32.mrb[14].mxu0  ;;  %v1336_v53 = vpop.f32.mrb[14].mxu1 }
 0x357   : > { %1385 = vst [vmem:[#allocation3 + $0x60] sm:$0xff] %v1353_v44  ;;  %1401 = vst [vmem:[#allocation3 + $0xe0] sm:$0xff] %v1369_v45  ;;  %v1355_v54 = vadd.f32 %v1296_v52, %v1050_v42  ;;  %v1371_v55 = vadd.f32 %v1336_v53, %v1066_v43  ;;  %v1298_v56 = vpop.f32.mrb[15].mxu0  ;;  %v1338_v57 = vpop.f32.mrb[15].mxu1 }
 0x358   : > { %1386 = vst [vmem:[#allocation3 + $0x68] sm:$0xff] %v1354_v50  ;;  %1402 = vst [vmem:[#allocation3 + $0xe8] sm:$0xff] %v1370_v51  ;;  %v1356_v58 = vadd.f32 %v1298_v56, %v1051_v48  ;;  %v1372_v59 = vadd.f32 %v1338_v57, %v1067_v49 }
 0x359   : > { %1387 = vst [vmem:[#allocation3 + $0x70] sm:$0xff] %v1355_v54  ;;  %1403 = vst [vmem:[#allocation3 + $0xf0] sm:$0xff] %v1371_v55 }
 0x35a   : > { %1388 = vst [vmem:[#allocation3 + $0x78] sm:$0xff] %v1356_v58  ;;  %1404 = vst [vmem:[#allocation3 + $0xf8] sm:$0xff] %v1372_v59 }
 0x35b PF: > { %s5743_s4 = sld [smem:[#allocation29_spill]] }
 0x361   : > { %p2967_p3 = scmp.ne.s32.totalorder %s5743_s4, 4 }
 0x363   : > { %1408 = sbr.rel (%p2967_p3) target bundleno = 1460 (0x5b4), region = 88 }
 0x36a   : > { %v1413_v60 = vld [vmem:[#allocation2 + $0x20] sm:$0xff]  ;;  %v1414_v61 = vld [vmem:[#allocation2 + $0x28] sm:$0xff]  ;;  %v5583_v63 = vlaneseq  ;;  %s5746_s9 = sld [smem:[#allocation102_spill]]  ;;  %s5748_s24 = sld [smem:[#allocation103_spill]]  ;;  %v1415_v16 = vld [vmem:[#allocation2 + $0x30] sm:$0xff] }
 0x36b   : > { %v1477_v62 = vld [vmem:[#allocation3 + $0x20] sm:$0xff]  ;;  %v4421_v0 = vmax.f32 %v1413_v60, 0.0  ;;  %v4423_v1 = vmax.f32 %v1414_v61, 0.0  ;;  %v1478_v2 = vld [vmem:[#allocation3 + $0x28] sm:$0xff]  ;;  %v1416_v21 = vld [vmem:[#allocation2 + $0x38] sm:$0xff]  ;;  %v4452_v23 = vmax.f32 %v1415_v16, 0.0 }
 0x36c   : > { %v4428_v4 = vmax.f32 %v1477_v62, 0.0  ;;  %v4436_v7 = vshrl.u32 %v5583_v63, 7  ;;  %v1409_v8 = vld [vmem:[#allocation2] sm:$0xff]  ;;  %v1410_v9 = vld [vmem:[#allocation2 + $0x8] sm:$0xff]  ;;  %v4438_v10 = vmax.f32 %v1478_v2, 0.0  ;;  %v1479_v22 = vld [vmem:[#allocation3 + $0x30] sm:$0xff] }
 0x36d   : > { %5744 = vst [vmem:[#allocation39_spill] sm:$0xff] %v4421_v0  ;;  %5745 = vst [vmem:[#allocation40_spill] sm:$0xff] %v4423_v1  ;;  %v4442_v12 = vmax.f32 %v1409_v8, 0.0  ;;  %v4444_v13 = vmax.f32 %v1410_v9, 0.0  ;;  %v1473_v14 = vld [vmem:[#allocation3] sm:$0xff]  ;;  %v1474_v15 = vld [vmem:[#allocation3 + $0x8] sm:$0xff] }
 0x36e   : > { %5747 = vst [vmem:[#allocation41_spill] sm:$0xff] %v4428_v4  ;;  %5749 = vst [vmem:[#allocation42_spill] sm:$0xff] %v4438_v10  ;;  %v1545_v17 = vsub.s32 0, %v4436_v7  ;;  %v1549_v18 = vsub.s32 2, %v4436_v7  ;;  %v4448_v19 = vmax.f32 %v1473_v14, 0.0  ;;  %v4450_v20 = vmax.f32 %v1474_v15, 0.0 }
 0x36f   : > { %v4454_v24 = vmax.f32 %v1416_v21, 0.0  ;;  %v1480_v25 = vld [vmem:[#allocation3 + $0x38] sm:$0xff]  ;;  %v4456_v26 = vmax.f32 %v1479_v22, 0.0  ;;  %v1411_v27 = vld [vmem:[#allocation2 + $0x10] sm:$0xff]  ;;  %s5827_s19 = sld [smem:[#allocation104_spill]]  ;;  %s3792_s14 = smov 127  }
 0x370   : > { %v1537_v3 = vld [vmem:[%s5746_s9] sm:$0x3]  ;;  %5750 = vst [vmem:[#allocation43_spill] sm:$0xff] %v4448_v19  ;;  %5751 = vst [vmem:[#allocation44_spill] sm:$0xff] %v4450_v20  ;;  %v1412_v28 = vld [vmem:[#allocation2 + $0x18] sm:$0xff]  ;;  %v4462_v36 = vmax.f32 %v1480_v25, 0.0 }
 0x371   : > { %v4430_v5 = vunpack.c.l.bf16 %v1537_v3  ;;  %v1539_v6 = vld [vmem:[%s5748_s24] sm:$0x3]  ;;  %5752 = vst [vmem:[#allocation45_spill] sm:$0xff] %v4454_v24  ;;  %5753 = vst [vmem:[#allocation46_spill] sm:$0xff] %v4456_v26  ;;  %v1475_v33 = vld [vmem:[#allocation3 + $0x10] sm:$0xff]  ;;  %v4464_v37 = vmax.f32 %v1411_v27, 0.0 }
 0x372   : > { %v4440_v11 = vunpack.c.l.bf16 %v1539_v6  ;;  %v1476_v34 = vld [vmem:[#allocation3 + $0x18] sm:$0xff]  ;;  %v1419_v35 = vld [vmem:[#allocation2 + $0x50] sm:$0xff]  ;;  %5754 = vst [vmem:[#allocation47_spill] sm:$0xff] %v4462_v36  ;;  %v4466_v38 = vmax.f32 %v1412_v28, 0.0  ;;  %v4468_v39 = vmax.f32 %v1475_v33, 0.0  ;;  %v1418_v27 = vld [vmem:[#allocation2 + $0x48] sm:$0xff] }
 0x373   : > { %v1546_v29 = vrot.slane %v4430_v5, %v1545_v17  ;;  %v1550_v30 = vrot.slane %v4430_v5, %v1549_v18  ;;  %v1420_v40 = vld [vmem:[#allocation2 + $0x58] sm:$0xff]  ;;  %v1483_v41 = vld [vmem:[#allocation3 + $0x50] sm:$0xff]  ;;  %v4478_v46 = vmax.f32 %v1476_v34, 0.0  ;;  %v4480_v47 = vmax.f32 %v1419_v35, 0.0  ;;  %v1481_v28 = vld [vmem:[#allocation3 + $0x40] sm:$0xff]  ;;  %s3794_s1 = smov 1  }
 0x374   : > { %v1597_v31 = vrot.slane %v4440_v11, %v1545_v17  ;;  %v1601_v32 = vrot.slane %v4440_v11, %v1549_v18  ;;  %v4482_v48 = vmax.f32 %v1420_v40, 0.0  ;;  %v4484_v49 = vmax.f32 %v1483_v41, 0.0  ;;  %v1484_v8 = vld [vmem:[#allocation3 + $0x58] sm:$0xff]  ;;  %v1423_v34 = vld [vmem:[#allocation2 + $0x70] sm:$0xff] }
 0x375   : > { %v4470_v42 = vrot.slane %v1546_v29, %v1545_v17  ;;  %v4472_v43 = vrot.slane %v1550_v30, %v1545_v17  ;;  %5755 = vst [vmem:[#allocation48_spill] sm:$0xff] %v4480_v47  ;;  %v1482_v29 = vld [vmem:[#allocation3 + $0x48] sm:$0xff]  ;;  %v1495_v63 = vld [vmem:[#allocation3 + $0xb0] sm:$0xff] }
 0x376   : > { %v4474_v44 = vrot.slane %v1597_v31, %v1545_v17  ;;  %v4476_v45 = vrot.slane %v1601_v32, %v1545_v17  ;;  %5756 = vst [vmem:[#allocation49_spill] sm:$0xff] %v4482_v48  ;;  %5757 = vst [vmem:[#allocation50_spill] sm:$0xff] %v4484_v49  ;;  %v1417_v17 = vld [vmem:[#allocation2 + $0x40] sm:$0xff]  ;;  %v4518_v31 = vmax.f32 %v1484_v8, 0.0 }
 0x377   : > { %v1565_v50 = vmul.f32 %v4470_v42, %v4421_v0  ;;  %v1566_v51 = vmul.f32 %v4472_v43, %v4423_v1  ;;  %v1561_v54 = vmul.f32 %v4470_v42, %v4442_v12  ;;  %v1562_v55 = vmul.f32 %v4472_v43, %v4444_v13 }
 0x378   : > { %v1616_v52 = vmul.f32 %v4474_v44, %v4428_v4  ;;  %v1617_v53 = vmul.f32 %v4476_v45, %v4438_v10  ;;  %v1612_v56 = vmul.f32 %v4474_v44, %v4448_v19  ;;  %v1613_v57 = vmul.f32 %v4476_v45, %v4450_v20  ;;  %5758 = vst [vmem:[#allocation51_spill] sm:$0xff] %v4518_v31 }
 0x379   : > { %v1567_v60 = vmul.f32 %v4470_v42, %v4452_v23  ;;  %v1568_v61 = vmul.f32 %v4472_v43, %v4454_v24  ;;  %v1618_v3 = vmul.f32 %v4474_v44, %v4456_v26  ;;  %v1619_v6 = vmul.f32 %v4476_v45, %v4462_v36 }
 0x37a   : > { %v1648_v58 = vadd.f32 %v1616_v52, %v1565_v50  ;;  %v1649_v59 = vadd.f32 %v1617_v53, %v1566_v51  ;;  %v1644_v62 = vadd.f32 %v1612_v56, %v1561_v54  ;;  %v1645_v2 = vadd.f32 %v1613_v57, %v1562_v55  ;;  %v1424_v55 = vld [vmem:[#allocation2 + $0x78] sm:$0xff]  ;;  %v1487_v56 = vld [vmem:[#allocation3 + $0x70] sm:$0xff] }
 0x37b   : > { %v1563_v14 = vmul.f32 %v4470_v42, %v4464_v37  ;;  %v1564_v15 = vmul.f32 %v4472_v43, %v4466_v38  ;;  %v1614_v16 = vmul.f32 %v4474_v44, %v4468_v39  ;;  %v1650_v21 = vadd.f32 %v1618_v3, %v1567_v60  ;;  %v1488_v57 = vld [vmem:[#allocation3 + $0x78] sm:$0xff] }
 0x37c   : > { %v1682_v9 = vadd.f32 %v1649_v59, %v1648_v58  ;;  %v1676_v18 = vadd.f32 %v1645_v2, %v1644_v62  ;;  %v1651_v22 = vadd.f32 %v1619_v6, %v1568_v61  ;;  %v1615_v25 = vmul.f32 %v4476_v45, %v4478_v46  ;;  %v1421_v62 = vld [vmem:[#allocation2 + $0x60] sm:$0xff] }
 0x37d   : > { %v1646_v30 = vadd.f32 %v1614_v16, %v1563_v14  ;;  %v1571_v32 = vmul.f32 %v4470_v42, %v4480_v47  ;;  %v1572_v33 = vmul.f32 %v4472_v43, %v4482_v48  ;;  %v1622_v41 = vmul.f32 %v4474_v44, %v4484_v49 }
 0x37e   : > { %1683 = vadd.xlane.f32.xlu1 %v1682_v9  ;;  %1677 = vadd.xlane.f32.xlu0 %v1676_v18  ;;  %v1685_v35 = vadd.f32 %v1651_v22, %v1650_v21  ;;  %v1647_v40 = vadd.f32 %v1615_v25, %v1564_v15  ;;  %v4526_v50 = vmax.f32 %v1417_v17, 0.0  ;;  %v1623_v51 = vmul.f32 %v4476_v45, %v4518_v31  ;;  %v1422_v9 = vld [vmem:[#allocation2 + $0x68] sm:$0xff]  ;;  %v1485_v18 = vld [vmem:[#allocation3 + $0x60] sm:$0xff] }
 0x37f   : > { %v4530_v52 = vmax.f32 %v1418_v27, 0.0  ;;  %v4532_v53 = vmax.f32 %v1481_v28, 0.0  ;;  %v4534_v54 = vmax.f32 %v1482_v29, 0.0  ;;  %v1654_v59 = vadd.f32 %v1622_v41, %v1571_v32  ;;  %v1486_v21 = vld [vmem:[#allocation3 + $0x68] sm:$0xff]  ;;  %v1427_v29 = vld [vmem:[#allocation2 + $0x90] sm:$0xff] }
 0x380   : > { %5759 = vst [vmem:[#allocation52_spill] sm:$0xff] %v4526_v50  ;;  %v1679_v58 = vadd.f32 %v1647_v40, %v1646_v30  ;;  %v1569_v60 = vmul.f32 %v4470_v42, %v4526_v50  ;;  %v4538_v61 = vmax.f32 %v1423_v34, 0.0  ;;  %v1655_v2 = vadd.f32 %v1623_v51, %v1572_v33  ;;  %v1491_v40 = vld [vmem:[#allocation3 + $0x90] sm:$0xff] }
 0x381   : > { %5760 = vst [vmem:[#allocation53_spill] sm:$0xff] %v4530_v52  ;;  %5761 = vst [vmem:[#allocation54_spill] sm:$0xff] %v4532_v53  ;;  %v1570_v3 = vmul.f32 %v4472_v43, %v4530_v52  ;;  %v1620_v6 = vmul.f32 %v4474_v44, %v4532_v53  ;;  %v1621_v8 = vmul.f32 %v4476_v45, %v4534_v54  ;;  %v4546_v14 = vmax.f32 %v1424_v55, 0.0 }
 0x382   : > { %5762 = vst [vmem:[#allocation55_spill] sm:$0xff] %v4534_v54  ;;  %5763 = vst [vmem:[#allocation56_spill] sm:$0xff] %v4538_v61  ;;  %1686 = vadd.xlane.f32.xlu1 %v1685_v35  ;;  %1680 = vadd.xlane.f32.xlu0 %v1679_v58  ;;  %v4548_v15 = vmax.f32 %v1487_v56, 0.0  ;;  %v4550_v16 = vmax.f32 %v1488_v57, 0.0  ;;  %v1575_v17 = vmul.f32 %v4470_v42, %v4538_v61  ;;  %v4554_v28 = vmax.f32 %v1421_v62, 0.0  ;;  %v1428_v35 = vld [vmem:[#allocation2 + $0x98] sm:$0xff] }
 0x383   : > { %5764 = vst [vmem:[#allocation57_spill] sm:$0xff] %v4546_v14  ;;  %v1691_v22 = vadd.f32 %v1655_v2, %v1654_v59  ;;  %v1652_v25 = vadd.f32 %v1620_v6, %v1569_v60  ;;  %v1653_v27 = vadd.f32 %v1621_v8, %v1570_v3  ;;  %v1576_v30 = vmul.f32 %v4472_v43, %v4546_v14  ;;  %v1492_v57 = vld [vmem:[#allocation3 + $0x98] sm:$0xff]  ;;  %v1425_v58 = vld [vmem:[#allocation2 + $0x80] sm:$0xff] }
 0x384   : > { %5765 = vst [vmem:[#allocation58_spill] sm:$0xff] %v4548_v15  ;;  %5766 = vst [vmem:[#allocation59_spill] sm:$0xff] %v4550_v16  ;;  %v1626_v32 = vmul.f32 %v4474_v44, %v4548_v15  ;;  %v1627_v33 = vmul.f32 %v4476_v45, %v4550_v16  ;;  %v4562_v34 = vmax.f32 %v1422_v9, 0.0  ;;  %v4564_v51 = vmax.f32 %v1485_v18, 0.0  ;;  %v1426_v18 = vld [vmem:[#allocation2 + $0x88] sm:$0xff] }
 0x385   : > { %5767 = vst [vmem:[#allocation60_spill] sm:$0xff] %v4554_v28  ;;  %v1688_v41 = vadd.f32 %v1653_v27, %v1652_v25  ;;  %v4566_v55 = vmax.f32 %v1486_v21, 0.0  ;;  %v1573_v56 = vmul.f32 %v4470_v42, %v4554_v28  ;;  %v4572_v2 = vmax.f32 %v1427_v29, 0.0  ;;  %v1489_v21 = vld [vmem:[#allocation3 + $0x80] sm:$0xff] }
 0x386   : > { %5768 = vst [vmem:[#allocation61_spill] sm:$0xff] %v4562_v34  ;;  %1692 = vadd.xlane.f32.xlu1 %v1691_v22  ;;  %5769 = vst [vmem:[#allocation62_spill] sm:$0xff] %v4564_v51  ;;  %v1658_v59 = vadd.f32 %v1626_v32, %v1575_v17  ;;  %v1659_v60 = vadd.f32 %v1627_v33, %v1576_v30  ;;  %v1574_v62 = vmul.f32 %v4472_v43, %v4562_v34  ;;  %v1490_v17 = vld [vmem:[#allocation3 + $0x88] sm:$0xff]  ;;  %v1431_v30 = vld [vmem:[#allocation2 + $0xb0] sm:$0xff] }
 0x387   : > { %5770 = vst [vmem:[#allocation63_spill] sm:$0xff] %v4566_v55  ;;  %5771 = vst [vmem:[#allocation64_spill] sm:$0xff] %v4572_v2  ;;  %1689 = vadd.xlane.f32.xlu0 %v1688_v41  ;;  %v1624_v3 = vmul.f32 %v4474_v44, %v4564_v51  ;;  %v1625_v6 = vmul.f32 %v4476_v45, %v4566_v55  ;;  %v4578_v8 = vmax.f32 %v1428_v35, 0.0  ;;  %v4580_v9 = vmax.f32 %v1491_v40, 0.0 }
 0x388   : > { %v1697_v22 = vadd.f32 %v1659_v60, %v1658_v59  ;;  %v4582_v25 = vmax.f32 %v1492_v57, 0.0  ;;  %v1579_v27 = vmul.f32 %v4470_v42, %v4572_v2  ;;  %v4586_v29 = vmax.f32 %v1425_v58, 0.0  ;;  %v1432_v58 = vld [vmem:[#allocation2 + $0xb8] sm:$0xff] }
 0x389   : > { %5772 = vst [vmem:[#allocation65_spill] sm:$0xff] %v4578_v8  ;;  %5773 = vst [vmem:[#allocation66_spill] sm:$0xff] %v4580_v9  ;;  %v1656_v32 = vadd.f32 %v1624_v3, %v1573_v56  ;;  %v1657_v33 = vadd.f32 %v1625_v6, %v1574_v62  ;;  %v1580_v35 = vmul.f32 %v4472_v43, %v4578_v8  ;;  %v4594_v57 = vmax.f32 %v1426_v18, 0.0  ;;  %v1496_v56 = vld [vmem:[#allocation3 + $0xb8] sm:$0xff] }
 0x38a   : > { %5774 = vst [vmem:[#allocation67_spill] sm:$0xff] %v4582_v25  ;;  %5775 = vst [vmem:[#allocation68_spill] sm:$0xff] %v4586_v29  ;;  %v1630_v40 = vmul.f32 %v4474_v44, %v4580_v9  ;;  %1698 = vadd.xlane.f32.xlu1 %v1697_v22  ;;  %v1631_v41 = vmul.f32 %v4476_v45, %v4582_v25  ;;  %v4596_v59 = vmax.f32 %v1489_v21, 0.0  ;;  %v4598_v60 = vmax.f32 %v1490_v17, 0.0  ;;  %v1429_v22 = vld [vmem:[#allocation2 + $0xa0] sm:$0xff]  ;;  %v1430_v25 = vld [vmem:[#allocation2 + $0xa8] sm:$0xff] }
 0x38b   : > { %5776 = vst [vmem:[#allocation69_spill] sm:$0xff] %v4594_v57  ;;  %v1694_v62 = vadd.f32 %v1657_v33, %v1656_v32  ;;  %v1577_v6 = vmul.f32 %v4470_v42, %v4586_v29  ;;  %v4602_v8 = vmax.f32 %v1431_v30, 0.0  ;;  %v1578_v18 = vmul.f32 %v4472_v43, %v4594_v57  ;;  %v1435_v29 = vld [vmem:[#allocation2 + $0xd0] sm:$0xff] }
 0x38c   : > { %5777 = vst [vmem:[#allocation70_spill] sm:$0xff] %v4596_v59  ;;  %5778 = vst [vmem:[#allocation71_spill] sm:$0xff] %v4598_v60  ;;  %v1662_v3 = vadd.f32 %v1630_v40, %v1579_v27  ;;  %v1663_v9 = vadd.f32 %v1631_v41, %v1580_v35  ;;  %v1628_v21 = vmul.f32 %v4474_v44, %v4596_v59  ;;  %v4610_v32 = vmax.f32 %v1432_v58, 0.0  ;;  %v1493_v35 = vld [vmem:[#allocation3 + $0xa0] sm:$0xff]  ;;  %v1494_v40 = vld [vmem:[#allocation3 + $0xa8] sm:$0xff] }
 0x38d   : > { %5779 = vst [vmem:[#allocation72_spill] sm:$0xff] %v4602_v8  ;;  %v1629_v17 = vmul.f32 %v4476_v45, %v4598_v60  ;;  %1695 = vadd.xlane.f32.xlu0 %v1694_v62  ;;  %v4612_v27 = vmax.f32 %v1495_v63, 0.0  ;;  %v4614_v33 = vmax.f32 %v1496_v56, 0.0  ;;  %v1583_v30 = vmul.f32 %v4470_v42, %v4602_v8  ;;  %v1436_v8 = vld [vmem:[#allocation2 + $0xd8] sm:$0xff]  ;;  %v1499_v60 = vld [vmem:[#allocation3 + $0xd0] sm:$0xff] }
 0x38e   : > { %5780 = vst [vmem:[#allocation73_spill] sm:$0xff] %v4610_v32  ;;  %v1703_v41 = vadd.f32 %v1663_v9, %v1662_v3  ;;  %v1660_v2 = vadd.f32 %v1628_v21, %v1577_v6  ;;  %v4618_v59 = vmax.f32 %v1429_v22, 0.0  ;;  %v1584_v62 = vmul.f32 %v4472_v43, %v4610_v32  ;;  %v1433_v21 = vld [vmem:[#allocation2 + $0xc0] sm:$0xff] }
 0x38f   : > { %5781 = vst [vmem:[#allocation74_spill] sm:$0xff] %v4612_v27  ;;  %5782 = vst [vmem:[#allocation75_spill] sm:$0xff] %v4614_v33  ;;  %v1661_v57 = vadd.f32 %v1629_v17, %v1578_v18  ;;  %v1634_v63 = vmul.f32 %v4474_v44, %v4612_v27  ;;  %v1635_v58 = vmul.f32 %v4476_v45, %v4614_v33  ;;  %v4626_v56 = vmax.f32 %v1430_v25, 0.0  ;;  %v1500_v18 = vld [vmem:[#allocation3 + $0xd8] sm:$0xff]  ;;  %v1497_v32 = vld [vmem:[#allocation3 + $0xc0] sm:$0xff] }
 0x390   : > { %5783 = vst [vmem:[#allocation76_spill] sm:$0xff] %v4618_v59  ;;  %1704 = vadd.xlane.f32.xlu1 %v1703_v41  ;;  %v4628_v3 = vmax.f32 %v1493_v35, 0.0  ;;  %v4630_v6 = vmax.f32 %v1494_v40, 0.0  ;;  %v1581_v22 = vmul.f32 %v4470_v42, %v4618_v59  ;;  %v4636_v25 = vmax.f32 %v1435_v29, 0.0  ;;  %v1434_v41 = vld [vmem:[#allocation2 + $0xc8] sm:$0xff] }
 0x391   : > { %5784 = vst [vmem:[#allocation77_spill] sm:$0xff] %v4626_v56  ;;  %v1700_v9 = vadd.f32 %v1661_v57, %v1660_v2  ;;  %v1666_v17 = vadd.f32 %v1634_v63, %v1583_v30  ;;  %v1667_v27 = vadd.f32 %v1635_v58, %v1584_v62  ;;  %v1582_v33 = vmul.f32 %v4472_v43, %v4626_v56  ;;  %v1498_v30 = vld [vmem:[#allocation3 + $0xc8] sm:$0xff] }
 0x392   : > { %5785 = vst [vmem:[#allocation78_spill] sm:$0xff] %v4628_v3  ;;  %5786 = vst [vmem:[#allocation79_spill] sm:$0xff] %v4630_v6  ;;  %v1632_v2 = vmul.f32 %v4474_v44, %v4628_v3  ;;  %v1633_v57 = vmul.f32 %v4476_v45, %v4630_v6  ;;  %v4642_v35 = vmax.f32 %v1436_v8, 0.0  ;;  %v4644_v40 = vmax.f32 %v1499_v60, 0.0  ;;  %v1503_v6 = vld [vmem:[#allocation3 + $0xf0] sm:$0xff] }
 0x393   : > { %5787 = vst [vmem:[#allocation80_spill] sm:$0xff] %v4636_v25  ;;  %1701 = vadd.xlane.f32.xlu0 %v1700_v9  ;;  %v1709_v62 = vadd.f32 %v1667_v27, %v1666_v17  ;;  %v4646_v63 = vmax.f32 %v1500_v18, 0.0  ;;  %v1587_v29 = vmul.f32 %v4470_v42, %v4636_v25  ;;  %v4650_v58 = vmax.f32 %v1433_v21, 0.0  ;;  %v1439_v9 = vld [vmem:[#allocation2 + $0xf0] sm:$0xff]  ;;  %v1440_v21 = vld [vmem:[#allocation2 + $0xf8] sm:$0xff] }
 0x394   : > { %5788 = vst [vmem:[#allocation81_spill] sm:$0xff] %v4642_v35  ;;  %5789 = vst [vmem:[#allocation82_spill] sm:$0xff] %v4644_v40  ;;  %v1664_v3 = vadd.f32 %v1632_v2, %v1581_v22  ;;  %v1665_v56 = vadd.f32 %v1633_v57, %v1582_v33  ;;  %v1588_v8 = vmul.f32 %v4472_v43, %v4642_v35  ;;  %v4658_v18 = vmax.f32 %v1434_v41, 0.0  ;;  %v1504_v22 = vld [vmem:[#allocation3 + $0xf8] sm:$0xff] }
 0x395   : > { %5790 = vst [vmem:[#allocation83_spill] sm:$0xff] %v4646_v63  ;;  %5791 = vst [vmem:[#allocation84_spill] sm:$0xff] %v4650_v58  ;;  %v1638_v60 = vmul.f32 %v4474_v44, %v4644_v40  ;;  %1710 = vadd.xlane.f32.xlu1 %v1709_v62  ;;  %v1639_v27 = vmul.f32 %v4476_v45, %v4646_v63  ;;  %v4660_v17 = vmax.f32 %v1497_v32, 0.0  ;;  %v4662_v25 = vmax.f32 %v1498_v30, 0.0  ;;  %v1437_v62 = vld [vmem:[#allocation2 + $0xe0] sm:$0xff]  ;;  %v1438_v63 = vld [vmem:[#allocation2 + $0xe8] sm:$0xff] }
 0x396   : > { %5792 = vst [vmem:[#allocation85_spill] sm:$0xff] %v4658_v18  ;;  %v1706_v33 = vadd.f32 %v1665_v56, %v1664_v3  ;;  %v1585_v57 = vmul.f32 %v4470_v42, %v4650_v58  ;;  %v4666_v35 = vmax.f32 %v1439_v9, 0.0  ;;  %v1586_v41 = vmul.f32 %v4472_v43, %v4658_v18 }
 0x397   : > { %5793 = vst [vmem:[#allocation86_spill] sm:$0xff] %v4660_v17  ;;  %5794 = vst [vmem:[#allocation87_spill] sm:$0xff] %v4662_v25  ;;  %v1670_v2 = vadd.f32 %v1638_v60, %v1587_v29  ;;  %v1671_v40 = vadd.f32 %v1639_v27, %v1588_v8  ;;  %v1636_v32 = vmul.f32 %v4474_v44, %v4660_v17  ;;  %v4674_v56 = vmax.f32 %v1440_v21, 0.0  ;;  %v1501_v8 = vld [vmem:[#allocation3 + $0xe0] sm:$0xff]  ;;  %v1502_v60 = vld [vmem:[#allocation3 + $0xe8] sm:$0xff] }
 0x398   : > { %5795 = vst [vmem:[#allocation88_spill] sm:$0xff] %v4666_v35  ;;  %v1637_v30 = vmul.f32 %v4476_v45, %v4662_v25  ;;  %1707 = vadd.xlane.f32.xlu0 %v1706_v33  ;;  %v4676_v3 = vmax.f32 %v1503_v6, 0.0  ;;  %v4678_v29 = vmax.f32 %v1504_v22, 0.0  ;;  %v1591_v9 = vmul.f32 %v4470_v42, %v4666_v35 }
 0x399   : > { %5796 = vst [vmem:[#allocation89_spill] sm:$0xff] %v4674_v56  ;;  %v1715_v27 = vadd.f32 %v1671_v40, %v1670_v2  ;;  %v1668_v18 = vadd.f32 %v1636_v32, %v1585_v57  ;;  %v4682_v17 = vmax.f32 %v1437_v62, 0.0  ;;  %v1592_v25 = vmul.f32 %v4472_v43, %v4674_v56 }
 0x39a   : > { %5797 = vst [vmem:[#allocation90_spill] sm:$0xff] %v4676_v3  ;;  %5798 = vst [vmem:[#allocation91_spill] sm:$0xff] %v4678_v29  ;;  %v1669_v58 = vadd.f32 %v1637_v30, %v1586_v41  ;;  %v1642_v21 = vmul.f32 %v4474_v44, %v4676_v3  ;;  %v1643_v6 = vmul.f32 %v4476_v45, %v4678_v29  ;;  %v4690_v22 = vmax.f32 %v1438_v63, 0.0 }
 0x39b   : > { %5799 = vst [vmem:[#allocation92_spill] sm:$0xff] %v4682_v17  ;;  %1716 = vadd.xlane.f32.xlu1 %v1715_v27  ;;  %v4692_v35 = vmax.f32 %v1501_v8, 0.0  ;;  %v4694_v40 = vmax.f32 %v1502_v60, 0.0  ;;  %v1589_v2 = vmul.f32 %v4470_v42, %v4682_v17  ;;  %v1748_v32 = vsub.s32 1, %v4436_v7 }
 0x39c   : > { %5800 = vst [vmem:[#allocation93_spill] sm:$0xff] %v4690_v22  ;;  %v1712_v33 = vadd.f32 %v1669_v58, %v1668_v18  ;;  %v1674_v57 = vadd.f32 %v1642_v21, %v1591_v9  ;;  %v1675_v62 = vadd.f32 %v1643_v6, %v1592_v25  ;;  %v1590_v41 = vmul.f32 %v4472_v43, %v4690_v22 }
 0x39d   : > { %5801 = vst [vmem:[#allocation94_spill] sm:$0xff] %v4692_v35  ;;  %5802 = vst [vmem:[#allocation95_spill] sm:$0xff] %v4694_v40  ;;  %v1640_v63 = vmul.f32 %v4474_v44, %v4692_v35  ;;  %v1641_v58 = vmul.f32 %v4476_v45, %v4694_v40  ;;  %v1752_v18 = vsub.s32 3, %v4436_v7  ;;  %v1749_v8 = vrot.slane %v4430_v5, %v1748_v32 }
 0x39e   : > { %1713 = vadd.xlane.f32.xlu0 %v1712_v33  ;;  %v1721_v30 = vadd.f32 %v1675_v62, %v1674_v57  ;;  %v1799_v42 = vrot.slane %v4440_v11, %v1748_v32 }
 0x39f   : > { %v1672_v25 = vadd.f32 %v1640_v63, %v1589_v2  ;;  %v1673_v9 = vadd.f32 %v1641_v58, %v1590_v41  ;;  %v1753_v43 = vrot.slane %v4430_v5, %v1752_v18  ;;  %v1803_v60 = vrot.slane %v4440_v11, %v1752_v18 }
 0x3a0   : > { %1722 = vadd.xlane.f32.xlu1 %v1721_v30  ;;  %v4710_v27 = vrot.slane %v1749_v8, %v1748_v32  ;;  %v4712_v44 = vrot.slane %v1799_v42, %v1748_v32 }
 0x3a1   : > { %v1718_v21 = vadd.f32 %v1673_v9, %v1672_v25  ;;  %v4714_v45 = vrot.slane %v1753_v43, %v1748_v32  ;;  %v4716_v7 = vrot.slane %v1803_v60, %v1748_v32 }
 0x3a2   : > { %v1766_v6 = vmul.f32 %v4710_v27, %v4464_v37  ;;  %v1816_v33 = vmul.f32 %v4712_v44, %v4468_v39  ;;  %v1764_v5 = vmul.f32 %v4710_v27, %v4442_v12  ;;  %v1814_v11 = vmul.f32 %v4712_v44, %v4448_v19 }
 0x3a3   : > { %1719 = vadd.xlane.f32.xlu0 %v1718_v21  ;;  %v1767_v2 = vmul.f32 %v4714_v45, %v4466_v38  ;;  %v1817_v57 = vmul.f32 %v4716_v7, %v4478_v46  ;;  %v1765_v62 = vmul.f32 %v4714_v45, %v4444_v13  ;;  %v1815_v41 = vmul.f32 %v4716_v7, %v4450_v20 }
 0x3a4   : > { %v1848_v32 = vadd.f32 %v1816_v33, %v1766_v6  ;;  %v1846_v63 = vadd.f32 %v1814_v11, %v1764_v5  ;;  %v1768_v58 = vmul.f32 %v4710_v27, %v4421_v0  ;;  %v1769_v18 = vmul.f32 %v4714_v45, %v4423_v1 }
 0x3a5   : > { %v1849_v30 = vadd.f32 %v1817_v57, %v1767_v2  ;;  %v1847_v8 = vadd.f32 %v1815_v41, %v1765_v62  ;;  %v1818_v42 = vmul.f32 %v4712_v44, %v4428_v4  ;;  %v1819_v25 = vmul.f32 %v4716_v7, %v4438_v10 }
 0x3a6   : > { %v1770_v9 = vmul.f32 %v4710_v27, %v4452_v23  ;;  %v1771_v43 = vmul.f32 %v4714_v45, %v4454_v24  ;;  %v1820_v60 = vmul.f32 %v4712_v44, %v4456_v26  ;;  %v1821_v21 = vmul.f32 %v4716_v7, %v4462_v36 }
 0x3a7   : > { %v1881_v6 = vadd.f32 %v1849_v30, %v1848_v32  ;;  %v1878_v33 = vadd.f32 %v1847_v8, %v1846_v63  ;;  %v1850_v5 = vadd.f32 %v1818_v42, %v1768_v58  ;;  %v1851_v11 = vadd.f32 %v1819_v25, %v1769_v18 }
 0x3a8   : > { %v1852_v2 = vadd.f32 %v1820_v60, %v1770_v9  ;;  %v1853_v57 = vadd.f32 %v1821_v21, %v1771_v43  ;;  %v1772_v62 = vmul.f32 %v4710_v27, %v4526_v50  ;;  %v1773_v41 = vmul.f32 %v4714_v45, %v4530_v52 }
 0x3a9   : > { %1882 = vadd.xlane.f32.xlu1 %v1881_v6  ;;  %1879 = vadd.xlane.f32.xlu0 %v1878_v33  ;;  %v1884_v10 = vadd.f32 %v1851_v11, %v1850_v5  ;;  %v1822_v4 = vmul.f32 %v4712_v44, %v4532_v53  ;;  %v1823_v32 = vmul.f32 %v4716_v7, %v4534_v54 }
 0x3aa   : > { %v1887_v63 = vadd.f32 %v1853_v57, %v1852_v2  ;;  %v1774_v58 = vmul.f32 %v4710_v27, %v4480_v47  ;;  %v1775_v18 = vmul.f32 %v4714_v45, %v4482_v48  ;;  %v1824_v30 = vmul.f32 %v4712_v44, %v4484_v49 }
 0x3ab   : > { %v1854_v8 = vadd.f32 %v1822_v4, %v1772_v62  ;;  %v1855_v42 = vadd.f32 %v1823_v32, %v1773_v41  ;;  %v1825_v25 = vmul.f32 %v4716_v7, %v4518_v31  ;;  %v1776_v9 = vmul.f32 %v4710_v27, %v4554_v28 }
 0x3ac   : > { %v1856_v43 = vadd.f32 %v1824_v30, %v1774_v58  ;;  %v1777_v60 = vmul.f32 %v4714_v45, %v4562_v34  ;;  %v1826_v21 = vmul.f32 %v4712_v44, %v4564_v51  ;;  %v1827_v6 = vmul.f32 %v4716_v7, %v4566_v55  ;;  %v5803_v58 = vld [vmem:[#allocation68_spill] sm:$0xff]  ;;  %v5825_v34 = vld [vmem:[#allocation83_spill] sm:$0xff] }
 0x3ad   : > { %1885 = vadd.xlane.f32.xlu0 %v1884_v10  ;;  %1888 = vadd.xlane.f32.xlu1 %v1887_v63  ;;  %v1890_v4 = vadd.f32 %v1855_v42, %v1854_v8  ;;  %v1857_v33 = vadd.f32 %v1825_v25, %v1775_v18  ;;  %v1778_v5 = vmul.f32 %v4710_v27, %v4538_v61  ;;  %v5804_v63 = vld [vmem:[#allocation69_spill] sm:$0xff]  ;;  %v5805_v42 = vld [vmem:[#allocation70_spill] sm:$0xff]  ;;  %v5646_v28 = vmov 1  }
 0x3ae   : > { %v1858_v11 = vadd.f32 %v1826_v21, %v1776_v9  ;;  %v1859_v2 = vadd.f32 %v1827_v6, %v1777_v60  ;;  %v1779_v57 = vmul.f32 %v4714_v45, %v4546_v14  ;;  %v1828_v62 = vmul.f32 %v4712_v44, %v4548_v15  ;;  %v5806_v9 = vld [vmem:[#allocation71_spill] sm:$0xff]  ;;  %v5807_v21 = vld [vmem:[#allocation64_spill] sm:$0xff]  ;;  %3310 = vset.pattern.permute.xlu1 %v5646_v28 }
 0x3af   : > { %v1893_v41 = vadd.f32 %v1857_v33, %v1856_v43  ;;  %v1829_v32 = vmul.f32 %v4716_v7, %v4550_v16  ;;  %v1780_v10 = vmul.f32 %v4710_v27, %v5803_v58  ;;  %v1781_v18 = vmul.f32 %v4714_v45, %v5804_v63  ;;  %v5808_v33 = vld [vmem:[#allocation65_spill] sm:$0xff]  ;;  %v5809_v63 = vld [vmem:[#allocation66_spill] sm:$0xff]  ;;  %3316 = vset.pattern.permute.xlu0 %v5646_v28 }
 0x3b0   : > { %v1896_v30 = vadd.f32 %v1859_v2, %v1858_v11  ;;  %v1860_v8 = vadd.f32 %v1828_v62, %v1778_v5  ;;  %v1830_v25 = vmul.f32 %v4712_v44, %v5805_v42  ;;  %v1831_v60 = vmul.f32 %v4716_v7, %v5806_v9  ;;  %v5810_v11 = vld [vmem:[#allocation67_spill] sm:$0xff] }
 0x3b1   : > { %1891 = vadd.xlane.f32.xlu0 %v1890_v4  ;;  %1894 = vadd.xlane.f32.xlu1 %v1893_v41  ;;  %v1861_v43 = vadd.f32 %v1829_v32, %v1779_v57  ;;  %v1782_v6 = vmul.f32 %v4710_v27, %v5807_v21  ;;  %v1783_v58 = vmul.f32 %v4714_v45, %v5808_v33  ;;  %v5811_v41 = vld [vmem:[#allocation77_spill] sm:$0xff]  ;;  %v5812_v32 = vld [vmem:[#allocation78_spill] sm:$0xff] }
 0x3b2   : > { %v1862_v55 = vadd.f32 %v1830_v25, %v1780_v10  ;;  %v1863_v51 = vadd.f32 %v1831_v60, %v1781_v18  ;;  %v1832_v5 = vmul.f32 %v4712_v44, %v5809_v63  ;;  %v1833_v2 = vmul.f32 %v4716_v7, %v5810_v11  ;;  %v5813_v18 = vld [vmem:[#allocation79_spill] sm:$0xff]  ;;  %v5814_v11 = vld [vmem:[#allocation72_spill] sm:$0xff]  ;;  %v5816_v21 = vld [vmem:[#allocation74_spill] sm:$0xff] }
 0x3b3   : > { %v1899_v62 = vadd.f32 %v1861_v43, %v1860_v8  ;;  %v1784_v4 = vmul.f32 %v4710_v27, %v4618_v59  ;;  %v1785_v57 = vmul.f32 %v4714_v45, %v5811_v41  ;;  %v1834_v9 = vmul.f32 %v4712_v44, %v5812_v32  ;;  %v5815_v43 = vld [vmem:[#allocation73_spill] sm:$0xff] }
 0x3b4   : > { %v1902_v42 = vadd.f32 %v1863_v51, %v1862_v55  ;;  %v1864_v33 = vadd.f32 %v1832_v5, %v1782_v6  ;;  %v1865_v10 = vadd.f32 %v1833_v2, %v1783_v58  ;;  %v1835_v25 = vmul.f32 %v4716_v7, %v5813_v18  ;;  %v5817_v51 = vld [vmem:[#allocation75_spill] sm:$0xff]  ;;  %v5818_v58 = vld [vmem:[#allocation84_spill] sm:$0xff]  ;;  %v5820_v5 = vld [vmem:[#allocation86_spill] sm:$0xff] }
 0x3b5   : > { %1897 = vadd.xlane.f32.xlu0 %v1896_v30  ;;  %1900 = vadd.xlane.f32.xlu1 %v1899_v62  ;;  %v1866_v60 = vadd.f32 %v1834_v9, %v1784_v4  ;;  %v1786_v8 = vmul.f32 %v4710_v27, %v5814_v11  ;;  %v1787_v59 = vmul.f32 %v4714_v45, %v5815_v43  ;;  %v5819_v30 = vld [vmem:[#allocation85_spill] sm:$0xff]  ;;  %v5821_v62 = vld [vmem:[#allocation87_spill] sm:$0xff]  ;;  %v5824_v11 = vld [vmem:[#allocation82_spill] sm:$0xff] }
 0x3b6   : > { %v1905_v63 = vadd.f32 %v1865_v10, %v1864_v33  ;;  %v1867_v41 = vadd.f32 %v1835_v25, %v1785_v57  ;;  %v1836_v32 = vmul.f32 %v4712_v44, %v5816_v21  ;;  %v1837_v55 = vmul.f32 %v4716_v7, %v5817_v51  ;;  %v5822_v25 = vld [vmem:[#allocation80_spill] sm:$0xff] }
 0x3b7   : > { %v1788_v6 = vmul.f32 %v4710_v27, %v5818_v58  ;;  %v1789_v9 = vmul.f32 %v4714_v45, %v5819_v30  ;;  %v1838_v2 = vmul.f32 %v4712_v44, %v5820_v5  ;;  %v1839_v4 = vmul.f32 %v4716_v7, %v5821_v62  ;;  %v5823_v58 = vld [vmem:[#allocation81_spill] sm:$0xff] }
 0x3b8   : > { %v1908_v33 = vadd.f32 %v1867_v41, %v1866_v60  ;;  %v1868_v57 = vadd.f32 %v1836_v32, %v1786_v8  ;;  %v1869_v10 = vadd.f32 %v1837_v55, %v1787_v59  ;;  %v1790_v18 = vmul.f32 %v4710_v27, %v5822_v25  ;;  %v5826_v55 = vld [vmem:[#allocation88_spill] sm:$0xff] }
 0x3b9   : > { %1903 = vadd.xlane.f32.xlu0 %v1902_v42  ;;  %1906 = vadd.xlane.f32.xlu1 %v1905_v63  ;;  %v1870_v51 = vadd.f32 %v1838_v2, %v1788_v6  ;;  %v1871_v43 = vadd.f32 %v1839_v4, %v1789_v9  ;;  %v1791_v21 = vmul.f32 %v4714_v45, %v5823_v58 }
 0x3ba   : > { %v1911_v30 = vadd.f32 %v1869_v10, %v1868_v57  ;;  %v1840_v5 = vmul.f32 %v4712_v44, %v5824_v11  ;;  %v1841_v62 = vmul.f32 %v4716_v7, %v5825_v34  ;;  %v1792_v59 = vmul.f32 %v4710_v27, %v4682_v17 }
 0x3bb   : > { %v1914_v41 = vadd.f32 %v1871_v43, %v1870_v51  ;;  %v1793_v42 = vmul.f32 %v4714_v45, %v4690_v22  ;;  %v1842_v63 = vmul.f32 %v4712_v44, %v4692_v35  ;;  %v1843_v32 = vmul.f32 %v4716_v7, %v4694_v40 }
 0x3bc   : > { %v1872_v60 = vadd.f32 %v1840_v5, %v1790_v18  ;;  %v1873_v8 = vadd.f32 %v1841_v62, %v1791_v21  ;;  %v1794_v6 = vmul.f32 %v4710_v27, %v5826_v55  ;;  %v1795_v9 = vmul.f32 %v4714_v45, %v4674_v56 }
 0x3bd   : > { %1909 = vadd.xlane.f32.xlu0 %v1908_v33  ;;  %1912 = vadd.xlane.f32.xlu1 %v1911_v30  ;;  %v1874_v43 = vadd.f32 %v1842_v63, %v1792_v59  ;;  %v1875_v51 = vadd.f32 %v1843_v32, %v1793_v42  ;;  %v1844_v2 = vmul.f32 %v4712_v44, %v4676_v3 }
 0x3be   : > { %v1917_v4 = vadd.f32 %v1873_v8, %v1872_v60  ;;  %v1845_v57 = vmul.f32 %v4716_v7, %v4678_v29 }
 0x3bf   : > { %v1876_v10 = vadd.f32 %v1844_v2, %v1794_v6  ;;  %v1920_v21 = vadd.f32 %v1875_v51, %v1874_v43  ;;  %v4877_v6 = vld [vmem:[%s5827_s19] ss:$0 sm:$0xff] }
 0x3c0   : > { %v1877_v18 = vadd.f32 %v1845_v57, %v1795_v9 }
 0x3c1   : > { %1915 = vadd.xlane.f32.xlu0 %v1914_v41  ;;  %1918 = vadd.xlane.f32.xlu1 %v1917_v4 }
 0x3c2   : > { %v1923_v27 = vadd.f32 %v1877_v18, %v1876_v10 }
 0x3c5   : > { %1921 = vadd.xlane.f32.xlu0 %v1920_v21  ;;  %1924 = vadd.xlane.f32.xlu1 %v1923_v27 }
 0x40b   : > { %v4846_v45 = vpop.xlane.xlu1 %1683  ;;  %v4848_v30 = vpop.xlane.xlu0 %1677 }
 0x40f   : > { %v4850_v5 = vpop.xlane.xlu1 %1686  ;;  %v4852_v62 = vpop.xlane.xlu0 %1680 }
 0x413   : > { %v4854_v44 = vpop.xlane.xlu1 %1692 }
 0x414   : > { %v4856_v33 = vpop.xlane.xlu0 %1689 }
 0x415   : > { %v1734_v28 = vadd.f32 %v4877_v6, %v4856_v33 }
 0x417   : > { %v4858_v7 = vpop.xlane.xlu1 %1698 }
 0x418   : > { %v4980_v16 = vadd.f32 %v4877_v6, %v4858_v7 }
 0x41a   : > { %v4860_v59 = vpop.xlane.xlu0 %1695 }
 0x41d   : > { %v4862_v41 = vpop.xlane.xlu1 %1704 }
 0x420   : > { %v4864_v42 = vpop.xlane.xlu0 %1701 }
 0x422   : > { %v4866_v63 = vpop.xlane.xlu1 %1710 }
 0x425   : > { %v4868_v32 = vpop.xlane.xlu0 %1707 }
 0x426   : > { %v5005_v33 = vadd.f32 %v4877_v6, %v4868_v32 }
 0x428   : > { %v4870_v60 = vpop.xlane.xlu1 %1716 }
 0x429   : > { %v5009_v7 = vadd.f32 %v4877_v6, %v4870_v60 }
 0x42b   : > { %v4872_v8 = vpop.xlane.xlu0 %1713 }
 0x42d   : > { %v4879_v9 = vpop.xlane.xlu1 %1722 }
 0x430   : > { %v1720_v43 = vpop.xlane.xlu0 %1719 }
 0x431   : > { %v4882_v51 = vadd.f32 %v4877_v6, %v1720_v43 }
 0x436   : > { %v1883_v2 = vpop.xlane.xlu1 %1882  ;;  %v1880_v4 = vpop.xlane.xlu0 %1879 }
 0x437   : > { %v4885_v57 = vadd.f32 %v4877_v6, %v1883_v2  ;;  %v4888_v10 = vadd.f32 %v4877_v6, %v1880_v4 }
 0x439   : > { %1960 = vrot.lane.b32.xlu1 %v4885_v57, %s3792_s14  ;;  %1958 = vrot.lane.b32.xlu0 %v4888_v10, %s3792_s14 }
 0x43a   : > { %v1886_v18 = vpop.xlane.xlu0 %1885  ;;  %v1889_v21 = vpop.xlane.xlu1 %1888 }
 0x43b   : > { %v4895_v27 = vadd.f32 %v4877_v6, %v1886_v18  ;;  %v4900_v43 = vadd.f32 %v4877_v6, %v1889_v21 }
 0x43d   : > { %1962 = vrot.lane.b32.xlu1 %v4895_v27, %s3792_s14 }
 0x43e   : > { %v1892_v2 = vpop.xlane.xlu0 %1891  ;;  %v1895_v4 = vpop.xlane.xlu1 %1894 }
 0x43f   : > { %v4903_v40 = vadd.f32 %v4877_v6, %v1892_v2  ;;  %v4910_v18 = vadd.f32 %v4877_v6, %v1895_v4 }
 0x441   : > { %1964 = vrot.lane.b32.xlu1 %v4900_v43, %s3792_s14  ;;  %1966 = vrot.lane.b32.xlu0 %v4903_v40, %s3792_s14 }
 0x442   : > { %v1898_v35 = vpop.xlane.xlu0 %1897  ;;  %v1901_v22 = vpop.xlane.xlu1 %1900 }
 0x443   : > { %v4913_v17 = vadd.f32 %v4877_v6, %v1898_v35  ;;  %v4920_v21 = vadd.f32 %v4877_v6, %v1901_v22 }
 0x445   : > { %1968 = vrot.lane.b32.xlu1 %v4910_v18, %s3792_s14  ;;  %1970 = vrot.lane.b32.xlu0 %v4913_v17, %s3792_s14 }
 0x446   : > { %v1904_v2 = vpop.xlane.xlu0 %1903  ;;  %v1907_v29 = vpop.xlane.xlu1 %1906 }
 0x447   : > { %v4923_v3 = vadd.f32 %v4877_v6, %v1904_v2  ;;  %v4930_v35 = vadd.f32 %v4877_v6, %v1907_v29 }
 0x449   : > { %1972 = vrot.lane.b32.xlu1 %v4920_v21, %s3792_s14  ;;  %1974 = vrot.lane.b32.xlu0 %v4923_v3, %s3792_s14 }
 0x44a   : > { %v1910_v4 = vpop.xlane.xlu0 %1909  ;;  %v1913_v56 = vpop.xlane.xlu1 %1912 }
 0x44b   : > { %v4933_v55 = vadd.f32 %v4877_v6, %v1910_v4  ;;  %v4940_v22 = vadd.f32 %v4877_v6, %v1913_v56 }
 0x44d   : > { %1976 = vrot.lane.b32.xlu1 %v4930_v35, %s3792_s14  ;;  %1978 = vrot.lane.b32.xlu0 %v4933_v55, %s3792_s14 }
 0x44e   : > { %v1916_v2 = vpop.xlane.xlu0 %1915  ;;  %v1919_v34 = vpop.xlane.xlu1 %1918 }
 0x44f   : > { %v4943_v58 = vadd.f32 %v4877_v6, %v1916_v2  ;;  %v4950_v29 = vadd.f32 %v4877_v6, %v1919_v34  ;;  %v1731_v2 = vadd.f32 %v4877_v6, %v4852_v62  ;;  %v1730_v34 = vadd.f32 %v4877_v6, %v4848_v30 }
 0x450   : > { %v1732_v62 = vadd.f32 %v4877_v6, %v4846_v45  ;;  %v4985_v30 = vadd.f32 %v4877_v6, %v4860_v59  ;;  %v4989_v45 = vadd.f32 %v4877_v6, %v4862_v41  ;;  %v5015_v59 = vadd.f32 %v4877_v6, %v4872_v8 }
 0x451   : > { %1980 = vrot.lane.b32.xlu1 %v4940_v22, %s3792_s14  ;;  %1982 = vrot.lane.b32.xlu0 %v4943_v58, %s3792_s14  ;;  %v5019_v41 = vadd.f32 %v4877_v6, %v4879_v9 }
 0x452   : > { %v1922_v4 = vpop.xlane.xlu0 %1921  ;;  %v1925_v11 = vpop.xlane.xlu1 %1924 }
 0x453   : > { %v4953_v25 = vadd.f32 %v4877_v6, %v1922_v4  ;;  %v4960_v56 = vadd.f32 %v4877_v6, %v1925_v11  ;;  %v1733_v11 = vadd.f32 %v4877_v6, %v4850_v5  ;;  %v1735_v4 = vadd.f32 %v4877_v6, %v4854_v44 }
 0x454   : > { %v4995_v5 = vadd.f32 %v4877_v6, %v4864_v42  ;;  %v4999_v44 = vadd.f32 %v4877_v6, %v4866_v63 }
 0x455   : > { %1984 = vrot.lane.b32.xlu1 %v4950_v29, %s3792_s14  ;;  %1986 = vrot.lane.b32.xlu0 %v4953_v25, %s3792_s14 }
 0x459   : > { %1988 = vrot.lane.b32.xlu1 %v4960_v56, %s3792_s14  ;;  %2442 = vrot.lane.b32.xlu0 %v1731_v2, %s3794_s1 }
 0x45d   : > { %2440 = vrot.lane.b32.xlu1 %v1730_v34, %s3794_s1  ;;  %2446 = vrot.lane.b32.xlu0 %v1733_v11, %s3794_s1 }
 0x461   : > { %2444 = vrot.lane.b32.xlu1 %v1732_v62, %s3794_s1  ;;  %2450 = vrot.lane.b32.xlu0 %v1735_v4, %s3794_s1 }
 0x465   : > { %2448 = vrot.lane.b32.xlu1 %v1734_v28, %s3794_s1  ;;  %2454 = vrot.lane.b32.xlu0 %v4980_v16, %s3794_s1 }
 0x469   : > { %2452 = vrot.lane.b32.xlu1 %v4985_v30, %s3794_s1  ;;  %2458 = vrot.lane.b32.xlu0 %v4989_v45, %s3794_s1 }
 0x46d   : > { %2456 = vrot.lane.b32.xlu1 %v4995_v5, %s3794_s1  ;;  %2462 = vrot.lane.b32.xlu0 %v4999_v44, %s3794_s1 }
 0x471   : > { %2460 = vrot.lane.b32.xlu1 %v5005_v33, %s3794_s1  ;;  %2466 = vrot.lane.b32.xlu0 %v5009_v7, %s3794_s1 }
 0x475   : > { %2464 = vrot.lane.b32.xlu1 %v5015_v59, %s3794_s1  ;;  %2470 = vrot.lane.b32.xlu0 %v5019_v41, %s3794_s1 }
 0x479   : > { %2468 = vrot.lane.b32.xlu1 %v4882_v51, %s3794_s1 }
 0x4ab   : > { %v1961_v42 = vpop.permute.xlu1 %1960  ;;  %v1959_v63 = vpop.permute.xlu0 %1958 }
 0x4ac   : > { %v2007_v6 = vsub.f32 %v1731_v2, %v1961_v42  ;;  %v2006_v31 = vsub.f32 %v1730_v34, %v1959_v63 }
 0x4ae   : > { %v2970_v48 = vmul.f32 -1.442695, %v2007_v6  ;;  %v2969_v1 = vmul.f32 -1.442695, %v2006_v31 }
 0x4af   : > { %v1963_v32 = vpop.permute.xlu1 %1962 }
 0x4b0   : > { %v2008_v36 = vsub.f32 %v1732_v62, %v1963_v32  ;;  %3356 = vpow2.f32 %v2970_v48 }
 0x4b1   : > { %3358 = vpow2.f32 %v2969_v1 }
 0x4b2   : > { %v2971_v42 = vmul.f32 -1.442695, %v2008_v36 }
 0x4b3   : > { %v1965_v60 = vpop.permute.xlu1 %1964  ;;  %v1967_v14 = vpop.permute.xlu0 %1966 }
 0x4b4   : > { %v2009_v0 = vsub.f32 %v1733_v11, %v1965_v60  ;;  %v2010_v19 = vsub.f32 %v1734_v28, %v1967_v14  ;;  %v3795_v11 = vmov 0.0  }
 0x4b6   : > { %v2972_v2 = vmul.f32 -1.442695, %v2009_v0  ;;  %v2973_v1 = vmul.f32 -1.442695, %v2010_v19 }
 0x4b7   : > { %v1969_v15 = vpop.permute.xlu1 %1968  ;;  %v1971_v54 = vpop.permute.xlu0 %1970 }
 0x4b8   : > { %v2011_v20 = vsub.f32 %v1735_v4, %v1969_v15  ;;  %3360 = vpow2.f32 %v2972_v2 }
 0x4b9   : > { %3362 = vpow2.f32 %v2971_v42 }
 0x4ba   : > { %v2974_v6 = vmul.f32 -1.442695, %v2011_v20  ;;  %v3357_v20 = vpop.eup %3356 }
 0x4bb   : > { %v1973_v53 = vpop.permute.xlu1 %1972  ;;  %v5024_v8 = vpop.permute.xlu0 %1974  ;;  %v2071_v4 = vadd.f32 1.0, %v3357_v20 }
 0x4bc   : > { %v2013_v31 = vsub.f32 %v4980_v16, %v1973_v53  ;;  %3364 = vpow2.f32 %v2974_v6 }
 0x4bd   : > { %3366 = vpow2.f32 %v2973_v1 }
 0x4be   : > { %v2976_v53 = vmul.f32 -1.442695, %v2013_v31 }
 0x4bf   : > { %v1977_v61 = vpop.permute.xlu1 %1976  ;;  %v5026_v52 = vpop.permute.xlu0 %1978 }
 0x4c0   : > { %v2015_v15 = vsub.f32 %v4989_v45, %v1977_v61  ;;  %3368 = vpow2.f32 %v2976_v53 }
 0x4c2   : > { %v2978_v61 = vmul.f32 -1.442695, %v2015_v15 }
 0x4c3   : > { %v5028_v9 = vpop.permute.xlu1 %1980  ;;  %v5030_v50 = vpop.permute.xlu0 %1982 }
 0x4c7   : > { %v5032_v49 = vpop.permute.xlu1 %1984  ;;  %v5034_v47 = vpop.permute.xlu0 %1986 }
 0x4cb   : > { %v5036_v24 = vpop.permute.xlu1 %1988  ;;  %v2443_v26 = vpop.permute.xlu0 %2442 }
 0x4cc   : > { %vm2489_vm0 = vcmp.gt.f32.partialorder %v4885_v57, %v2443_v26  ;;  %v2012_v26 = vsub.f32 %v4985_v30, %v1971_v54  ;;  %v3359_v57 = vpop.eup %3358  ;;  %v2017_v30 = vsub.f32 %v4999_v44, %v5028_v9  ;;  %v2019_v9 = vsub.f32 %v5009_v7, %v5032_v49 }
 0x4cd   : > { %v2505_v48 = vsel %vm2489_vm0, 1.0, %v3795_v11  ;;  %v2070_v32 = vadd.f32 1.0, %v3359_v57  ;;  %v2018_v49 = vsub.f32 %v5015_v59, %v5030_v50  ;;  %v2020_v59 = vsub.f32 %v4882_v51, %v5034_v47 }
 0x4ce   : > { %v2975_v54 = vmul.f32 -1.442695, %v2012_v26  ;;  %v2980_v44 = vmul.f32 -1.442695, %v2017_v30  ;;  %v2982_v7 = vmul.f32 -1.442695, %v2019_v9 }
 0x4cf   : > { %v2441_v34 = vpop.permute.xlu1 %2440  ;;  %v2447_v63 = vpop.permute.xlu0 %2446 }
 0x4d0   : > { %vm2488_vm1 = vcmp.gt.f32.partialorder %v4888_v10, %v2441_v34  ;;  %vm2491_vm2 = vcmp.gt.f32.partialorder %v4900_v43, %v2447_v63  ;;  %v2014_v10 = vsub.f32 %v4995_v5, %v5024_v8  ;;  %v3361_v5 = vpop.eup %3360  ;;  %3370 = vpow2.f32 %v2975_v54 }
 0x4d1   : > { %v2504_v62 = vsel %vm2488_vm1, 1.0, %v3795_v11  ;;  %v2507_v16 = vsel %vm2491_vm2, 1.0, %v3795_v11  ;;  %v3363_v34 = vpop.eup %3362  ;;  %3372 = vrcp.f32 %v2071_v4  ;;  %v2073_v31 = vadd.f32 1.0, %v3361_v5 }
 0x4d2   : > { %v3311_v0 = vpack.i.bf16 %v2505_v48, %v2504_v62  ;;  %v2977_v8 = vmul.f32 -1.442695, %v2014_v10  ;;  %3374 = vpow2.f32 %v2978_v61  ;;  %v3365_v6 = vpop.eup %3364  ;;  %v2072_v62 = vadd.f32 1.0, %v3363_v34 }
 0x4d3   : > { %v2445_v36 = vpop.permute.xlu1 %2444  ;;  %v2451_v14 = vpop.permute.xlu0 %2450  ;;  %3376 = vrcp.f32 %v2070_v32  ;;  %v2983_v10 = vmul.f32 -1.442695, %v2020_v59 }
 0x4d4   : > { %vm2490_vm3 = vcmp.gt.f32.partialorder %v4895_v27, %v2445_v36  ;;  %3312 = vperm.xlu1 %3310, %v3311_v0   ;;  %vm2493_vm4 = vcmp.gt.f32.partialorder %v4910_v18, %v2451_v14  ;;  %3378 = vpow2.f32 %v2977_v8  ;;  %v2021_v0 = vsub.f32 %v5019_v41, %v5036_v24 }
 0x4d5   : > { %v2506_v28 = vsel %vm2490_vm3, 1.0, %v3795_v11  ;;  %v2509_v45 = vsel %vm2493_vm4, 1.0, %v3795_v11  ;;  %3380 = vpow2.f32 %v2980_v44  ;;  %v2075_v36 = vadd.f32 1.0, %v3365_v6 }
 0x4d6   : > { %v3317_v19 = vpack.i.bf16 %v2507_v16, %v2506_v28  ;;  %3382 = vrcp.f32 %v2073_v31  ;;  %v2984_v41 = vmul.f32 -1.442695, %v2021_v0 }
 0x4d7   : > { %v2449_v43 = vpop.permute.xlu1 %2448  ;;  %v2455_v27 = vpop.permute.xlu0 %2454  ;;  %3384 = vrcp.f32 %v2072_v62 }
 0x4d8   : > { %vm2492_vm5 = vcmp.gt.f32.partialorder %v4903_v40, %v2449_v43  ;;  %3318 = vperm.xlu0 %3316, %v3317_v19   ;;  %vm2495_vm6 = vcmp.gt.f32.partialorder %v4920_v21, %v2455_v27  ;;  %v2016_v40 = vsub.f32 %v5005_v33, %v5026_v52 }
 0x4d9   : > { %v2508_v18 = vsel %vm2492_vm5, 1.0, %v3795_v11  ;;  %v2511_v21 = vsel %vm2495_vm6, 1.0, %v3795_v11 }
 0x4da   : > { %v3322_v60 = vpack.i.bf16 %v2509_v45, %v2508_v18  ;;  %v2979_v1 = vmul.f32 -1.442695, %v2016_v40 }
 0x4db   : > { %v2453_v2 = vpop.permute.xlu1 %2452  ;;  %v2459_v42 = vpop.permute.xlu0 %2458 }
 0x4dc   : > { %vm2494_vm7 = vcmp.gt.f32.partialorder %v4913_v17, %v2453_v2  ;;  %3323 = vperm.xlu1 %3310, %v3322_v60   ;;  %vm2497_vm8 = vcmp.gt.f32.partialorder %v4930_v35, %v2459_v42  ;;  %v3367_v17 = vpop.eup %3366  ;;  %3386 = vpow2.f32 %v2979_v1 }
 0x4dd   : > { %v2510_v63 = vsel %vm2494_vm7, 1.0, %v3795_v11  ;;  %v2513_v26 = vsel %vm2497_vm8, 1.0, %v3795_v11  ;;  %v3369_v20 = vpop.eup %3368  ;;  %v2074_v53 = vadd.f32 1.0, %v3367_v17  ;;  %3388 = vpow2.f32 %v2982_v7 }
 0x4de   : > { %v3327_v48 = vpack.i.bf16 %v2511_v21, %v2510_v63  ;;  %v3371_v24 = vpop.eup %3370  ;;  %3390 = vrcp.f32 %v2075_v36  ;;  %v2077_v28 = vadd.f32 1.0, %v3369_v20 }
 0x4df   : > { %v2457_v52 = vpop.permute.xlu1 %2456  ;;  %v2463_v33 = vpop.permute.xlu0 %2462  ;;  %3392 = vrcp.f32 %v2074_v53  ;;  %v2076_v47 = vadd.f32 1.0, %v3371_v24 }
 0x4e0   : > { %vm2496_vm9 = vcmp.gt.f32.partialorder %v4923_v3, %v2457_v52  ;;  %3328 = vperm.xlu1 %3310, %v3327_v48   ;;  %vm2499_vm10 = vcmp.gt.f32.partialorder %v4940_v22, %v2463_v33  ;;  %v2981_v3 = vmul.f32 -1.442695, %v2018_v49  ;;  %v5079_v22 = vpop.eup %3372 }
 0x4e1   : > { %v2512_v35 = vsel %vm2496_vm9, 1.0, %v3795_v11  ;;  %v2515_v15 = vsel %vm2499_vm10, 1.0, %v3795_v11  ;;  %v3375_v57 = vpop.eup %3374  ;;  %v2119_v49 = vsub.f32 1.0, %v5079_v22 }
 0x4e2   : > { %v3332_v14 = vpack.i.bf16 %v2513_v26, %v2512_v35  ;;  %v5081_v54 = vpop.eup %3376  ;;  %3394 = vpow2.f32 %v2981_v3  ;;  %v2079_v27 = vadd.f32 1.0, %v3375_v57 }
 0x4e3   : > { %v2461_v50 = vpop.permute.xlu1 %2460  ;;  %v3379_v51 = vpop.eup %3378  ;;  %3396 = vpow2.f32 %v2984_v41  ;;  %v2118_v26 = vsub.f32 1.0, %v5081_v54 }
 0x4e4   : > { %vm2498_vm11 = vcmp.gt.f32.partialorder %v4933_v55, %v2461_v50  ;;  %3333 = vperm.xlu0 %3316, %v3332_v14   ;;  %v3796_v55 = vmov 0   ;;  %v3381_v43 = vpop.eup %3380  ;;  %3398 = vrcp.f32 %v2077_v28  ;;  %v2078_v61 = vadd.f32 1.0, %v3379_v51  ;;  %v2467_v41 = vpop.permute.xlu0 %2466 }
 0x4e5   : > { %v2514_v16 = vsel %vm2498_vm11, 1.0, %v3795_v11  ;;  %v3383_v4 = vpop.eup %3382  ;;  %3400 = vrcp.f32 %v2076_v47  ;;  %v2081_v18 = vadd.f32 1.0, %v3381_v43  ;;  %vm2501_vm13 = vcmp.gt.f32.partialorder %v4950_v29, %v2467_v41 }
 0x4e6   : > { %v3337_v19 = vpack.i.bf16 %v2515_v15, %v2514_v16  ;;  %v3385_v30 = vpop.eup %3384  ;;  %3402 = vpow2.f32 %v2983_v10  ;;  %v2121_v0 = vsub.f32 1.0, %v3383_v4  ;;  %v2517_v47 = vsel %vm2501_vm13, 1.0, %v3795_v11 }
 0x4e7   : > { %v3387_v45 = vpop.eup %3386  ;;  %3404 = vrcp.f32 %v2079_v27  ;;  %v2120_v36 = vsub.f32 1.0, %v3385_v30  ;;  %v2465_v24 = vpop.permute.xlu1 %2464  ;;  %v5828_v10 = vmov 1  }
 0x4e8   : > { %3342 = vset.pattern.permute.xlu0 %v3796_v55  ;;  %3338 = vperm.xlu1 %3310, %v3337_v19   ;;  %v3389_v32 = vpop.eup %3388  ;;  %3406 = vrcp.f32 %v2078_v61  ;;  %v2080_v8 = vadd.f32 1.0, %v3387_v45  ;;  %vm2500_vm12 = vcmp.gt.f32.partialorder %v4943_v58, %v2465_v24 }
 0x4e9   : > { %2136 = vperm.xlu0 %3342, %v5081_v54   ;;  %v3391_v60 = vpop.eup %3390  ;;  %3408 = vrcp.f32 %v2081_v18  ;;  %v2083_v42 = vadd.f32 1.0, %v3389_v32  ;;  %v2516_v57 = vsel %vm2500_vm12, 1.0, %v3795_v11  ;;  %v2471_v54 = vpop.permute.xlu0 %2470 }
 0x4ea   : > { %v3393_v5 = vpop.eup %3392  ;;  %3410 = vrcp.f32 %v2080_v8  ;;  %v2123_v35 = vsub.f32 1.0, %v3391_v60  ;;  %v3345_v51 = vpack.i.bf16 %v2517_v47, %v2516_v57  ;;  %vm2503_vm15 = vcmp.gt.f32.partialorder %v4960_v56, %v2471_v54 }
 0x4eb   : > { %3412 = vrcp.f32 %v2083_v42  ;;  %v2122_v20 = vsub.f32 1.0, %v3393_v5  ;;  %v2519_v29 = vsel %vm2503_vm15, 1.0, %v3795_v11 }
 0x4ec   : > { %3343 = vset.pattern.permute.xlu1 %v3796_v55  ;;  %v3395_v2 = vpop.eup %3394 }
 0x4ed   : > { %2151 = vperm.xlu0 %3342, %v3383_v4   ;;  %2141 = vperm.xlu1 %3343, %v5079_v22   ;;  %v3397_v34 = vpop.eup %3396  ;;  %v2082_v44 = vadd.f32 1.0, %v3395_v2  ;;  %v2469_v22 = vpop.permute.xlu1 %2468 }
 0x4ee   : > { %v3399_v40 = vpop.eup %3398  ;;  %v2085_v21 = vadd.f32 1.0, %v3397_v34  ;;  %vm2502_vm14 = vcmp.gt.f32.partialorder %v4953_v25, %v2469_v22 }
 0x4ef   : > { %v3401_v9 = vpop.eup %3400  ;;  %3414 = vrcp.f32 %v2082_v44  ;;  %v2125_v14 = vsub.f32 1.0, %v3399_v40  ;;  %v2518_v58 = vsel %vm2502_vm14, 1.0, %v3795_v11  ;;  %v5829_v44 = vlaneseq }
 0x4f0   : > { %v3403_v63 = vpop.eup %3402  ;;  %3416 = vrcp.f32 %v2085_v21  ;;  %v2124_v50 = vsub.f32 1.0, %v3401_v9  ;;  %v3351_v43 = vpack.i.bf16 %v2519_v29, %v2518_v58 }
 0x4f1   : > { %2161 = vperm.xlu0 %3342, %v3391_v60   ;;  %2146 = vperm.xlu1 %3343, %v3385_v30   ;;  %v3405_v6 = vpop.eup %3404  ;;  %v2084_v31 = vadd.f32 1.0, %v3403_v63 }
 0x4f2   : > { %v3407_v48 = vpop.eup %3406  ;;  %v2127_v53 = vsub.f32 1.0, %v3405_v6 }
 0x4f3   : > { %v3409_v62 = vpop.eup %3408  ;;  %3418 = vrcp.f32 %v2084_v31  ;;  %v2126_v59 = vsub.f32 1.0, %v3407_v48 }
 0x4f4   : > { %v3411_v52 = vpop.eup %3410  ;;  %v2129_v3 = vsub.f32 1.0, %v3409_v62 }
 0x4f5   : > { %2171 = vperm.xlu0 %3342, %v3399_v40   ;;  %2156 = vperm.xlu1 %3343, %v3393_v5   ;;  %v3413_v33 = vpop.eup %3412  ;;  %v2128_v16 = vsub.f32 1.0, %v3411_v52 }
 0x4f6   : > { %v2131_v15 = vsub.f32 1.0, %v3413_v33 }
 0x4f9   : > { %2181 = vperm.xlu0 %3342, %v3405_v6   ;;  %2166 = vperm.xlu1 %3343, %v3401_v9   ;;  %v3415_v17 = vpop.eup %3414  ;;  %v5118_v9 = vand.u32 127, %v5829_v44 }
 0x4fa   : > { %v3417_v1 = vpop.eup %3416  ;;  %v2130_v19 = vsub.f32 1.0, %v3415_v17 }
 0x4fb   : > { %v2133_v28 = vsub.f32 1.0, %v3417_v1  ;;  %vm2522_vm0 = vcmp.eq.s32.totalorder %v5118_v9, 2  ;;  %vm2520_vm1 = vcmp.eq.s32.totalorder %v5118_v9, 0  ;;  %vm2521_vm2 = vcmp.eq.s32.totalorder %v5118_v9, 1 }
 0x4fd   : > { %2191 = vperm.xlu0 %3342, %v3409_v62   ;;  %2176 = vperm.xlu1 %3343, %v3407_v48   ;;  %v3419_v7 = vpop.eup %3418 }
 0x4fe   : > { %v2132_v55 = vsub.f32 1.0, %v3419_v7 }
 0x501   : > { %2201 = vperm.xlu0 %3342, %v3413_v33   ;;  %2186 = vperm.xlu1 %3343, %v3411_v52  }
 0x505   : > { %2211 = vperm.xlu0 %3342, %v3417_v1   ;;  %2196 = vperm.xlu1 %3343, %v3415_v17  }
 0x509   : > { %2253 = vperm.xlu0 %3342, %v2119_v49   ;;  %2206 = vperm.xlu1 %3343, %v3419_v7  }
 0x50d   : > { %2263 = vperm.xlu0 %3342, %v2121_v0   ;;  %2248 = vperm.xlu1 %3343, %v2118_v26  }
 0x511   : > { %2273 = vperm.xlu0 %3342, %v2123_v35   ;;  %2258 = vperm.xlu1 %3343, %v2120_v36  }
 0x515   : > { %2283 = vperm.xlu0 %3342, %v2125_v14   ;;  %2268 = vperm.xlu1 %3343, %v2122_v20  }
 0x519   : > { %2293 = vperm.xlu0 %3342, %v2127_v53   ;;  %2278 = vperm.xlu1 %3343, %v2124_v50  }
 0x51d   : > { %2303 = vperm.xlu0 %3342, %v2129_v3   ;;  %2288 = vperm.xlu1 %3343, %v2126_v59  }
 0x521   : > { %2313 = vperm.xlu0 %3342, %v2131_v15   ;;  %2298 = vperm.xlu1 %3343, %v2128_v16  }
 0x525   : > { %2323 = vperm.xlu0 %3342, %v2133_v28   ;;  %2308 = vperm.xlu1 %3343, %v2130_v19  }
 0x529   : > { %3344 = vset.pattern.permute.xlu0 %v5828_v10  ;;  %2318 = vperm.xlu1 %3343, %v2132_v55  }
 0x52a   : > { %3346 = vperm.xlu0 %3344, %v3345_v51  }
 0x52d   : > { %3350 = vset.pattern.permute.xlu1 %v5828_v10 }
 0x52e   : > { %3352 = vperm.xlu1 %3350, %v3351_v43  }
 0x553   : > { %v3313_v27 = vpop.permute.xlu1 %3312 }
 0x554   : > { %v3315_v6 = vunpack.i.h.bf16 %v3313_v27  ;;  %v3314_v31 = vunpack.i.l.bf16 %v3313_v27  ;;  %v5830_v27 = vld [vmem:[#allocation43_spill] sm:$0xff] }
 0x556   : > { %v2604_v7 = vsel %vm2522_vm0, %v3315_v6, 0.0  ;;  %v2603_v36 = vsel %vm2522_vm0, %v3314_v31, 0.0  ;;  %v5834_v6 = vld [vmem:[#allocation47_spill] sm:$0xff] }
 0x557   : > { %v3319_v4 = vpop.permute.xlu0 %3318 }
 0x558   : > { %v3321_v48 = vunpack.i.h.bf16 %v3319_v4  ;;  %v3320_v62 = vunpack.i.l.bf16 %v3319_v4  ;;  %v5831_v4 = vld [vmem:[#allocation44_spill] sm:$0xff] }
 0x55a   : > { %v2606_v14 = vsel %vm2522_vm0, %v3321_v48, 0.0  ;;  %v2605_v20 = vsel %vm2522_vm0, %v3320_v62, 0.0 }
 0x55b   : > { %v3324_v25 = vpop.permute.xlu1 %3323 }
 0x55c   : > { %v3326_v52 = vunpack.i.h.bf16 %v3324_v25  ;;  %v3325_v33 = vunpack.i.l.bf16 %v3324_v25 }
 0x55e   : > { %v2608_v53 = vsel %vm2522_vm0, %v3326_v52, 0.0  ;;  %v5143_v50 = vsel %vm2522_vm0, %v3325_v33, 0.0 }
 0x55f   : > { %v3329_v30 = vpop.permute.xlu1 %3328 }
 0x560   : > { %v3331_v17 = vunpack.i.h.bf16 %v3329_v30  ;;  %v3330_v0 = vunpack.i.l.bf16 %v3329_v30 }
 0x562   : > { %v5147_v3 = vsel %vm2522_vm0, %v3331_v17, 0.0  ;;  %v5157_v57 = vsel %vm2522_vm0, %v3330_v0, 0.0 }
 0x563   : > { %v3334_v61 = vpop.permute.xlu0 %3333 }
 0x564   : > { %v3336_v26 = vunpack.i.h.bf16 %v3334_v61  ;;  %v3335_v35 = vunpack.i.l.bf16 %v3334_v61 }
 0x566   : > { %v5161_v54 = vsel %vm2522_vm0, %v3336_v26, 0.0 }
 0x567   : > { %v3339_v45 = vpop.permute.xlu1 %3338 }
 0x568   : > { %v5097_v18 = vpop.permute.xlu0 %2136  ;;  %v3341_v59 = vunpack.i.h.bf16 %v3339_v45  ;;  %v3340_v24 = vunpack.i.l.bf16 %v3339_v45  ;;  %v5832_v45 = vld [vmem:[#allocation46_spill] sm:$0xff] }
 0x569   : > { %v2215_v10 = vmul.f32 %v5097_v18, %v4444_v13  ;;  %v5833_v13 = vld [vmem:[#allocation45_spill] sm:$0xff] }
 0x56a   : > { %v5175_v51 = vsel %vm2522_vm0, %v3341_v59, 0.0  ;;  %v5179_v58 = vsel %vm2522_vm0, %v3340_v24, 0.0 }
 0x56c   : > { %v2142_v56 = vpop.permute.xlu1 %2141  ;;  %v5099_v32 = vpop.permute.xlu0 %2151 }
 0x56d   : > { %v2216_v16 = vmul.f32 %v2142_v56, %v4464_v37  ;;  %v2217_v22 = vmul.f32 %v2142_v56, %v4466_v38  ;;  %v5165_v37 = vsel %vm2522_vm0, %v3335_v35, 0.0  ;;  %v2220_v29 = vmul.f32 %v5099_v32, %v4452_v23  ;;  %v5837_v35 = vld [vmem:[#allocation48_spill] sm:$0xff] }
 0x56e   : > { %v2221_v44 = vmul.f32 %v5099_v32, %v5833_v13 }
 0x570   : > { %v5101_v60 = vpop.permute.xlu1 %2146  ;;  %v5103_v5 = vpop.permute.xlu0 %2161 }
 0x574   : > { %v5105_v11 = vpop.permute.xlu1 %2156  ;;  %v5107_v8 = vpop.permute.xlu0 %2171 }
 0x578   : > { %v5109_v2 = vpop.permute.xlu1 %2166  ;;  %v5111_v42 = vpop.permute.xlu0 %2181 }
 0x57c   : > { %v5113_v34 = vpop.permute.xlu1 %2176  ;;  %v5115_v40 = vpop.permute.xlu0 %2191 }
 0x580   : > { %v5120_v21 = vpop.permute.xlu1 %2186  ;;  %v5122_v63 = vpop.permute.xlu0 %2201 }
 0x584   : > { %v5125_v1 = vpop.permute.xlu1 %2196  ;;  %v5127_v49 = vpop.permute.xlu0 %2211 }
 0x588   : > { %v5149_v41 = vpop.permute.xlu1 %2206  ;;  %v2254_v15 = vpop.permute.xlu0 %2253 }
 0x589   : > { %v2328_v28 = vmul.f32 %v2254_v15, %v4468_v39  ;;  %v2329_v19 = vmul.f32 %v2254_v15, %v4478_v46  ;;  %v2620_v38 = vsel %vm2521_vm2, %v2254_v15, %v2604_v7  ;;  %v2214_v39 = vmul.f32 %v5097_v18, %v4442_v12  ;;  %v5835_v7 = vld [vmem:[#allocation39_spill] sm:$0xff]  ;;  %v5838_v15 = vld [vmem:[#allocation41_spill] sm:$0xff] }
 0x58a   : > { %v2636_v55 = vsel %vm2520_vm1, %v2142_v56, %v2620_v38  ;;  %v2218_v0 = vmul.f32 %v5101_v60, %v5835_v7  ;;  %v5850_v7 = vld [vmem:[#allocation59_spill] sm:$0xff] }
 0x58b   : > { %v2360_v46 = vadd.f32 %v2328_v28, %v2216_v16  ;;  %v2361_v47 = vadd.f32 %v2329_v19, %v2217_v22  ;;  %2652 = vst [vmem:[%s4327_s18 + $0x8] sm:$0xff] %v2636_v55  ;;  %v5839_v16 = vld [vmem:[#allocation42_spill] sm:$0xff]  ;;  %v5842_v55 = vld [vmem:[#allocation51_spill] sm:$0xff] }
 0x58c   : > { %v2249_v12 = vpop.permute.xlu1 %2248  ;;  %v2264_v43 = vpop.permute.xlu0 %2263  ;;  %v5840_v19 = vld [vmem:[#allocation50_spill] sm:$0xff] }
 0x58d   : > { %2392 = vst [vmem:[%s4325_s5 + $0x10] sm:$0xff] %v2360_v46  ;;  %2393 = vst [vmem:[%s4325_s5 + $0x18] sm:$0xff] %v2361_v47  ;;  %v2326_v25 = vmul.f32 %v2249_v12, %v5830_v27  ;;  %v2327_v30 = vmul.f32 %v2249_v12, %v5831_v4  ;;  %v2619_v61 = vsel %vm2521_vm2, %v2249_v12, %v2603_v36 }
 0x58e   : > { %v2332_v56 = vmul.f32 %v2264_v43, %v5832_v45  ;;  %v2635_v23 = vsel %vm2520_vm1, %v5097_v18, %v2619_v61  ;;  %v2333_v31 = vmul.f32 %v2264_v43, %v5834_v6  ;;  %v2622_v48 = vsel %vm2521_vm2, %v2264_v43, %v2606_v14  ;;  %v5836_v18 = vld [vmem:[#allocation40_spill] sm:$0xff] }
 0x58f   : > { %v2358_v62 = vadd.f32 %v2326_v25, %v2214_v39  ;;  %v2359_v52 = vadd.f32 %v2327_v30, %v2215_v10  ;;  %2651 = vst [vmem:[%s4327_s18] sm:$0xff] %v2635_v23  ;;  %v2638_v17 = vsel %vm2520_vm1, %v5099_v32, %v2622_v48  ;;  %v2219_v26 = vmul.f32 %v5101_v60, %v5836_v18  ;;  %v5841_v39 = vld [vmem:[#allocation49_spill] sm:$0xff]  ;;  %v5843_v25 = vld [vmem:[#allocation52_spill] sm:$0xff]  ;;  %v5847_v23 = vld [vmem:[#allocation55_spill] sm:$0xff] }
 0x590   : > { %v2364_v33 = vadd.f32 %v2332_v56, %v2220_v29  ;;  %v2224_v36 = vmul.f32 %v5103_v5, %v5837_v35  ;;  %v2365_v59 = vadd.f32 %v2333_v31, %v2221_v44  ;;  %2654 = vst [vmem:[%s4327_s18 + $0x18] sm:$0xff] %v2638_v17  ;;  %v2259_v14 = vpop.permute.xlu1 %2258  ;;  %v2274_v24 = vpop.permute.xlu0 %2273  ;;  %v2225_v46 = vmul.f32 %v5103_v5, %v5841_v39  ;;  %v5845_v61 = vld [vmem:[#allocation56_spill] sm:$0xff]  ;;  %v5846_v44 = vld [vmem:[#allocation54_spill] sm:$0xff] }
 0x591   : > { %2390 = vst [vmem:[%s4325_s5] sm:$0xff] %v2358_v62  ;;  %2391 = vst [vmem:[%s4325_s5 + $0x8] sm:$0xff] %v2359_v52  ;;  %v2330_v32 = vmul.f32 %v2259_v14, %v5838_v15  ;;  %v2331_v22 = vmul.f32 %v2259_v14, %v5839_v16  ;;  %v2621_v28 = vsel %vm2521_vm2, %v2259_v14, %v2605_v20  ;;  %v5848_v48 = vld [vmem:[#allocation58_spill] sm:$0xff]  ;;  %v5849_v52 = vld [vmem:[#allocation57_spill] sm:$0xff] }
 0x592   : > { %2396 = vst [vmem:[%s4325_s5 + $0x30] sm:$0xff] %v2364_v33  ;;  %v2336_v38 = vmul.f32 %v2274_v24, %v5840_v19  ;;  %2397 = vst [vmem:[%s4325_s5 + $0x38] sm:$0xff] %v2365_v59  ;;  %v2637_v47 = vsel %vm2520_vm1, %v5101_v60, %v2621_v28  ;;  %v2337_v10 = vmul.f32 %v2274_v24, %v5842_v55  ;;  %v5844_v60 = vld [vmem:[#allocation53_spill] sm:$0xff]  ;;  %v5851_v59 = vld [vmem:[#allocation60_spill] sm:$0xff] }
 0x593   : > { %v2624_v29 = vsel %vm2521_vm2, %v2274_v24, %v2608_v53  ;;  %v2362_v20 = vadd.f32 %v2330_v32, %v2218_v0  ;;  %v2363_v12 = vadd.f32 %v2331_v22, %v2219_v26  ;;  %2653 = vst [vmem:[%s4327_s18 + $0x10] sm:$0xff] %v2637_v47  ;;  %v2222_v4 = vmul.f32 %v5105_v11, %v5843_v25  ;;  %v5852_v14 = vld [vmem:[#allocation61_spill] sm:$0xff]  ;;  %v5853_v15 = vld [vmem:[#allocation64_spill] sm:$0xff]  ;;  %v5854_v28 = vld [vmem:[#allocation62_spill] sm:$0xff] }
 0x594   : > { %v2368_v43 = vadd.f32 %v2336_v38, %v2224_v36  ;;  %v2640_v27 = vsel %vm2520_vm1, %v5103_v5, %v2624_v29  ;;  %v2223_v30 = vmul.f32 %v5105_v11, %v5844_v60  ;;  %v2228_v45 = vmul.f32 %v5107_v8, %v5845_v61  ;;  %v2269_v53 = vpop.permute.xlu1 %2268  ;;  %v2284_v13 = vpop.permute.xlu0 %2283  ;;  %v5855_v19 = vld [vmem:[#allocation63_spill] sm:$0xff]  ;;  %v5857_v55 = vld [vmem:[#allocation65_spill] sm:$0xff]  ;;  %v5859_v60 = vld [vmem:[#allocation68_spill] sm:$0xff] }
 0x595   : > { %v2369_v56 = vadd.f32 %v2337_v10, %v2225_v46  ;;  %2656 = vst [vmem:[%s4327_s18 + $0x28] sm:$0xff] %v2640_v27  ;;  %2394 = vst [vmem:[%s4325_s5 + $0x20] sm:$0xff] %v2362_v20  ;;  %v2334_v5 = vmul.f32 %v2269_v53, %v5846_v44  ;;  %v2335_v6 = vmul.f32 %v2269_v53, %v5847_v23  ;;  %v5856_v46 = vld [vmem:[#allocation66_spill] sm:$0xff]  ;;  %v5858_v20 = vld [vmem:[#allocation67_spill] sm:$0xff] }
 0x596   : > { %2395 = vst [vmem:[%s4325_s5 + $0x28] sm:$0xff] %v2363_v12  ;;  %2400 = vst [vmem:[%s4325_s5 + $0x50] sm:$0xff] %v2368_v43  ;;  %v2623_v31 = vsel %vm2521_vm2, %v2269_v53, %v5143_v50  ;;  %v2340_v62 = vmul.f32 %v2284_v13, %v5848_v48  ;;  %v2229_v33 = vmul.f32 %v5107_v8, %v5849_v52  ;;  %v5862_v44 = vld [vmem:[#allocation70_spill] sm:$0xff] }
 0x597   : > { %2401 = vst [vmem:[%s4325_s5 + $0x58] sm:$0xff] %v2369_v56  ;;  %v2639_v17 = vsel %vm2520_vm1, %v5105_v11, %v2623_v31  ;;  %v2341_v0 = vmul.f32 %v2284_v13, %v5850_v7  ;;  %v2626_v50 = vsel %vm2521_vm2, %v2284_v13, %v5147_v3  ;;  %v2366_v18 = vadd.f32 %v2334_v5, %v2222_v4  ;;  %v5863_v5 = vld [vmem:[#allocation71_spill] sm:$0xff]  ;;  %v5864_v31 = vld [vmem:[#allocation74_spill] sm:$0xff] }
 0x598   : > { %v2367_v26 = vadd.f32 %v2335_v6, %v2223_v30  ;;  %2655 = vst [vmem:[%s4327_s18 + $0x20] sm:$0xff] %v2639_v17  ;;  %v2372_v35 = vadd.f32 %v2340_v62, %v2228_v45  ;;  %v2642_v36 = vsel %vm2520_vm1, %v5107_v8, %v2626_v50  ;;  %v2226_v11 = vmul.f32 %v5109_v2, %v5851_v59  ;;  %v2279_v3 = vpop.permute.xlu1 %2278  ;;  %v2294_v22 = vpop.permute.xlu0 %2293  ;;  %v5860_v30 = vld [vmem:[#allocation69_spill] sm:$0xff]  ;;  %v5861_v45 = vld [vmem:[#allocation72_spill] sm:$0xff]  ;;  %v5866_v17 = vld [vmem:[#allocation75_spill] sm:$0xff] }
 0x599   : > { %v2227_v24 = vmul.f32 %v5109_v2, %v5852_v14  ;;  %v2232_v32 = vmul.f32 %v5111_v42, %v5853_v15  ;;  %v2373_v16 = vadd.f32 %v2341_v0, %v2229_v33  ;;  %2658 = vst [vmem:[%s4327_s18 + $0x38] sm:$0xff] %v2642_v36  ;;  %2398 = vst [vmem:[%s4325_s5 + $0x40] sm:$0xff] %v2366_v18  ;;  %v5865_v62 = vld [vmem:[#allocation73_spill] sm:$0xff] }
 0x59a   : > { %2399 = vst [vmem:[%s4325_s5 + $0x48] sm:$0xff] %v2367_v26  ;;  %2404 = vst [vmem:[%s4325_s5 + $0x70] sm:$0xff] %v2372_v35  ;;  %v2338_v8 = vmul.f32 %v2279_v3, %v5854_v28  ;;  %v2339_v38 = vmul.f32 %v2279_v3, %v5855_v19  ;;  %v2625_v39 = vsel %vm2521_vm2, %v2279_v3, %v5157_v57  ;;  %v5867_v35 = vld [vmem:[#allocation76_spill] sm:$0xff]  ;;  %v5868_v36 = vld [vmem:[#allocation77_spill] sm:$0xff] }
 0x59b   : > { %v2344_v47 = vmul.f32 %v2294_v22, %v5856_v46  ;;  %v2233_v10 = vmul.f32 %v5111_v42, %v5857_v55  ;;  %2405 = vst [vmem:[%s4325_s5 + $0x78] sm:$0xff] %v2373_v16  ;;  %v2641_v29 = vsel %vm2520_vm1, %v5109_v2, %v2625_v39  ;;  %v2345_v12 = vmul.f32 %v2294_v22, %v5858_v20  ;;  %v5871_v16 = vld [vmem:[#allocation79_spill] sm:$0xff]  ;;  %v5872_v28 = vld [vmem:[#allocation82_spill] sm:$0xff]  ;;  %v5873_v19 = vld [vmem:[#allocation81_spill] sm:$0xff] }
 0x59c   : > { %v2628_v57 = vsel %vm2521_vm2, %v2294_v22, %v5161_v54  ;;  %v2370_v43 = vadd.f32 %v2338_v8, %v2226_v11  ;;  %v2371_v27 = vadd.f32 %v2339_v38, %v2227_v24  ;;  %2657 = vst [vmem:[%s4327_s18 + $0x30] sm:$0xff] %v2641_v29  ;;  %v2230_v2 = vmul.f32 %v5113_v34, %v5859_v60  ;;  %v2289_v54 = vpop.permute.xlu1 %2288  ;;  %v2304_v13 = vpop.permute.xlu0 %2303  ;;  %v5869_v11 = vld [vmem:[#allocation80_spill] sm:$0xff]  ;;  %v5874_v46 = vld [vmem:[#allocation83_spill] sm:$0xff] }
 0x59d   : > { %v2376_v25 = vadd.f32 %v2344_v47, %v2232_v32  ;;  %v2644_v4 = vsel %vm2520_vm1, %v5111_v42, %v2628_v57  ;;  %v2231_v61 = vmul.f32 %v5113_v34, %v5860_v30  ;;  %v2236_v56 = vmul.f32 %v5115_v40, %v5861_v45  ;;  %v5870_v32 = vld [vmem:[#allocation78_spill] sm:$0xff]  ;;  %v5875_v55 = vld [vmem:[#allocation84_spill] sm:$0xff]  ;;  %v5880_v45 = vld [vmem:[#allocation87_spill] sm:$0xff] }
 0x59e   : > { %v2377_v53 = vadd.f32 %v2345_v12, %v2233_v10  ;;  %2660 = vst [vmem:[%s4327_s18 + $0x48] sm:$0xff] %v2644_v4  ;;  %2402 = vst [vmem:[%s4325_s5 + $0x60] sm:$0xff] %v2370_v43  ;;  %v2342_v42 = vmul.f32 %v2289_v54, %v5862_v44  ;;  %v2343_v23 = vmul.f32 %v2289_v54, %v5863_v5  ;;  %v5876_v12 = vld [vmem:[#allocation85_spill] sm:$0xff]  ;;  %v5877_v43 = vld [vmem:[#allocation88_spill] sm:$0xff] }
 0x59f   : > { %2403 = vst [vmem:[%s4325_s5 + $0x68] sm:$0xff] %v2371_v27  ;;  %2408 = vst [vmem:[%s4325_s5 + $0x90] sm:$0xff] %v2376_v25  ;;  %v2627_v6 = vsel %vm2521_vm2, %v2289_v54, %v5165_v37  ;;  %v2348_v48 = vmul.f32 %v2304_v13, %v5864_v31  ;;  %v2237_v52 = vmul.f32 %v5115_v40, %v5865_v62  ;;  %v5878_v25 = vld [vmem:[#allocation89_spill] sm:$0xff]  ;;  %v5879_v30 = vld [vmem:[#allocation86_spill] sm:$0xff] }
 0x5a0   : > { %2409 = vst [vmem:[%s4325_s5 + $0x98] sm:$0xff] %v2377_v53  ;;  %v2643_v33 = vsel %vm2520_vm1, %v5113_v34, %v2627_v6  ;;  %v2349_v7 = vmul.f32 %v2304_v13, %v5866_v17  ;;  %v2630_v37 = vsel %vm2521_vm2, %v2304_v13, %v5175_v51  ;;  %v2374_v0 = vadd.f32 %v2342_v42, %v2230_v2  ;;  %v2299_v51 = vpop.permute.xlu1 %2298  ;;  %v2314_v15 = vpop.permute.xlu0 %2313  ;;  %v5881_v53 = vld [vmem:[#allocation90_spill] sm:$0xff]  ;;  %v5882_v13 = vld [vmem:[#allocation91_spill] sm:$0xff] }
 0x5a1   : > { %v2375_v50 = vadd.f32 %v2343_v23, %v2231_v61  ;;  %2659 = vst [vmem:[%s4327_s18 + $0x40] sm:$0xff] %v2643_v33  ;;  %v2380_v18 = vadd.f32 %v2348_v48, %v2236_v56  ;;  %v2646_v26 = vsel %vm2520_vm1, %v5115_v40, %v2630_v37  ;;  %v2234_v34 = vmul.f32 %v5120_v21, %v5867_v35  ;;  %v5883_v48 = vld [vmem:[#allocation92_spill] sm:$0xff]  ;;  %v5885_v17 = vld [vmem:[#allocation94_spill] sm:$0xff]  ;;  %v5886_v37 = vld [vmem:[#allocation95_spill] sm:$0xff] }
 0x5a2   : > { %v2235_v59 = vmul.f32 %v5120_v21, %v5868_v36  ;;  %v2240_v14 = vmul.f32 %v5122_v63, %v5869_v11  ;;  %v2381_v24 = vadd.f32 %v2349_v7, %v2237_v52  ;;  %2662 = vst [vmem:[%s4327_s18 + $0x58] sm:$0xff] %v2646_v26  ;;  %2406 = vst [vmem:[%s4325_s5 + $0x80] sm:$0xff] %v2374_v0  ;;  %v5884_v52 = vld [vmem:[#allocation93_spill] sm:$0xff] }
 0x5a3   : > { %2407 = vst [vmem:[%s4325_s5 + $0x88] sm:$0xff] %v2375_v50  ;;  %2412 = vst [vmem:[%s4325_s5 + $0xb0] sm:$0xff] %v2380_v18  ;;  %v2346_v40 = vmul.f32 %v2299_v51, %v5870_v32  ;;  %v2347_v3 = vmul.f32 %v2299_v51, %v5871_v16  ;;  %v2629_v22 = vsel %vm2521_vm2, %v2299_v51, %v5179_v58 }
 0x5a4   : > { %v2352_v8 = vmul.f32 %v2314_v15, %v5872_v28  ;;  %v2241_v38 = vmul.f32 %v5122_v63, %v5873_v19  ;;  %2413 = vst [vmem:[%s4325_s5 + $0xb8] sm:$0xff] %v2381_v24  ;;  %v2645_v39 = vsel %vm2520_vm1, %v5120_v21, %v2629_v22  ;;  %v2353_v47 = vmul.f32 %v2314_v15, %v5874_v46  ;;  %v2309_v60 = vpop.permute.xlu1 %2308  ;;  %v2324_v2 = vpop.permute.xlu0 %2323 }
 0x5a5   : > { %v2238_v10 = vmul.f32 %v5125_v1, %v5875_v55  ;;  %v2378_v29 = vadd.f32 %v2346_v40, %v2234_v34  ;;  %v2379_v58 = vadd.f32 %v2347_v3, %v2235_v59  ;;  %2661 = vst [vmem:[%s4327_s18 + $0x50] sm:$0xff] %v2645_v39  ;;  %v2239_v57 = vmul.f32 %v5125_v1, %v5876_v12 }
 0x5a6   : > { %v2384_v20 = vadd.f32 %v2352_v8, %v2240_v14  ;;  %v2244_v27 = vmul.f32 %v5127_v49, %v5877_v43  ;;  %v2245_v4 = vmul.f32 %v5127_v49, %v5878_v25  ;;  %v2385_v21 = vadd.f32 %v2353_v47, %v2241_v38 }
 0x5a7   : > { %2410 = vst [vmem:[%s4325_s5 + $0xa0] sm:$0xff] %v2378_v29  ;;  %2411 = vst [vmem:[%s4325_s5 + $0xa8] sm:$0xff] %v2379_v58  ;;  %v2350_v61 = vmul.f32 %v2309_v60, %v5879_v30  ;;  %v2351_v56 = vmul.f32 %v2309_v60, %v5880_v45  ;;  %v2356_v54 = vmul.f32 %v2324_v2, %v5881_v53 }
 0x5a8   : > { %2416 = vst [vmem:[%s4325_s5 + $0xd0] sm:$0xff] %v2384_v20  ;;  %v2357_v44 = vmul.f32 %v2324_v2, %v5882_v13  ;;  %2417 = vst [vmem:[%s4325_s5 + $0xd8] sm:$0xff] %v2385_v21  ;;  %v2319_v31 = vpop.permute.xlu1 %2318  ;;  %v2242_v62 = vmul.f32 %v5149_v41, %v5883_v48  ;;  %v2243_v33 = vmul.f32 %v5149_v41, %v5884_v52 }
 0x5a9   : > { %v2382_v42 = vadd.f32 %v2350_v61, %v2238_v10  ;;  %v2383_v5 = vadd.f32 %v2351_v56, %v2239_v57  ;;  %v2388_v23 = vadd.f32 %v2356_v54, %v2244_v27  ;;  %v2354_v7 = vmul.f32 %v2319_v31, %v5885_v17  ;;  %v3347_v50 = vpop.permute.xlu0 %3346 }
 0x5aa   : > { %v2389_v6 = vadd.f32 %v2357_v44, %v2245_v4  ;;  %v2355_v0 = vmul.f32 %v2319_v31, %v5886_v37  ;;  %v3349_v18 = vunpack.i.h.bf16 %v3347_v50  ;;  %v3348_v26 = vunpack.i.l.bf16 %v3347_v50 }
 0x5ab   : > { %2414 = vst [vmem:[%s4325_s5 + $0xc0] sm:$0xff] %v2382_v42  ;;  %2415 = vst [vmem:[%s4325_s5 + $0xc8] sm:$0xff] %v2383_v5  ;;  %v2386_v35 = vadd.f32 %v2354_v7, %v2242_v62 }
 0x5ac   : > { %2420 = vst [vmem:[%s4325_s5 + $0xf0] sm:$0xff] %v2388_v23  ;;  %2421 = vst [vmem:[%s4325_s5 + $0xf8] sm:$0xff] %v2389_v6  ;;  %v2387_v34 = vadd.f32 %v2355_v0, %v2243_v33  ;;  %v2616_v36 = vsel %vm2522_vm0, %v3349_v18, 0.0  ;;  %v2615_v59 = vsel %vm2522_vm0, %v3348_v26, 0.0 }
 0x5ad   : > { %2418 = vst [vmem:[%s4325_s5 + $0xe0] sm:$0xff] %v2386_v35  ;;  %v2632_v11 = vsel %vm2521_vm2, %v2314_v15, %v2616_v36  ;;  %v2631_v14 = vsel %vm2521_vm2, %v2309_v60, %v2615_v59  ;;  %v3353_v24 = vpop.permute.xlu1 %3352 }
 0x5ae   : > { %2419 = vst [vmem:[%s4325_s5 + $0xe8] sm:$0xff] %v2387_v34  ;;  %v2648_v51 = vsel %vm2520_vm1, %v5122_v63, %v2632_v11  ;;  %v2647_v32 = vsel %vm2520_vm1, %v5125_v1, %v2631_v14  ;;  %v3355_v40 = vunpack.i.h.bf16 %v3353_v24  ;;  %v3354_v16 = vunpack.i.l.bf16 %v3353_v24 }
 0x5af   : > { %2664 = vst [vmem:[%s4327_s18 + $0x68] sm:$0xff] %v2648_v51  ;;  %2663 = vst [vmem:[%s4327_s18 + $0x60] sm:$0xff] %v2647_v32 }
 0x5b0   : > { %v2618_v15 = vsel %vm2522_vm0, %v3355_v40, 0.0  ;;  %v2617_v3 = vsel %vm2522_vm0, %v3354_v16, 0.0 }
 0x5b1   : > { %v2633_v22 = vsel %vm2521_vm2, %v2319_v31, %v2617_v3  ;;  %v2634_v63 = vsel %vm2521_vm2, %v2324_v2, %v2618_v15 }
 0x5b2   : > { %v2649_v1 = vsel %vm2520_vm1, %v5149_v41, %v2633_v22  ;;  %v2650_v28 = vsel %vm2520_vm1, %v5127_v49, %v2634_v63 }
 0x5b3   : > { %2665 = vst [vmem:[%s4327_s18 + $0x70] sm:$0xff] %v2649_v1  ;;  %2666 = vst [vmem:[%s4327_s18 + $0x78] sm:$0xff] %v2650_v28 }
 0x5b4 PF: > { %s5887_s15 = sld [smem:[#allocation30_spill]]  ;;  %s5888_s23 = sld [smem:[#allocation37_spill]] }
 0x5b5   : > { %s5889_s13 = sld [smem:[#allocation105_spill]]  ;;  %s2687_s22 = sshll.u32 %s4325_s5, 4  ;;  %s5414_s22 = int_to_ptr.vmem [resolvable:$true] %s2687_s22 }
 0x5b6   : > { %s2668_s9 = scalar_lea.sflag [#allocation6], %s4321_s8  ;;  %s3540_s16 = scalar_lea.vmem %s5414_s22, 4096 }
 0x5b7   : > { %p3541_p6 = scmp.ne.s32.totalorder %s5414_s22, %s3540_s16  ;;  %s3797_s28 = smov [#allocation12]  }
 0x5b8   : > { %s3544_s24 = sshll.u32 %s3797_s28, 4  ;;  %s3545_s24 = int_to_ptr.vmem [resolvable:$false] %s3544_s24 }
 0x5b9   : > { %s3546_s0 = scalar_lea.vmem %s3545_s24, 8192  ;;  %p3547_p9 = scmp.lt.s32.totalorder %s5414_s22, %s3545_s24 }
 0x5ba   : > { %s3000_s29 = sshll.u32 %s5887_s15, 12  ;;  %p5891_p8 = scmp.ne.s32.totalorder %s5888_s23, 0 }
 0x5bb   : > { %s5890_s4 = smov %s5889_s13  ;;  %s5411_s17 = scalar_lea.hbm %s5889_s13, %s3000_s29 }
 0x5bc   : > { %p3542_p0 = pnand %p3541_p6, %p5891_p8  ;;  %p3548_p12 = scmp.lt.s32.totalorder %s3546_s0, %s3540_s16 }
 0x5be   : > { %p3543_p1 = pneg %p3542_p0  ;;  %p3549_p4 = por %p3548_p12, %p3547_p9 }
 0x5c0   : > { %p3550_p5 = pnand %p3549_p4, %p3543_p1 }
 0x5c2   : > { %3553 = shalt.err (!%p3550_p5)
}
 0x5c3   : > { %s3554_s5 = scalar_lea.hbm %s5411_s17, 4096  ;;  %s3558_s14 = scalar_lea.hbm %s5890_s4, 8192 }
 0x5c4   : > { %p3555_p10 = scmp.ne.s32.totalorder %s5411_s17, %s3554_s5  ;;  %p3559_p7 = scmp.lt.u32.totalorder %s5411_s17, %s5890_s4 }
 0x5c5   : > { %p3560_p13 = scmp.lt.u32.totalorder %s3558_s14, %s3554_s5  ;;  %p3562_p6 = scmp.lt.u32.totalorder %s3554_s5, %s5411_s17 }
 0x5c6   : > { %p3556_p11 = pnand %p3555_p10, %p5891_p8 }
 0x5c7   : > { %p3561_p3 = por %p3560_p13, %p3559_p7 }
 0x5c8   : > { %p3557_p2 = pneg %p3556_p11 }
 0x5c9   : > { %p3563_p0 = por %p3562_p6, %p3561_p3 }
 0x5cb   : > { %p3564_p1 = pnand %p3563_p0, %p3557_p2 }
 0x5cd   : > { %3567 = shalt.err (!%p3564_p1)
}
 0x5ce   : > { %s3798_s7 = smov 256   ;;  %s3799_s10 = smov 16  }
 0x5cf   : > { %3043 = dma.vmem_to_hbm [thread:$0]  (%p5891_p8), %s5414_s22, 4096, %s5411_s17, %s2668_s9, %s3798_s7, %s3798_s7, %s3799_s10  }
 0x5d0   : > { %s3001_s13 = sshll.u32 %s5887_s15, 11  ;;  %s2703_s16 = sshll.u32 %s4327_s18, 4  ;;  %s5447_s16 = int_to_ptr.vmem [resolvable:$true] %s2703_s16 }
 0x5d1   : > { %s5892_s0 = sld [smem:[#allocation106_spill]]  ;;  %s2673_s25 = scalar_lea.sflag [#allocation14], %s4321_s8 }
 0x5d2   : > { %s3568_s19 = scalar_lea.vmem %s5447_s16, 2048  ;;  %s3800_s14 = smov [#allocation13]  }
 0x5d3   : > { %p3569_p9 = scmp.ne.s32.totalorder %s5447_s16, %s3568_s19  ;;  %s3572_s17 = sshll.u32 %s3800_s14, 4  ;;  %s3573_s17 = int_to_ptr.vmem [resolvable:$false] %s3572_s17 }
 0x5d4   : > { %s3574_s18 = scalar_lea.vmem %s3573_s17, 4096  ;;  %p3575_p5 = scmp.lt.s32.totalorder %s5447_s16, %s3573_s17 }
 0x5d5   : > { %p3570_p12 = pnand %p3569_p9, %p5891_p8  ;;  %p3576_p10 = scmp.lt.s32.totalorder %s3574_s18, %s3568_s19 }
 0x5d7   : > { %s5445_s5 = scalar_lea.hbm %s5892_s0, %s3001_s13  ;;  %p3571_p4 = pneg %p3570_p12 }
 0x5d8   : > { %p3577_p11 = por %p3576_p10, %p3575_p5 }
 0x5da   : > { %p3578_p2 = pnand %p3577_p11, %p3571_p4 }
 0x5dc   : > { %3581 = shalt.err (!%p3578_p2)
}
 0x5dd   : > { %s3582_s15 = scalar_lea.hbm %s5445_s5, 2048  ;;  %s3586_s1 = scalar_lea.hbm %s5892_s0, 4096 }
 0x5de   : > { %p3583_p7 = scmp.ne.s32.totalorder %s5445_s5, %s3582_s15  ;;  %p3587_p6 = scmp.lt.u32.totalorder %s5445_s5, %s5892_s0 }
 0x5df   : > { %p3588_p0 = scmp.lt.u32.totalorder %s3586_s1, %s3582_s15  ;;  %p3590_p9 = scmp.lt.u32.totalorder %s3582_s15, %s5445_s5 }
 0x5e0   : > { %p3584_p13 = pnand %p3583_p7, %p5891_p8 }
 0x5e1   : > { %p3589_p1 = por %p3588_p0, %p3587_p6 }
 0x5e2   : > { %p3585_p3 = pneg %p3584_p13 }
 0x5e3   : > { %p3591_p12 = por %p3590_p9, %p3589_p1 }
 0x5e5   : > { %p3592_p4 = pnand %p3591_p12, %p3585_p3 }
 0x5e7   : > { %3595 = shalt.err (!%p3592_p4)
}
 0x5e8   : > { %s3801_s10 = smov 128   ;;  %s3802_s13 = smov 8  }
 0x5e9   : > { %3044 = dma.vmem_to_hbm [thread:$0]  (%p5891_p8), %s5447_s16, 2048, %s5445_s5, %s2673_s25, %s3801_s10, %s3801_s10, %s3802_s13  }
 0x5ea PF: > { %s5893_s28 = sld [smem:[#allocation21_spill]]  ;;  %s5894_s24 = sld [smem:[#allocation38_spill]] }
 0x5eb   : > { %p3068_p5 = scmp.ge.s32.totalorder %s3778_s12, 2 }
 0x5f0   : > { %s2718_s19 = sand.u32 1, %s5893_s28   ;;  %p5895_p10 = scmp.ne.s32.totalorder %s5894_s24, 0 }
 0x5f1   : > { %s2719_s14 = scalar_lea.sflag [#allocation6], %s2718_s19 }
 0x5f2   : > { %p3061_p11 = pnand %p3068_p5, %p5895_p10 }
 0x5f4   : > { %3693 = dma.done.wait (!%p3061_p11), %s2719_s14, 4096  }
 0x5f5   : > { %3695 = vsyncadd (!%p3061_p11), %s2719_s14, 4294963200  ;;  %s2728_s17 = scalar_lea.sflag [#allocation14], %s2718_s19 }
 0x5f6   : > { %3697 = dma.done.wait (!%p3061_p11), %s2728_s17, 2048  }
 0x5f7   : > { %3699 = vsyncadd (!%p3061_p11), %s2728_s17, 4294965248  ;;  %s36_s12 = sadd.s32 1, %s3778_s12   ;;  %s5897_s13 = sld [smem:[#allocation22_spill]] }
 0x5f8   : > { %p5478_p2 = scmp.ge.s32.totalorder %s36_s12, 12   ;;  %s5898_s14 = sld [smem:[#allocation23_spill]] }
 0x5f9   : > { %s5899_s15 = sld [smem:[#allocation36_spill]]  ;;  %s5901_s17 = sld [smem:[#allocation26_spill]] }
 0x5fa   : > { %s5900_s16 = sld [smem:[#allocation25_spill]]  ;;  %s5902_s22 = sld [smem:[#allocation27_spill]] }
 0x5fb   : > { %s5903_s8 = sld [smem:[#allocation28_spill]]  ;;  %s5904_s24 = sld [smem:[#allocation35_spill]] }
 0x5fc   : > { %s5905_s28 = sld [smem:[#allocation31_spill]]  ;;  %s5906_s5 = sld [smem:[#allocation32_spill]] }
 0x5fd   : > { %s5907_s9 = sld [smem:[#allocation33_spill]]  ;;  %s5909_s18 = smov %s4233_s30 }
 0x5fe   : > { %s5910_s19 = smov %s3730_s20  ;;  %s5911_s20 = smov %s3734_s21 }
 0x5ff   : > { %s5912_s21 = smov %s4170_s3  ;;  %s5914_s25 = smov %s3754_s26 }
 0x600   : > { %s5915_s26 = smov %s3758_s27  ;;  %s5916_s27 = smov %s4115_s6 }
 0x601   : > { %s5913_s23 = smov %s5903_s8  ;;  %s5917_s29 = smov %s3774_s11 }
 0x602   : > { %s5918_s30 = smov %s5906_s5  ;;  %35 = sbr.rel (!%p5478_p2) target bundleno = 31 (0x1f), region = 171 }
 0x603   : > { %s5919_s11 = smov %s5907_s9 }
 0x609   :  { %2733 = vsyncpa [#allocation5], 1 }
 0x60a   :  { %2735 = vsyncpa [#allocation5 + $0x1], 1 }
 0x60b   :  { %2736 = vsyncpa [#allocation8], 1 }
 0x60c   :  { %2738 = vsyncpa [#allocation8 + $0x1], 1 }
 0x60d   :  { %2739 = vsyncpa [#allocation11], 1 }
 0x60e   :  { %2741 = vsyncpa [#allocation11 + $0x1], 1 }
 0x60f   :  { %2742 = vsyncpa [#allocation6], 1 }
 0x610   :  { %2744 = vsyncpa [#allocation6 + $0x1], 1 }
 0x611   :  { %2745 = vsyncpa [#allocation14], 1 }
 0x612   :  { %2747 = vsyncpa [#allocation14 + $0x1], 1 }

</bundles_post_ra>
